<compile_context>
chip_gen: v7x
topology: tpu7x:2x2x1
jax: 0.10.0
libtpu: 0.0.40
codegen_flags: <defaults>
</compile_context>

<pallas_src>
import functools

import jax
import jax.numpy as jnp
from jax.experimental import pallas as pl
from jax.experimental.pallas import tpu as pltpu

CFG = [1040, 512, 256, 128, 64, 1]
BN_EPS = 1e-5
_VMEM_LIMIT_BYTES = 40 * 1024 * 1024   # explicit budget: fits v7x (64 MiB), v5e/v6e (128 MiB)


def _round_up(x, m):
    return (x + m - 1) // m * m


def _block_spec(shape, index_map, buffer_count=None):
    """BlockSpec with optional pipeline depth; degrades gracefully if the
    running JAX version does not support pipeline_mode."""
    if buffer_count is not None:
        try:
            return pl.BlockSpec(shape, index_map,
                                pipeline_mode=pl.Buffered(buffer_count))
        except TypeError:
            pass
    return pl.BlockSpec(shape, index_map)


def _final_kernel(x_ref,
                  w1, b1, w2, b2, w3, b3, w4, b4, w5, b5,
                  o_ref):
    """One (1, 1040, tile_hw) NCHW block through all five fused 1x1-conv layers.

    x_ref: f32 or bf16 activations (cast to bf16 in-kernel);
    w*: bf16 (C_out, C_in) BN-folded weights; b*: f32 (C_out, 1) BN-folded
    biases; o_ref: f32 (1, 1, tile_hw).
    """
    # In-kernel cast: avoids a standalone XLA astype pass over the 1040-channel
    # input in HBM (3-5x the kernel's own input DMA).  No-op if already bf16.
    h = x_ref[0].astype(jnp.bfloat16)                 # (1040, tile_hw)

    def conv_relu(h_in, w_ref, b_ref):
        y = jnp.dot(w_ref[...], h_in, preferred_element_type=jnp.float32)
        return jnp.maximum(y + b_ref[...], 0.0)       # f32 epilogue

    h = conv_relu(h, w1, b1).astype(jnp.bfloat16)     # (512, tile_hw)
    h = conv_relu(h, w2, b2).astype(jnp.bfloat16)     # (256, tile_hw)
    h = conv_relu(h, w3, b3).astype(jnp.bfloat16)     # (128, tile_hw)
    h = conv_relu(h, w4, b4).astype(jnp.bfloat16)     # (64,  tile_hw)
    h = conv_relu(h, w5, b5)                          # (1,   tile_hw) f32
    o_ref[0] = h.astype(o_ref.dtype)


def init_params(key):
    """Deterministic synthetic parameters matching the PyTorch module shapes."""
    params = {}
    for li, (cin, cout) in enumerate(zip(CFG[:-1], CFG[1:])):
        kw = jax.random.fold_in(key, 10 * li + 0)
        kb = jax.random.fold_in(key, 10 * li + 1)
        # PyTorch Conv2d weight (C_out, C_in, 1, 1) -> (C_out, C_in)
        params[f"w{li+1}"] = (jax.random.normal(kw, (cout, cin), jnp.float32)
                              / jnp.sqrt(cin))
        params[f"b{li+1}"] = 0.01 * jax.random.normal(kb, (cout,), jnp.float32)
        if li < 3:  # BatchNorm2d (eval mode: running stats + affine)
            kg = jax.random.fold_in(key, 10 * li + 2)
            ke = jax.random.fold_in(key, 10 * li + 3)
            km = jax.random.fold_in(key, 10 * li + 4)
            kv = jax.random.fold_in(key, 10 * li + 5)
            params[f"gamma{li+1}"] = 1.0 + 0.05 * jax.random.normal(kg, (cout,), jnp.float32)
            params[f"beta{li+1}"] = 0.05 * jax.random.normal(ke, (cout,), jnp.float32)
            params[f"mean{li+1}"] = 0.1 * jax.random.normal(km, (cout,), jnp.float32)
            params[f"var{li+1}"] = 1.0 + 0.1 * jax.random.uniform(kv, (cout,), jnp.float32)
    return params


def fold_params(params):
    """Fold eval-mode BN into conv weights/biases; weights -> bf16, biases -> f32."""
    ws, bs = [], []
    for li in range(5):
        w = params[f"w{li+1}"]                 # (C_out, C_in) f32
        b = params[f"b{li+1}"]                 # (C_out,)      f32
        if li < 3:
            scale = params[f"gamma{li+1}"] / jnp.sqrt(params[f"var{li+1}"] + BN_EPS)
            shift = params[f"beta{li+1}"] - params[f"mean{li+1}"] * scale
            w = w * scale[:, None]
            b = b * scale + shift
        ws.append(w.astype(jnp.bfloat16))          # MXU-native
        bs.append(b[:, None].astype(jnp.float32))  # (C_out, 1) for lane broadcast
    return ws, bs


def _choose_tile(HW, N, max_tile_hw):
    """Pick the lane tile along H*W.  Returns (tile_hw, HW_pad).

    Prefers a tile that divides HW exactly (no pad copy) and is a multiple of
    128; falls back to the full extent for ragged small HW, or to padding for
    ragged large HW.  Shrinks the tile if needed so the parallel grid has >=2
    programs (v7x has 2 TensorCores per chip)."""
    if HW % 128 != 0:
        if HW <= max_tile_hw:
            return HW, HW                      # full-extent block, no pad needed
        HW_pad = _round_up(HW, 128)            # ragged fallback: pad (no dtype cast)
    else:
        HW_pad = HW
    tile = 128
    t = 128
    while t <= min(HW_pad, max_tile_hw):
        if HW_pad % t == 0:
            tile = t
        t += 128
    # Keep >=2 parallel programs so both TensorCores (v7x) get work.
    while N * (HW_pad // tile) < 2 and tile % 256 == 0:
        tile //= 2
    return tile, HW_pad


@functools.partial(jax.jit, static_argnames=("max_tile_hw",))
def final_forward(x_nchw, ws, bs, *, max_tile_hw=None):
    """x_nchw: (N, 1040, H, W) float32 or bfloat16 -> (N, 1, H, W) float32."""
    N, C, H, W = x_nchw.shape
    assert C == CFG[0]
    HW = H * W

    # Large tiles amortize the ~0.35 us per-grid-step overhead.  bf16 inputs
    # (preferred: producer emits bf16) can use a 2x larger tile than f32 ones
    # within the same VMEM / DMA budget.
    if max_tile_hw is None:
        max_tile_hw = 2048 if x_nchw.dtype == jnp.bfloat16 else 1024

    tile_hw, HW_pad = _choose_tile(HW, N, max_tile_hw)

    x = x_nchw.reshape(N, C, HW)
    if HW_pad != HW:
        # Ragged fallback only.  Note: no standalone dtype cast is ever emitted;
        # the bf16 cast happens inside the kernel.
        x = jnp.pad(x, ((0, 0), (0, 0), (0, HW_pad - HW)))

    weight_args = []
    for w, b in zip(ws, bs):
        weight_args += [w, b]

    def const_spec(a):
        # Constant index_map -> DMA'd exactly once; single-buffer to free
        # ~1.4 MB of VMEM (matters most on v7x's 64 MiB).
        return _block_spec(a.shape, lambda n, t, _nd=a.ndim: (0,) * _nd,
                           buffer_count=1)

    out = pl.pallas_call(
        _final_kernel,
        out_shape=jax.ShapeDtypeStruct((N, 1, HW_pad), jnp.float32),
        grid_spec=pltpu.PrefetchScalarGridSpec(
            num_scalar_prefetch=0,
            grid=(N, HW_pad // tile_hw),
            in_specs=[pl.BlockSpec((1, C, tile_hw), lambda n, t: (n, 0, t))]
                     + [const_spec(a) for a in weight_args],
            out_specs=pl.BlockSpec((1, 1, tile_hw), lambda n, t: (n, 0, t)),
        ),
        compiler_params=pltpu.CompilerParams(
            dimension_semantics=("parallel", "parallel"),
            vmem_limit_bytes=_VMEM_LIMIT_BYTES,
        ),
    )(x, *weight_args)

    out = out[:, :, :HW]            # drop lane padding (no-op if none)
    return out.reshape(N, 1, H, W)


def final_forward_ref_bf16(x_nchw, ws, bs):
    """Pure-JAX reference with the kernel's exact bf16/f32 mixed precision."""
    N, C, H, W = x_nchw.shape
    h = x_nchw.reshape(N, C, H * W).astype(jnp.bfloat16)
    for li in range(5):
        y = jnp.einsum("oc,ncp->nop", ws[li], h,
                       preferred_element_type=jnp.float32) + bs[li][None]
        y = jnp.maximum(y, 0.0)
        h = y.astype(jnp.bfloat16) if li < 4 else y
    return h.reshape(N, 1, H, W)


def final_forward_ref_f32(x_nchw, params):
    """Full-precision reference with explicit (unfolded) eval-mode BatchNorm."""
    N, C, H, W = x_nchw.shape
    h = x_nchw.reshape(N, C, H * W).astype(jnp.float32)
    for li in range(5):
        w = params[f"w{li+1}"]
        b = params[f"b{li+1}"]
        h = jnp.einsum("oc,ncp->nop", w, h) + b[None, :, None]
        if li < 3:
            scale = params[f"gamma{li+1}"] / jnp.sqrt(params[f"var{li+1}"] + BN_EPS)
            shift = params[f"beta{li+1}"] - params[f"mean{li+1}"] * scale
            h = h * scale[None, :, None] + shift[None, :, None]
        h = jnp.maximum(h, 0.0)
    return h.reshape(N, 1, H, W)


if __name__ == "__main__":
    key = jax.random.PRNGKey(0)
    kx, kp = jax.random.split(key)
    # Small shapes consistent with the module: N=2, C_in=1040 (fixed by cfg), 8x8 spatial.
    x = jax.random.normal(kx, (2, 1040, 8, 8), jnp.float32)
    params = init_params(kp)
    ws, bs = fold_params(params)

    y = jax.block_until_ready(final_forward(x, ws, bs))
    assert y.shape == (2, 1, 8, 8), y.shape

    # Tight check against a reference using the kernel's exact bf16/f32 recipe.
    y_ref = final_forward_ref_bf16(x, ws, bs)
    err = float(jnp.max(jnp.abs(y - y_ref)))
    assert err < 2e-3, err

    # Loose sanity check against the full-f32, unfolded-BN reference
    # (catches layout / BN-folding bugs; slack covers bf16 matmul noise).
    y_f32 = final_forward_ref_f32(x, params)
    err_f32 = float(jnp.max(jnp.abs(y - y_f32)))
    assert err_f32 < 0.15, err_f32

    print("KERNEL_OK")
</pallas_src>

<mosaic_0001>
module attributes {stable_mosaic.version = 11 : i64} {
  func.func @_final_kernel(%arg0: i32, %arg1: i32, %arg2: memref<1x1040x64xf32, #tpu.memory_space<vmem>>, %arg3: memref<512x1040xbf16, #tpu.memory_space<vmem>>, %arg4: memref<512x1xf32, #tpu.memory_space<vmem>>, %arg5: memref<256x512xbf16, #tpu.memory_space<vmem>>, %arg6: memref<256x1xf32, #tpu.memory_space<vmem>>, %arg7: memref<128x256xbf16, #tpu.memory_space<vmem>>, %arg8: memref<128x1xf32, #tpu.memory_space<vmem>>, %arg9: memref<64x128xbf16, #tpu.memory_space<vmem>>, %arg10: memref<64x1xf32, #tpu.memory_space<vmem>>, %arg11: memref<1x64xbf16, #tpu.memory_space<vmem>>, %arg12: memref<1x1xf32, #tpu.memory_space<vmem>>, %arg13: memref<1x1x64xf32, #tpu.memory_space<vmem>>) attributes {dimension_semantics = [#tpu.dimension_semantics<parallel>, #tpu.dimension_semantics<parallel>], iteration_bounds = array<i64: 2, 1>, scalar_prefetch = 0 : i64, scratch_operands = 0 : i64, tpu.core_type = #tpu.core_type<tc>, window_params = [{transform_indices = @transform_0, window_bounds = array<i64: 1, 1040, 64>}, {pipeline_mode = #tpu.pipeline_mode<synchronous>, transform_indices = @transform_1, window_bounds = array<i64: 512, 1040>}, {pipeline_mode = #tpu.pipeline_mode<synchronous>, transform_indices = @transform_2, window_bounds = array<i64: 512, 1>}, {pipeline_mode = #tpu.pipeline_mode<synchronous>, transform_indices = @transform_3, window_bounds = array<i64: 256, 512>}, {pipeline_mode = #tpu.pipeline_mode<synchronous>, transform_indices = @transform_4, window_bounds = array<i64: 256, 1>}, {pipeline_mode = #tpu.pipeline_mode<synchronous>, transform_indices = @transform_5, window_bounds = array<i64: 128, 256>}, {pipeline_mode = #tpu.pipeline_mode<synchronous>, transform_indices = @transform_6, window_bounds = array<i64: 128, 1>}, {pipeline_mode = #tpu.pipeline_mode<synchronous>, transform_indices = @transform_7, window_bounds = array<i64: 64, 128>}, {pipeline_mode = #tpu.pipeline_mode<synchronous>, transform_indices = @transform_8, window_bounds = array<i64: 64, 1>}, {pipeline_mode = #tpu.pipeline_mode<synchronous>, transform_indices = @transform_9, window_bounds = array<i64: 1, 64>}, {pipeline_mode = #tpu.pipeline_mode<synchronous>, transform_indices = @transform_10, window_bounds = array<i64: 1, 1>}, {transform_indices = @transform_11, window_bounds = array<i64: 1, 1, 64>}]} {
    %c0 = arith.constant 0 : index
    %c0_0 = arith.constant 0 : index
    %c0_1 = arith.constant 0 : index
    %0 = vector.load %arg2[%c0, %c0_0, %c0_1] : memref<1x1040x64xf32, #tpu.memory_space<vmem>>, vector<1x1040x64xf32>
    %1 = vector.shape_cast %0 : vector<1x1040x64xf32> to vector<1040x64xf32>
    %2 = arith.truncf %1 : vector<1040x64xf32> to vector<1040x64xbf16>
    %c0_2 = arith.constant 0 : index
    %c0_3 = arith.constant 0 : index
    %3 = vector.load %arg3[%c0_2, %c0_3] : memref<512x1040xbf16, #tpu.memory_space<vmem>>, vector<512x1040xbf16>
    %cst = arith.constant dense<0.000000e+00> : vector<512x64xf32>
    %4 = tpu.matmul %3, %2, %cst {dimension_numbers = #tpu.dot_dimension_numbers<[1], [0], [0], [1], [0, 0, 1, 1], [], []>} : vector<512x1040xbf16>, vector<1040x64xbf16>, vector<512x64xf32> -> vector<512x64xf32>
    %c0_4 = arith.constant 0 : index
    %c0_5 = arith.constant 0 : index
    %5 = vector.load %arg4[%c0_4, %c0_5] : memref<512x1xf32, #tpu.memory_space<vmem>>, vector<512x1xf32>
    %6 = vector.broadcast %5 : vector<512x1xf32> to vector<512x64xf32>
    %7 = arith.addf %4, %6 : vector<512x64xf32>
    %cst_6 = arith.constant 0.000000e+00 : f32
    %8 = vector.broadcast %cst_6 : f32 to vector<512x64xf32>
    %9 = arith.maximumf %7, %8 : vector<512x64xf32>
    %10 = arith.truncf %9 : vector<512x64xf32> to vector<512x64xbf16>
    %c0_7 = arith.constant 0 : index
    %c0_8 = arith.constant 0 : index
    %11 = vector.load %arg5[%c0_7, %c0_8] : memref<256x512xbf16, #tpu.memory_space<vmem>>, vector<256x512xbf16>
    %cst_9 = arith.constant dense<0.000000e+00> : vector<256x64xf32>
    %12 = tpu.matmul %11, %10, %cst_9 {dimension_numbers = #tpu.dot_dimension_numbers<[1], [0], [0], [1], [0, 0, 1, 1], [], []>} : vector<256x512xbf16>, vector<512x64xbf16>, vector<256x64xf32> -> vector<256x64xf32>
    %c0_10 = arith.constant 0 : index
    %c0_11 = arith.constant 0 : index
    %13 = vector.load %arg6[%c0_10, %c0_11] : memref<256x1xf32, #tpu.memory_space<vmem>>, vector<256x1xf32>
    %14 = vector.broadcast %13 : vector<256x1xf32> to vector<256x64xf32>
    %15 = arith.addf %12, %14 : vector<256x64xf32>
    %cst_12 = arith.constant 0.000000e+00 : f32
    %16 = vector.broadcast %cst_12 : f32 to vector<256x64xf32>
    %17 = arith.maximumf %15, %16 : vector<256x64xf32>
    %18 = arith.truncf %17 : vector<256x64xf32> to vector<256x64xbf16>
    %c0_13 = arith.constant 0 : index
    %c0_14 = arith.constant 0 : index
    %19 = vector.load %arg7[%c0_13, %c0_14] : memref<128x256xbf16, #tpu.memory_space<vmem>>, vector<128x256xbf16>
    %cst_15 = arith.constant dense<0.000000e+00> : vector<128x64xf32>
    %20 = tpu.matmul %19, %18, %cst_15 {dimension_numbers = #tpu.dot_dimension_numbers<[1], [0], [0], [1], [0, 0, 1, 1], [], []>} : vector<128x256xbf16>, vector<256x64xbf16>, vector<128x64xf32> -> vector<128x64xf32>
    %c0_16 = arith.constant 0 : index
    %c0_17 = arith.constant 0 : index
    %21 = vector.load %arg8[%c0_16, %c0_17] : memref<128x1xf32, #tpu.memory_space<vmem>>, vector<128x1xf32>
    %22 = vector.broadcast %21 : vector<128x1xf32> to vector<128x64xf32>
    %23 = arith.addf %20, %22 : vector<128x64xf32>
    %cst_18 = arith.constant 0.000000e+00 : f32
    %24 = vector.broadcast %cst_18 : f32 to vector<128x64xf32>
    %25 = arith.maximumf %23, %24 : vector<128x64xf32>
    %26 = arith.truncf %25 : vector<128x64xf32> to vector<128x64xbf16>
    %c0_19 = arith.constant 0 : index
    %c0_20 = arith.constant 0 : index
    %27 = vector.load %arg9[%c0_19, %c0_20] : memref<64x128xbf16, #tpu.memory_space<vmem>>, vector<64x128xbf16>
    %cst_21 = arith.constant dense<0.000000e+00> : vector<64x64xf32>
    %28 = tpu.matmul %27, %26, %cst_21 {dimension_numbers = #tpu.dot_dimension_numbers<[1], [0], [0], [1], [0, 0, 1, 1], [], []>} : vector<64x128xbf16>, vector<128x64xbf16>, vector<64x64xf32> -> vector<64x64xf32>
    %c0_22 = arith.constant 0 : index
    %c0_23 = arith.constant 0 : index
    %29 = vector.load %arg10[%c0_22, %c0_23] : memref<64x1xf32, #tpu.memory_space<vmem>>, vector<64x1xf32>
    %30 = vector.broadcast %29 : vector<64x1xf32> to vector<64x64xf32>
    %31 = arith.addf %28, %30 : vector<64x64xf32>
    %cst_24 = arith.constant 0.000000e+00 : f32
    %32 = vector.broadcast %cst_24 : f32 to vector<64x64xf32>
    %33 = arith.maximumf %31, %32 : vector<64x64xf32>
    %34 = arith.truncf %33 : vector<64x64xf32> to vector<64x64xbf16>
    %c0_25 = arith.constant 0 : index
    %c0_26 = arith.constant 0 : index
    %35 = vector.load %arg11[%c0_25, %c0_26] : memref<1x64xbf16, #tpu.memory_space<vmem>>, vector<1x64xbf16>
    %cst_27 = arith.constant dense<0.000000e+00> : vector<1x64xf32>
    %36 = tpu.matmul %35, %34, %cst_27 {dimension_numbers = #tpu.dot_dimension_numbers<[1], [0], [0], [1], [0, 0, 1, 1], [], []>} : vector<1x64xbf16>, vector<64x64xbf16>, vector<1x64xf32> -> vector<1x64xf32>
    %c0_28 = arith.constant 0 : index
    %c0_29 = arith.constant 0 : index
    %37 = vector.load %arg12[%c0_28, %c0_29] : memref<1x1xf32, #tpu.memory_space<vmem>>, vector<1x1xf32>
    %38 = vector.broadcast %37 : vector<1x1xf32> to vector<1x64xf32>
    %39 = arith.addf %36, %38 : vector<1x64xf32>
    %cst_30 = arith.constant 0.000000e+00 : f32
    %40 = vector.broadcast %cst_30 : f32 to vector<1x64xf32>
    %41 = arith.maximumf %39, %40 : vector<1x64xf32>
    %c0_31 = arith.constant 0 : index
    %c0_32 = arith.constant 0 : index
    %c0_33 = arith.constant 0 : index
    %42 = vector.load %arg13[%c0_31, %c0_32, %c0_33] : memref<1x1x64xf32, #tpu.memory_space<vmem>>, vector<1x1x64xf32>
    %43 = vector.shape_cast %42 : vector<1x1x64xf32> to vector<1x64xf32>
    %44 = vector.shape_cast %41 : vector<1x64xf32> to vector<1x1x64xf32>
    tpu.vector_store %arg13[%c0_31, %c0_32, %c0_33], %44 {strides = array<i32>} : memref<1x1x64xf32, #tpu.memory_space<vmem>>, vector<1x1x64xf32>,
    return
  }
  func.func @transform_0(%arg0: i32, %arg1: i32) -> (i32, i32, i32) {
    %c0_i32 = arith.constant 0 : i32
    %c0_i32_0 = arith.constant 0 : i32
    return %arg0, %c0_i32, %arg1 : i32, i32, i32
  }
  func.func @transform_1(%arg0: i32, %arg1: i32) -> (i32, i32) {
    %c0_i32 = arith.constant 0 : i32
    %c0_i32_0 = arith.constant 0 : i32
    %c0_i32_1 = arith.constant 0 : i32
    return %c0_i32, %c0_i32_0 : i32, i32
  }
  func.func @transform_2(%arg0: i32, %arg1: i32) -> (i32, i32) {
    %c0_i32 = arith.constant 0 : i32
    %c0_i32_0 = arith.constant 0 : i32
    %c0_i32_1 = arith.constant 0 : i32
    return %c0_i32, %c0_i32_0 : i32, i32
  }
  func.func @transform_3(%arg0: i32, %arg1: i32) -> (i32, i32) {
    %c0_i32 = arith.constant 0 : i32
    %c0_i32_0 = arith.constant 0 : i32
    %c0_i32_1 = arith.constant 0 : i32
    return %c0_i32, %c0_i32_0 : i32, i32
  }
  func.func @transform_4(%arg0: i32, %arg1: i32) -> (i32, i32) {
    %c0_i32 = arith.constant 0 : i32
    %c0_i32_0 = arith.constant 0 : i32
    %c0_i32_1 = arith.constant 0 : i32
    return %c0_i32, %c0_i32_0 : i32, i32
  }
  func.func @transform_5(%arg0: i32, %arg1: i32) -> (i32, i32) {
    %c0_i32 = arith.constant 0 : i32
    %c0_i32_0 = arith.constant 0 : i32
    %c0_i32_1 = arith.constant 0 : i32
    return %c0_i32, %c0_i32_0 : i32, i32
  }
  func.func @transform_6(%arg0: i32, %arg1: i32) -> (i32, i32) {
    %c0_i32 = arith.constant 0 : i32
    %c0_i32_0 = arith.constant 0 : i32
    %c0_i32_1 = arith.constant 0 : i32
    return %c0_i32, %c0_i32_0 : i32, i32
  }
  func.func @transform_7(%arg0: i32, %arg1: i32) -> (i32, i32) {
    %c0_i32 = arith.constant 0 : i32
    %c0_i32_0 = arith.constant 0 : i32
    %c0_i32_1 = arith.constant 0 : i32
    return %c0_i32, %c0_i32_0 : i32, i32
  }
  func.func @transform_8(%arg0: i32, %arg1: i32) -> (i32, i32) {
    %c0_i32 = arith.constant 0 : i32
    %c0_i32_0 = arith.constant 0 : i32
    %c0_i32_1 = arith.constant 0 : i32
    return %c0_i32, %c0_i32_0 : i32, i32
  }
  func.func @transform_9(%arg0: i32, %arg1: i32) -> (i32, i32) {
    %c0_i32 = arith.constant 0 : i32
    %c0_i32_0 = arith.constant 0 : i32
    %c0_i32_1 = arith.constant 0 : i32
    return %c0_i32, %c0_i32_0 : i32, i32
  }
  func.func @transform_10(%arg0: i32, %arg1: i32) -> (i32, i32) {
    %c0_i32 = arith.constant 0 : i32
    %c0_i32_0 = arith.constant 0 : i32
    %c0_i32_1 = arith.constant 0 : i32
    return %c0_i32, %c0_i32_0 : i32, i32
  }
  func.func @transform_11(%arg0: i32, %arg1: i32) -> (i32, i32, i32) {
    %c0_i32 = arith.constant 0 : i32
    %c0_i32_0 = arith.constant 0 : i32
    return %arg0, %c0_i32, %arg1 : i32, i32, i32
  }
}

</mosaic_0001>

<bundles_post_ra>
// kernel: final_forward.1
= control target key start
LH: loop header
LB: loop body
LE: loop exit
PB: predicated region body
PF: predicated region fallthrough
CT: control target
= control target key end

     0   :  { %s7868_s19 = smov 0   ;;  %s7870_s20 = smov 0   ;;  %s10432_s0 = inlined_call_operand.vmem [shape: f32[2,1040,64], index: 0, kind: input, shape index: {}]   ;;  %s10433_s1 = inlined_call_operand.vmem [shape: bf16[512,1040], index: 1, kind: input, shape index: {}]   ;;  %s10434_s2 = inlined_call_operand.vmem [shape: f32[512,1], index: 2, kind: input, shape index: {}]   ;;  %s10435_s3 = inlined_call_operand.vmem [shape: bf16[256,512], index: 3, kind: input, shape index: {}]   ;;  %s10436_s4 = inlined_call_operand.vmem [shape: f32[256,1], index: 4, kind: input, shape index: {}]   ;;  %s10437_s5 = inlined_call_operand.vmem [shape: bf16[128,256], index: 5, kind: input, shape index: {}]   ;;  %s10438_s6 = inlined_call_operand.vmem [shape: f32[128,1], index: 6, kind: input, shape index: {}]   ;;  %s10439_s7 = inlined_call_operand.vmem [shape: bf16[64,128], index: 7, kind: input, shape index: {}]   ;;  %s10440_s8 = inlined_call_operand.vmem [shape: f32[64,1], index: 8, kind: input, shape index: {}]   ;;  %s10441_s9 = inlined_call_operand.vmem [shape: bf16[1,64], index: 9, kind: input, shape index: {}]   ;;  %s10442_s10 = inlined_call_operand.<no memory space> [shape: f32[1,1], index: 10, kind: input, shape index: {}]   ;;  %s10443_s11 = inlined_call_operand.vmem [shape: f32[2,1,64], index: 11, kind: output, shape index: {}]  }
   0x1   :  { %v16_v0 = vstv %s10442_s10  ;;  %s7872_s21 = smov 0  }
   0x2   :  { %17 = vst [vmem:[#allocation2] sm:$0x1] %v16_v0 }
   0x3 LB: > { %s35_s10 = sadd.s32 1, %s7796_s20  ;;  %p5943_p0 = scmp.ge.s32.totalorder %s7800_s21, 1  ;;  %s7800_s21 = sphi %s7872_s21, %s23_s21   ;;  %s7796_s20 = sphi %s7870_s20, %s10581_s20   ;;  %s7792_s19 = sphi %s7868_s19, %s10580_s19  }
   0x4   : > { %p37_p1 = scmp.ge.s32.totalorder %s35_s10, 2  ;;  %p358_p2 = scmp.lt.s32.totalorder %s7800_s21, 3 }
   0x6   : > { %s10583_s10 = smov (%p37_p1, %s35_s10), 0  ;;  %p359_p3 = pnand %p5943_p0, %p358_p2 }
   0x8   : > { %362 = sbr.rel (%p359_p3) target bundleno = 2140 (0x85c), region = 64 }
   0xf   : > { %p402_p4 = scmp.lt.s32.totalorder %s7792_s19, 1  ;;  %v7802_v1 = vmov 0   ;;  %v7240_v2 = vld [vmem:[%s10433_s1 + $0xc] ss:$36 sps:$4 sm:$0xff]   ;;  %v7241_v54 = vld [vmem:[%s10433_s1 + $0x54] ss:$36 sps:$4 sm:$0xff]  }
  0x10   : > { %3142 = vmatprep.subr.bf16.mxu0 %v7802_v1  ;;  %2853 = vmatprep.subr.bf16.mxu1 %v7802_v1  ;;  %v7238_v53 = vld [vmem:[%s10433_s1 + $0x8] ss:$36 sps:$4 sm:$0xff]   ;;  %v7243_v61 = vld [vmem:[%s10433_s1 + $0x50] ss:$36 sps:$4 sm:$0xff]   ;;  %v7244_v62 = vld [vmem:[%s10433_s1 + $0x9c] ss:$36 sps:$4 sm:$0xff]  }
  0x11   : > { %s10585_s19 = smov (!%p402_p4, %s7792_s19), 1  ;;  %7237 = vset.pattern.permute.xlu1 %v7802_v1  ;;  %7236 = vset.pattern.permute.xlu0 %v7802_v1  ;;  %vm2756_vm0 = vcmask 130048   ;;  %vm7804_vm1 = vmmov 0   ;;  %vm5821_vm2 = vcmask 523264   ;;  %vm5866_vm3 = vcmask 516096  }
  0x12   : > { %3174 = vmatprep.mubr.bf16.mxu0 %v7240_v2  ;;  %s7208_s24 = smul.u32 1040, %s10585_s19  ;;  %s415_s14 = scalar_lea.vmem %s10443_s11, %s10585_s19 }
  0x14   : > { %s7899_s27 = scalar_lea.vmem %s10432_s0, %s7208_s24 }
  0x15   : > { %v449_v3 = vld [vmem:[%s7899_s27 + $0x100] sm:$0xff]  ;;  %v450_v4 = vld [vmem:[%s7899_s27 + $0x108] sm:$0xff]  ;;  %v451_v5 = vld [vmem:[%s7899_s27 + $0x110] sm:$0xff] }
  0x16   : > { %v7904_v6 = vpack.c.bf16 %v450_v4, %v449_v3  ;;  %v452_v7 = vld [vmem:[%s7899_s27 + $0x118] sm:$0xff]  ;;  %v453_v9 = vld [vmem:[%s7899_s27 + $0x120] sm:$0xff]  ;;  %v454_v10 = vld [vmem:[%s7899_s27 + $0x128] sm:$0xff] }
  0x17   : > { %v7908_v8 = vpack.c.bf16 %v452_v7, %v451_v5  ;;  %v7914_v11 = vpack.c.bf16 %v454_v10, %v453_v9  ;;  %v455_v12 = vld [vmem:[%s7899_s27 + $0x130] sm:$0xff]  ;;  %v456_v13 = vld [vmem:[%s7899_s27 + $0x138] sm:$0xff]  ;;  %v457_v15 = vld [vmem:[%s7899_s27 + $0x140] sm:$0xff] }
  0x18   : > { %3143 = vmatpush1.bf16.msra.mxu0 %v7904_v6  ;;  %v7920_v14 = vpack.c.bf16 %v456_v13, %v455_v12  ;;  %v458_v16 = vld [vmem:[%s7899_s27 + $0x148] sm:$0xff]  ;;  %v459_v18 = vld [vmem:[%s7899_s27 + $0x150] sm:$0xff]  ;;  %v460_v19 = vld [vmem:[%s7899_s27 + $0x158] sm:$0xff] }
  0x19   : > { %3144 = vmatprep.subr.bf16.mxu0 %v7802_v1  ;;  %v7926_v17 = vpack.c.bf16 %v458_v16, %v457_v15  ;;  %v7932_v20 = vpack.c.bf16 %v460_v19, %v459_v18  ;;  %v461_v21 = vld [vmem:[%s7899_s27 + $0x160] sm:$0xff]  ;;  %v462_v22 = vld [vmem:[%s7899_s27 + $0x168] sm:$0xff]  ;;  %v463_v23 = vld [vmem:[%s7899_s27 + $0x170] sm:$0xff] }
  0x1a   : > { %v464_v24 = vld [vmem:[%s7899_s27 + $0x178] sm:$0xff]  ;;  %v7940_v25 = vpack.c.bf16 %v462_v22, %v461_v21  ;;  %v465_v26 = vld [vmem:[%s7899_s27 + $0x180] sm:$0xff]  ;;  %v466_v28 = vld [vmem:[%s7899_s27 + $0x188] sm:$0xff] }
  0x1b   : > { %v7945_v27 = vpack.c.bf16 %v464_v24, %v463_v23  ;;  %v467_v29 = vld [vmem:[%s7899_s27 + $0x190] sm:$0xff]  ;;  %v468_v30 = vld [vmem:[%s7899_s27 + $0x198] sm:$0xff]  ;;  %v7952_v31 = vpack.c.bf16 %v466_v28, %v465_v26  ;;  %v469_v32 = vld [vmem:[%s7899_s27 + $0x1a0] sm:$0xff] }
  0x1c   : > { %3145 = vmatpush1.bf16.msra.mxu0 %v7908_v8  ;;  %v7957_v33 = vpack.c.bf16 %v468_v30, %v467_v29  ;;  %v470_v34 = vld [vmem:[%s7899_s27 + $0x1a8] sm:$0xff]  ;;  %v471_v35 = vld [vmem:[%s7899_s27 + $0x1b0] sm:$0xff]  ;;  %v472_v36 = vld [vmem:[%s7899_s27 + $0x1b8] sm:$0xff] }
  0x1d   : > { %3146 = vmatprep.subr.bf16.mxu0 %v7802_v1  ;;  %v7964_v37 = vpack.c.bf16 %v470_v34, %v469_v32  ;;  %v473_v38 = vld [vmem:[%s7899_s27 + $0x1c0] sm:$0xff]  ;;  %v7969_v39 = vpack.c.bf16 %v472_v36, %v471_v35  ;;  %v474_v40 = vld [vmem:[%s7899_s27 + $0x1c8] sm:$0xff]  ;;  %v475_v41 = vld [vmem:[%s7899_s27 + $0x1d0] sm:$0xff] }
  0x1e   : > { %v476_v42 = vld [vmem:[%s7899_s27 + $0x1d8] sm:$0xff]  ;;  %v7976_v43 = vpack.c.bf16 %v474_v40, %v473_v38  ;;  %v477_v44 = vld [vmem:[%s7899_s27 + $0x1e0] sm:$0xff]  ;;  %v478_v46 = vld [vmem:[%s7899_s27 + $0x1e8] sm:$0xff] }
  0x1f   : > { %v7981_v45 = vpack.c.bf16 %v476_v42, %v475_v41  ;;  %v479_v47 = vld [vmem:[%s7899_s27 + $0x1f0] sm:$0xff]  ;;  %v480_v48 = vld [vmem:[%s7899_s27 + $0x1f8] sm:$0xff]  ;;  %v7988_v49 = vpack.c.bf16 %v478_v46, %v477_v44  ;;  %v481_v50 = vld [vmem:[%s7899_s27 + $0x200] sm:$0xff] }
  0x20   : > { %3147 = vmatpush1.bf16.msra.mxu0 %v7914_v11  ;;  %v7993_v51 = vpack.c.bf16 %v480_v48, %v479_v47  ;;  %v482_v52 = vld [vmem:[%s7899_s27 + $0x208] sm:$0xff]  ;;  %v483_v55 = vld [vmem:[%s7899_s27 + $0x210] sm:$0xff]  ;;  %v484_v56 = vld [vmem:[%s7899_s27 + $0x218] sm:$0xff] }
  0x21   : > { %3148 = vmatprep.subr.bf16.mxu0 %v7802_v1  ;;  %v579_v57 = vpack.c.bf16 %v482_v52, %v481_v50  ;;  %v485_v58 = vld [vmem:[%s7899_s27 + $0x220] sm:$0xff]  ;;  %v580_v59 = vpack.c.bf16 %v484_v56, %v483_v55  ;;  %v486_v60 = vld [vmem:[%s7899_s27 + $0x228] sm:$0xff]  ;;  %v487_v63 = vld [vmem:[%s7899_s27 + $0x230] sm:$0xff] }
  0x22   : > { %v488_v0 = vld [vmem:[%s7899_s27 + $0x238] sm:$0xff]  ;;  %v581_v2 = vpack.c.bf16 %v486_v60, %v485_v58  ;;  %v489_v3 = vld [vmem:[%s7899_s27 + $0x240] sm:$0xff]  ;;  %v490_v5 = vld [vmem:[%s7899_s27 + $0x248] sm:$0xff] }
  0x23   : > { %v582_v4 = vpack.c.bf16 %v488_v0, %v487_v63  ;;  %v7246_v7 = vld [vmem:[%s10433_s1 + $0x98] ss:$36 sps:$4 sm:$0xff]   ;;  %v7247_v9 = vld [vmem:[%s10433_s1 + $0xe4] ss:$36 sps:$4 sm:$0xff]   ;;  %v583_v10 = vpack.c.bf16 %v490_v5, %v489_v3  ;;  %v491_v12 = vld [vmem:[%s7899_s27 + $0x250] sm:$0xff] }
  0x24   : > { %3149 = vmatpush1.bf16.msra.mxu0 %v7920_v14  ;;  %v492_v13 = vld [vmem:[%s7899_s27 + $0x258] sm:$0xff]  ;;  %v7249_v16 = vld [vmem:[%s10433_s1 + $0xe0] ss:$36 sps:$4 sm:$0xff]   ;;  %v7250_v18 = vld [vmem:[%s10433_s1 + $0x12c] ss:$36 sps:$4 sm:$0xff]  }
  0x25   : > { %3150 = vmatprep.subr.bf16.mxu0 %v7802_v1  ;;  %v584_v15 = vpack.c.bf16 %v492_v13, %v491_v12  ;;  %v493_v19 = vld [vmem:[%s7899_s27 + $0x260] sm:$0xff]  ;;  %v494_v21 = vld [vmem:[%s7899_s27 + $0x268] sm:$0xff]  ;;  %v7253_v24 = vld [vmem:[%s10433_s1 + $0x174] ss:$36 sps:$4 sm:$0xff]  }
  0x26   : > { %v7252_v22 = vld [vmem:[%s10433_s1 + $0x128] ss:$36 sps:$4 sm:$0xff]   ;;  %v585_v23 = vpack.c.bf16 %v494_v21, %v493_v19  ;;  %v417_v26 = vld [vmem:[%s7899_s27] sm:$0xff]  ;;  %v419_v30 = vld [vmem:[%s7899_s27 + $0x10] sm:$0xff] }
  0x27   : > { %v418_v28 = vld [vmem:[%s7899_s27 + $0x8] sm:$0xff]  ;;  %v420_v32 = vld [vmem:[%s7899_s27 + $0x18] sm:$0xff]  ;;  %v7255_v34 = vld [vmem:[%s10433_s1 + $0x170] ss:$36 sps:$4 sm:$0xff]  }
  0x28   : > { %3151 = vmatpush1.bf16.msra.mxu0 %v7926_v17  ;;  %v547_v29 = vpack.c.bf16 %v418_v28, %v417_v26  ;;  %v548_v35 = vpack.c.bf16 %v420_v32, %v419_v30  ;;  %v7256_v36 = vld [vmem:[%s10433_s1 + $0x1bc] ss:$36 sps:$4 sm:$0xff]   ;;  %v422_v40 = vld [vmem:[%s7899_s27 + $0x28] sm:$0xff]  ;;  %v423_v42 = vld [vmem:[%s7899_s27 + $0x30] sm:$0xff] }
  0x29   : > { %3152 = vmatprep.subr.bf16.mxu0 %v7802_v1  ;;  %v421_v38 = vld [vmem:[%s7899_s27 + $0x20] sm:$0xff]  ;;  %v424_v44 = vld [vmem:[%s7899_s27 + $0x38] sm:$0xff]  ;;  %v495_v46 = vld [vmem:[%s7899_s27 + $0x270] sm:$0xff] }
  0x2a   : > { %2854 = vmatpush1.bf16.msra.mxu1 %v547_v29  ;;  %v549_v41 = vpack.c.bf16 %v422_v40, %v421_v38  ;;  %v496_v47 = vld [vmem:[%s7899_s27 + $0x278] sm:$0xff]  ;;  %v550_v50 = vpack.c.bf16 %v424_v44, %v423_v42  ;;  %v426_v55 = vld [vmem:[%s7899_s27 + $0x48] sm:$0xff]  ;;  %v433_v13 = vld [vmem:[%s7899_s27 + $0x80] sm:$0xff] }
  0x2b   : > { %2855 = vmatprep.subr.bf16.mxu1 %v7802_v1  ;;  %v7258_v48 = vld [vmem:[%s10433_s1 + $0x1b8] ss:$36 sps:$4 sm:$0xff]   ;;  %v586_v52 = vpack.c.bf16 %v496_v47, %v495_v46  ;;  %v430_v63 = vld [vmem:[%s7899_s27 + $0x68] sm:$0xff]  ;;  %v7267_v21 = vld [vmem:[%s10433_s1 + $0x290] ss:$36 sps:$4 sm:$0xff]  }
  0x2c   : > { %3153 = vmatpush1.bf16.msra.mxu0 %v7932_v20  ;;  %v428_v58 = vld [vmem:[%s7899_s27 + $0x58] sm:$0xff]  ;;  %v498_v3 = vld [vmem:[%s7899_s27 + $0x288] sm:$0xff]  ;;  %v499_v29 = vld [vmem:[%s7899_s27 + $0x290] sm:$0xff] }
  0x2d   : > { %3154 = vmatprep.subr.bf16.mxu0 %v7802_v1  ;;  %v7265_v12 = vld [vmem:[%s10433_s1 + $0x294] ss:$36 sps:$4 sm:$0xff]   ;;  %v438_v26 = vld [vmem:[%s7899_s27 + $0xa8] sm:$0xff] }
  0x2e   : > { %2856 = vmatpush1.bf16.msra.mxu1 %v548_v35  ;;  %v436_v19 = vld [vmem:[%s7899_s27 + $0x98] sm:$0xff]  ;;  %v439_v32 = vld [vmem:[%s7899_s27 + $0xb0] sm:$0xff]  ;;  %v7271_v40 = vld [vmem:[%s10433_s1 + $0x324] ss:$36 sps:$4 sm:$0xff]  }
  0x2f   : > { %2857 = vmatprep.subr.bf16.mxu1 %v7802_v1  ;;  %v500_v30 = vld [vmem:[%s7899_s27 + $0x298] sm:$0xff]  ;;  %v442_v42 = vld [vmem:[%s7899_s27 + $0xc8] sm:$0xff]  ;;  %v443_v46 = vld [vmem:[%s7899_s27 + $0xd0] sm:$0xff] }
  0x30   : > { %3155 = vmatpush1.bf16.msra.mxu0 %v7940_v25  ;;  %v440_v35 = vld [vmem:[%s7899_s27 + $0xb8] sm:$0xff] }
  0x31   : > { %3156 = vmatprep.subr.bf16.mxu0 %v7802_v1  ;;  %v558_v38 = vpack.c.bf16 %v440_v35, %v439_v32  ;;  %v444_v47 = vld [vmem:[%s7899_s27 + $0xd8] sm:$0xff]  ;;  %v7339_v32 = vld [vmem:[%s10433_s1 + $0x90] ss:$36 sps:$4 sm:$0xff]  }
  0x32   : > { %2858 = vmatpush1.bf16.msra.mxu1 %v549_v41  ;;  %v441_v41 = vld [vmem:[%s7899_s27 + $0xc0] sm:$0xff]  ;;  %v7345_v35 = vld [vmem:[%s10433_s1 + $0xd8] ss:$36 sps:$4 sm:$0xff]  }
  0x33   : > { %2859 = vmatprep.subr.bf16.mxu1 %v7802_v1  ;;  %v559_v44 = vpack.c.bf16 %v442_v42, %v441_v41  ;;  %v7357_v41 = vld [vmem:[%s10433_s1 + $0x168] ss:$36 sps:$4 sm:$0xff]  }
  0x34   : > { %3157 = vmatpush1.bf16.msra.mxu0 %v7945_v27  ;;  %v7295_v42 = vld [vmem:[%s10433_s1 + $0x564] ss:$36 sps:$4 sm:$0xff]  }
  0x35   : > { %3158 = vmatprep.subr.bf16.mxu0 %v7802_v1 }
  0x36   : > { %2860 = vmatpush1.bf16.msra.mxu1 %v550_v50  ;;  %v560_v50 = vpack.c.bf16 %v444_v47, %v443_v46  ;;  %v7298_v46 = vld [vmem:[%s10433_s1 + $0x5ac] ss:$36 sps:$4 sm:$0xff]   ;;  %v7369_v47 = vld [vmem:[%s10433_s1 + $0x1f8] ss:$36 sps:$4 sm:$0xff]  }
  0x37   : > { %2861 = vmatprep.subr.bf16.mxu1 %v7802_v1 }
  0x38   : > { %3159 = vmatpush1.bf16.msra.mxu0 %v7952_v31 }
  0x39   : > { %3160 = vmatprep.subr.bf16.mxu0 %v7802_v1 }
  0x3c   : > { %3161 = vmatpush1.bf16.msra.mxu0 %v7957_v33 }
  0x3d   : > { %3162 = vmatprep.subr.bf16.mxu0 %v7802_v1 }
  0x40   : > { %3163 = vmatpush1.bf16.msra.mxu0 %v7964_v37 }
  0x41   : > { %3164 = vmatprep.subr.bf16.mxu0 %v7802_v1 }
  0x44   : > { %3165 = vmatpush1.bf16.msra.mxu0 %v7969_v39 }
  0x45   : > { %3166 = vmatprep.subr.bf16.mxu0 %v7802_v1 }
  0x48   : > { %3167 = vmatpush1.bf16.msra.mxu0 %v7976_v43 }
  0x49   : > { %3168 = vmatprep.subr.bf16.mxu0 %v7802_v1 }
  0x4c   : > { %3169 = vmatpush1.bf16.msra.mxu0 %v7981_v45 }
  0x4d   : > { %3170 = vmatprep.subr.bf16.mxu0 %v7802_v1 }
  0x50   : > { %3171 = vmatpush1.bf16.msra.mxu0 %v7988_v49 }
  0x51   : > { %3172 = vmatprep.subr.bf16.mxu0 %v7802_v1 }
  0x54   : > { %3173 = vmatpush1.bf16.msra.mxu0 %v7993_v51 }
  0x55   : > { %3431 = vmatprep.subr.bf16.mxu0 %v7802_v1 }
  0x57   : > { %3175 = vmatmul.mubr.bf16.vlgmr.msra.gmra.mrb[0].mxu0 %v7238_v53  ;;  %v7259_v53 = vld [vmem:[%s10433_s1 + $0x204] ss:$36 sps:$4 sm:$0xff]  }
  0x58   : > { %3182 = vmatprep.mubr.bf16.mxu0 %v7241_v54  ;;  %3432 = vmatpush1.bf16.msra.mxu0 %v579_v57  ;;  %v425_v54 = vld [vmem:[%s7899_s27 + $0x40] sm:$0xff]  ;;  %v427_v57 = vld [vmem:[%s7899_s27 + $0x50] sm:$0xff] }
  0x59   : > { %3433 = vmatprep.subr.bf16.mxu0 %v7802_v1  ;;  %v551_v56 = vpack.c.bf16 %v426_v55, %v425_v54  ;;  %v552_v60 = vpack.c.bf16 %v428_v58, %v427_v57  ;;  %v502_v54 = vld [vmem:[%s7899_s27 + $0x2a8] sm:$0xff] }
  0x5a   : > { %v446_v57 = vld [vmem:[%s7899_s27 + $0xe8] sm:$0xff] }
  0x5b   : > { %2862 = vmatpush1.bf16.msra.mxu1 %v551_v56  ;;  %v445_v56 = vld [vmem:[%s7899_s27 + $0xe0] sm:$0xff] }
  0x5c   : > { %3434 = vmatpush1.bf16.msra.mxu0 %v580_v59  ;;  %v7261_v59 = vld [vmem:[%s10433_s1 + $0x200] ss:$36 sps:$4 sm:$0xff]   ;;  %2863 = vmatprep.subr.bf16.mxu1 %v7802_v1  ;;  %v561_v58 = vpack.c.bf16 %v446_v57, %v445_v56  ;;  %v7387_v57 = vld [vmem:[%s10433_s1 + $0x2d0] ss:$36 sps:$4 sm:$0xff]  }
  0x5d   : > { %3435 = vmatprep.subr.bf16.mxu0 %v7802_v1  ;;  %v7307_v56 = vld [vmem:[%s10433_s1 + $0x684] ss:$36 sps:$4 sm:$0xff]  }
  0x5f   : > { %3183 = vmatmul.mubr.bf16.gmra.mrb[4].mxu0 %v7243_v61  ;;  %v7262_v61 = vld [vmem:[%s10433_s1 + $0x24c] ss:$36 sps:$4 sm:$0xff]   ;;  %2864 = vmatpush1.bf16.msra.mxu1 %v552_v60  ;;  %v504_v60 = vld [vmem:[%s7899_s27 + $0x2b8] sm:$0xff] }
  0x60   : > { %3190 = vmatprep.mubr.bf16.mxu0 %v7244_v62  ;;  %3436 = vmatpush1.bf16.msra.mxu0 %v581_v2  ;;  %v429_v62 = vld [vmem:[%s7899_s27 + $0x60] sm:$0xff] }
  0x61   : > { %3437 = vmatprep.subr.bf16.mxu0 %v7802_v1  ;;  %2865 = vmatprep.subr.bf16.mxu1 %v7802_v1  ;;  %v553_v0 = vpack.c.bf16 %v430_v63, %v429_v62  ;;  %v497_v2 = vld [vmem:[%s7899_s27 + $0x280] sm:$0xff]  ;;  %v448_v63 = vld [vmem:[%s7899_s27 + $0xf8] sm:$0xff] }
  0x62   : > { %v587_v5 = vpack.c.bf16 %v498_v3, %v497_v2  ;;  %v7326_v3 = vld [vmem:[%s10433_s1 + $0x4] ss:$36 sps:$4 sm:$0xff]  }
  0x63   : > { %2866 = vmatpush1.bf16.msra.mxu1 %v553_v0  ;;  %v7276_v0 = vld [vmem:[%s10433_s1 + $0x368] ss:$36 sps:$4 sm:$0xff]   ;;  %2885 = vmatprep.mubr.bf16.mxu1 %v7326_v3 }
  0x64   : > { %3438 = vmatpush1.bf16.msra.mxu0 %v582_v4  ;;  %v431_v4 = vld [vmem:[%s7899_s27 + $0x70] sm:$0xff]  ;;  %2867 = vmatprep.subr.bf16.mxu1 %v7802_v1 }
  0x65   : > { %3439 = vmatprep.subr.bf16.mxu0 %v7802_v1  ;;  %v7402_v3 = vld [vmem:[%s10433_s1 + $0x3ac] ss:$36 sps:$4 sm:$0xff]  }
  0x67   : > { %3191 = vmatmul.mubr.bf16.gmra.mrb[8].mxu0 %v7246_v7  ;;  %v432_v7 = vld [vmem:[%s7899_s27 + $0x78] sm:$0xff] }
  0x68   : > { %3198 = vmatprep.mubr.bf16.mxu0 %v7247_v9  ;;  %3440 = vmatpush1.bf16.msra.mxu0 %v583_v10  ;;  %v7264_v9 = vld [vmem:[%s10433_s1 + $0x248] ss:$36 sps:$4 sm:$0xff]   ;;  %v554_v10 = vpack.c.bf16 %v432_v7, %v431_v4  ;;  %v7277_v4 = vld [vmem:[%s10433_s1 + $0x3b4] ss:$36 sps:$4 sm:$0xff]   ;;  %v505_v7 = vld [vmem:[%s7899_s27 + $0x2c0] sm:$0xff] }
  0x69   : > { %3441 = vmatprep.subr.bf16.mxu0 %v7802_v1 }
  0x6a   : > { %2868 = vmatpush1.bf16.msra.mxu1 %v554_v10 }
  0x6b   : > { %2869 = vmatprep.subr.bf16.mxu1 %v7802_v1 }
  0x6c   : > { %3442 = vmatpush1.bf16.msra.mxu0 %v584_v15  ;;  %v434_v15 = vld [vmem:[%s7899_s27 + $0x88] sm:$0xff] }
  0x6d   : > { %3443 = vmatprep.subr.bf16.mxu0 %v7802_v1 }
  0x6f   : > { %3199 = vmatmul.mubr.bf16.gmra.mrb[12].mxu0 %v7249_v16  ;;  %v555_v16 = vpack.c.bf16 %v434_v15, %v433_v13  ;;  %v508_v13 = vld [vmem:[%s7899_s27 + $0x2d8] sm:$0xff]  ;;  %v7330_v15 = vld [vmem:[%s10433_s1 + $0x4c] ss:$36 sps:$4 sm:$0xff]  }
  0x70   : > { %3206 = vmatprep.mubr.bf16.mxu0 %v7250_v18  ;;  %3444 = vmatpush1.bf16.msra.mxu0 %v585_v23  ;;  %v435_v18 = vld [vmem:[%s7899_s27 + $0x90] sm:$0xff]  ;;  %v7268_v23 = vld [vmem:[%s10433_s1 + $0x2dc] ss:$36 sps:$4 sm:$0xff]  }
  0x71   : > { %3445 = vmatprep.subr.bf16.mxu0 %v7802_v1  ;;  %2870 = vmatpush1.bf16.msra.mxu1 %v555_v16  ;;  %v7279_v16 = vld [vmem:[%s10433_s1 + $0x3b0] ss:$36 sps:$4 sm:$0xff]  }
  0x72   : > { %2871 = vmatprep.subr.bf16.mxu1 %v7802_v1 }
  0x74   : > { %3446 = vmatpush1.bf16.msra.mxu0 %v586_v52  ;;  %v7274_v52 = vld [vmem:[%s10433_s1 + $0x36c] ss:$36 sps:$4 sm:$0xff]  }
  0x75   : > { %3447 = vmatprep.subr.bf16.mxu0 %v7802_v1 }
  0x77   : > { %3207 = vmatmul.mubr.bf16.gmra.mrb[16].mxu0 %v7252_v22  ;;  %v556_v22 = vpack.c.bf16 %v436_v19, %v435_v18  ;;  %v7280_v19 = vld [vmem:[%s10433_s1 + $0x3fc] ss:$36 sps:$4 sm:$0xff]  }
  0x78   : > { %3214 = vmatprep.mubr.bf16.mxu0 %v7253_v24  ;;  %3448 = vmatpush1.bf16.msra.mxu0 %v587_v5  ;;  %v437_v24 = vld [vmem:[%s7899_s27 + $0xa0] sm:$0xff] }
  0x79   : > { %3449 = vmatprep.subr.bf16.mxu0 %v7802_v1  ;;  %2872 = vmatpush1.bf16.msra.mxu1 %v556_v22  ;;  %v557_v28 = vpack.c.bf16 %v438_v26, %v437_v24  ;;  %v7324_v5 = vld [vmem:[%s10433_s1] ss:$36 sps:$4 sm:$0xff]   ;;  %v510_v22 = vld [vmem:[%s7899_s27 + $0x2e8] sm:$0xff]  ;;  %v511_v24 = vld [vmem:[%s7899_s27 + $0x2f0] sm:$0xff] }
  0x7a   : > { %2873 = vmatprep.subr.bf16.mxu1 %v7802_v1  ;;  %v512_v26 = vld [vmem:[%s7899_s27 + $0x2f8] sm:$0xff] }
  0x7d   : > { %2874 = vmatpush1.bf16.msra.mxu1 %v557_v28  ;;  %v7337_v28 = vld [vmem:[%s10433_s1 + $0x94] ss:$36 sps:$4 sm:$0xff]  }
  0x7e   : > { %2875 = vmatprep.subr.bf16.mxu1 %v7802_v1 }
  0x7f   : > { %3215 = vmatmul.mubr.bf16.gmra.mrb[20].mxu0 %v7255_v34  ;;  %v588_v34 = vpack.c.bf16 %v500_v30, %v499_v29  ;;  %v594_v29 = vpack.c.bf16 %v512_v26, %v511_v24  ;;  %v7283_v30 = vld [vmem:[%s10433_s1 + $0x444] ss:$36 sps:$4 sm:$0xff]   ;;  %v950_v24 = vld [vmem:[%s10434_s2 + $0x90] sm:$0xff]  ;;  %v951_v26 = vld [vmem:[%s10434_s2 + $0x98] sm:$0xff] }
  0x80   : > { %3222 = vmatprep.mubr.bf16.mxu0 %v7256_v36  ;;  %v7270_v36 = vld [vmem:[%s10433_s1 + $0x2d8] ss:$36 sps:$4 sm:$0xff]  }
  0x81   : > { %3450 = vmatpush1.bf16.msra.mxu0 %v588_v34  ;;  %2876 = vmatpush1.bf16.msra.mxu1 %v558_v38  ;;  %v7285_v34 = vld [vmem:[%s10433_s1 + $0x440] ss:$36 sps:$4 sm:$0xff]  }
  0x82   : > { %3451 = vmatprep.subr.bf16.mxu0 %v7802_v1  ;;  %2877 = vmatprep.subr.bf16.mxu1 %v7802_v1  ;;  %v7351_v38 = vld [vmem:[%s10433_s1 + $0x120] ss:$36 sps:$4 sm:$0xff]  }
  0x85   : > { %2878 = vmatpush1.bf16.msra.mxu1 %v559_v44  ;;  %v7363_v44 = vld [vmem:[%s10433_s1 + $0x1b0] ss:$36 sps:$4 sm:$0xff]  }
  0x86   : > { %2879 = vmatprep.subr.bf16.mxu1 %v7802_v1 }
  0x87   : > { %3223 = vmatmul.mubr.bf16.gmra.mrb[24].mxu0 %v7258_v48  ;;  %v7273_v48 = vld [vmem:[%s10433_s1 + $0x320] ss:$36 sps:$4 sm:$0xff]  }
  0x88   : > { %3230 = vmatprep.mubr.bf16.mxu0 %v7259_v53  ;;  %v501_v53 = vld [vmem:[%s7899_s27 + $0x2a0] sm:$0xff] }
  0x89   : > { %2880 = vmatpush1.bf16.msra.mxu1 %v560_v50  ;;  %v589_v55 = vpack.c.bf16 %v502_v54, %v501_v53  ;;  %v7375_v50 = vld [vmem:[%s10433_s1 + $0x240] ss:$36 sps:$4 sm:$0xff]   ;;  %v7381_v53 = vld [vmem:[%s10433_s1 + $0x288] ss:$36 sps:$4 sm:$0xff]   ;;  %v7384_v54 = vld [vmem:[%s10433_s1 + $0x2d4] ss:$36 sps:$4 sm:$0xff]  }
  0x8a   : > { %2881 = vmatprep.subr.bf16.mxu1 %v7802_v1 }
  0x8b   : > { %3452 = vmatpush1.bf16.msra.mxu0 %v589_v55  ;;  %v7306_v55 = vld [vmem:[%s10433_s1 + $0x638] ss:$36 sps:$4 sm:$0xff]  }
  0x8c   : > { %3453 = vmatprep.subr.bf16.mxu0 %v7802_v1 }
  0x8d   : > { %2882 = vmatpush1.bf16.msra.mxu1 %v561_v58  ;;  %v7390_v58 = vld [vmem:[%s10433_s1 + $0x31c] ss:$36 sps:$4 sm:$0xff]  }
  0x8e   : > { %2883 = vmatprep.subr.bf16.mxu1 %v7802_v1 }
  0x8f   : > { %3231 = vmatmul.mubr.bf16.gmra.mrb[28].mxu0 %v7261_v59  ;;  %v503_v59 = vld [vmem:[%s7899_s27 + $0x2b0] sm:$0xff] }
  0x90   : > { %3238 = vmatprep.mubr.bf16.mxu0 %v7262_v61  ;;  %v447_v61 = vld [vmem:[%s7899_s27 + $0xf0] sm:$0xff]  ;;  %v590_v62 = vpack.c.bf16 %v504_v60, %v503_v59  ;;  %v7309_v59 = vld [vmem:[%s10433_s1 + $0x680] ss:$36 sps:$4 sm:$0xff]  }
  0x91   : > { %v562_v2 = vpack.c.bf16 %v448_v63, %v447_v61  ;;  %v7310_v60 = vld [vmem:[%s10433_s1 + $0x6cc] ss:$36 sps:$4 sm:$0xff]   ;;  %v7393_v61 = vld [vmem:[%s10433_s1 + $0x318] ss:$36 sps:$4 sm:$0xff]  }
  0x92   : > { %3454 = vmatpush1.bf16.msra.mxu0 %v590_v62  ;;  %v7396_v62 = vld [vmem:[%s10433_s1 + $0x364] ss:$36 sps:$4 sm:$0xff]  }
  0x93   : > { %2884 = vmatpush1.bf16.msra.mxu1 %v562_v2  ;;  %3455 = vmatprep.subr.bf16.mxu0 %v7802_v1  ;;  %v7312_v63 = vld [vmem:[%s10433_s1 + $0x6c8] ss:$36 sps:$4 sm:$0xff]   ;;  %v7399_v2 = vld [vmem:[%s10433_s1 + $0x360] ss:$36 sps:$4 sm:$0xff]  }
  0x94   : > { %6792 = vmatprep.subr.bf16.mxu1 %v7802_v1 }
  0x96   : > { %2886 = vmatmul.mubr.bf16.vlgmr.msra.gmra.mrb[0].mxu1 %v7324_v5  ;;  %v7316_v5 = vld [vmem:[%s10433_s1 + $0x75c] ss:$36 sps:$4 sm:$0xff]  }
  0x97   : > { %3239 = vmatmul.mubr.bf16.gmra.mrb[32].mxu0 %v7264_v9  ;;  %v506_v9 = vld [vmem:[%s7899_s27 + $0x2c8] sm:$0xff]  ;;  %6808 = vmatpush1.bf16.msra.mxu1 %v7904_v6 }
  0x98   : > { %3246 = vmatprep.mubr.bf16.mxu0 %v7265_v12  ;;  %v591_v10 = vpack.c.bf16 %v506_v9, %v505_v7  ;;  %v507_v12 = vld [vmem:[%s7899_s27 + $0x2d0] sm:$0xff]  ;;  %2893 = vmatprep.mubr.bf16.mxu1 %v7330_v15  ;;  %v7333_v6 = vld [vmem:[%s10433_s1 + $0x48] ss:$36 sps:$4 sm:$0xff]   ;;  %v948_v15 = vld [vmem:[%s10434_s2 + $0x80] sm:$0xff] }
  0x99   : > { %v592_v18 = vpack.c.bf16 %v508_v13, %v507_v12  ;;  %6793 = vmatprep.subr.bf16.mxu1 %v7802_v1  ;;  %v7405_v7 = vld [vmem:[%s10433_s1 + $0x3a8] ss:$36 sps:$4 sm:$0xff]   ;;  %v7408_v9 = vld [vmem:[%s10433_s1 + $0x3f4] ss:$36 sps:$4 sm:$0xff]   ;;  %1078 = vperm.xlu0 %7236, %v948_v15   ;;  %v960_v15 = vld [vmem:[%s10434_s2 + $0xe0] sm:$0xff] }
  0x9a   : > { %3456 = vmatpush1.bf16.msra.mxu0 %v591_v10  ;;  %v7318_v10 = vld [vmem:[%s10433_s1 + $0x758] ss:$36 sps:$4 sm:$0xff]   ;;  %v7319_v12 = vld [vmem:[%s10433_s1 + $0x7a4] ss:$36 sps:$4 sm:$0xff]   ;;  %v7411_v13 = vld [vmem:[%s10433_s1 + $0x3f0] ss:$36 sps:$4 sm:$0xff]  }
  0x9b   : > { %3457 = vmatprep.subr.bf16.mxu0 %v7802_v1  ;;  %6809 = vmatpush1.bf16.msra.mxu1 %v7908_v8  ;;  %v7282_v8 = vld [vmem:[%s10433_s1 + $0x3f8] ss:$36 sps:$4 sm:$0xff]  }
  0x9c   : > { %6794 = vmatprep.subr.bf16.mxu1 %v7802_v1 }
  0x9e   : > { %3458 = vmatpush1.bf16.msra.mxu0 %v592_v18  ;;  %2894 = vmatmul.mubr.bf16.gmra.mrb[4].mxu1 %v7333_v6  ;;  %v949_v18 = vld [vmem:[%s10434_s2 + $0x88] sm:$0xff] }
  0x9f   : > { %3247 = vmatmul.mubr.bf16.gmra.mrb[36].mxu0 %v7267_v21  ;;  %v509_v21 = vld [vmem:[%s7899_s27 + $0x2e0] sm:$0xff]  ;;  %3459 = vmatprep.subr.bf16.mxu0 %v7802_v1  ;;  %v7322_v6 = vld [vmem:[%s10433_s1 + $0x7ec] ss:$36 sps:$4 sm:$0xff]  }
  0xa0   : > { %3254 = vmatprep.mubr.bf16.mxu0 %v7268_v23  ;;  %v593_v23 = vpack.c.bf16 %v510_v22, %v509_v21  ;;  %6810 = vmatpush1.bf16.msra.mxu1 %v7914_v11  ;;  %v7342_v11 = vld [vmem:[%s10433_s1 + $0xdc] ss:$36 sps:$4 sm:$0xff]   ;;  %v933_v21 = vld [vmem:[%s10434_s2 + $0x8] sm:$0xff] }
  0xa1   : > { %2901 = vmatprep.mubr.bf16.mxu1 %v7337_v28  ;;  %6795 = vmatprep.subr.bf16.mxu1 %v7802_v1  ;;  %v7321_v22 = vld [vmem:[%s10433_s1 + $0x7a0] ss:$36 sps:$4 sm:$0xff]  }
  0xa2   : > { %3460 = vmatpush1.bf16.msra.mxu0 %v593_v23  ;;  %1083 = vperm.xlu0 %7236, %v949_v18   ;;  %v7417_v23 = vld [vmem:[%s10433_s1 + $0x438] ss:$36 sps:$4 sm:$0xff]   ;;  %v7420_v28 = vld [vmem:[%s10433_s1 + $0x484] ss:$36 sps:$4 sm:$0xff]   ;;  %v523_v18 = vld [vmem:[%s7899_s27 + $0x350] sm:$0xff] }
  0xa3   : > { %3461 = vmatprep.subr.bf16.mxu0 %v7802_v1 }
  0xa4   : > { %6811 = vmatpush1.bf16.msra.mxu1 %v7920_v14  ;;  %v7286_v14 = vld [vmem:[%s10433_s1 + $0x48c] ss:$36 sps:$4 sm:$0xff]  }
  0xa5   : > { %6796 = vmatprep.subr.bf16.mxu1 %v7802_v1 }
  0xa6   : > { %3462 = vmatpush1.bf16.msra.mxu0 %v594_v29  ;;  %2902 = vmatmul.mubr.bf16.gmra.mrb[8].mxu1 %v7339_v32  ;;  %v935_v29 = vld [vmem:[%s10434_s2 + $0x18] sm:$0xff] }
  0xa7   : > { %3255 = vmatmul.mubr.bf16.gmra.mrb[40].mxu0 %v7270_v36  ;;  %3720 = vmatprep.subr.bf16.mxu0 %v7802_v1  ;;  %v7289_v36 = vld [vmem:[%s10433_s1 + $0x4d4] ss:$36 sps:$4 sm:$0xff]  }
  0xa8   : > { %3262 = vmatprep.mubr.bf16.mxu0 %v7271_v40  ;;  %6812 = vmatpush1.bf16.msra.mxu1 %v7926_v17  ;;  %v7348_v17 = vld [vmem:[%s10433_s1 + $0x124] ss:$36 sps:$4 sm:$0xff]   ;;  %v7292_v40 = vld [vmem:[%s10433_s1 + $0x51c] ss:$36 sps:$4 sm:$0xff]   ;;  %v7328_v32 = vld [vmem:[%s10433_s1 + $0x834] ss:$36 sps:$4 sm:$0xff]  }
  0xa9   : > { %2909 = vmatprep.mubr.bf16.mxu1 %v7342_v11  ;;  %6797 = vmatprep.subr.bf16.mxu1 %v7802_v1  ;;  %v7423_v11 = vld [vmem:[%s10433_s1 + $0x480] ss:$36 sps:$4 sm:$0xff]  }
  0xaa   : > { %1088 = vperm.xlu0 %7236, %v950_v24   ;;  %v945_v24 = vld [vmem:[%s10434_s2 + $0x68] sm:$0xff] }
  0xac   : > { %6813 = vmatpush1.bf16.msra.mxu1 %v7932_v20  ;;  %v7288_v20 = vld [vmem:[%s10433_s1 + $0x488] ss:$36 sps:$4 sm:$0xff]  }
  0xad   : > { %6798 = vmatprep.subr.bf16.mxu1 %v7802_v1 }
  0xae   : > { %2910 = vmatmul.mubr.bf16.gmra.mrb[12].mxu1 %v7345_v35  ;;  %v936_v35 = vld [vmem:[%s10434_s2 + $0x20] sm:$0xff] }
  0xaf   : > { %3263 = vmatmul.mubr.bf16.gmra.mrb[44].mxu0 %v7273_v48  ;;  %2917 = vmatprep.mubr.bf16.mxu1 %v7348_v17  ;;  %v7301_v48 = vld [vmem:[%s10433_s1 + $0x5f4] ss:$36 sps:$4 sm:$0xff]   ;;  %v7426_v17 = vld [vmem:[%s10433_s1 + $0x4cc] ss:$36 sps:$4 sm:$0xff]  }
  0xb0   : > { %3270 = vmatprep.mubr.bf16.mxu0 %v7274_v52  ;;  %6814 = vmatpush1.bf16.msra.mxu1 %v7940_v25  ;;  %v7354_v25 = vld [vmem:[%s10433_s1 + $0x16c] ss:$36 sps:$4 sm:$0xff]  }
  0xb1   : > { %6799 = vmatprep.subr.bf16.mxu1 %v7802_v1  ;;  %v7303_v52 = vld [vmem:[%s10433_s1 + $0x5f0] ss:$36 sps:$4 sm:$0xff]  }
  0xb4   : > { %6815 = vmatpush1.bf16.msra.mxu1 %v7945_v27  ;;  %v7291_v27 = vld [vmem:[%s10433_s1 + $0x4d0] ss:$36 sps:$4 sm:$0xff]  }
  0xb5   : > { %6800 = vmatprep.subr.bf16.mxu1 %v7802_v1 }
  0xb6   : > { %2918 = vmatmul.mubr.bf16.gmra.mrb[16].mxu1 %v7351_v38  ;;  %v7336_v38 = vld [vmem:[%s10433_s1 + $0x14] ss:$36 sps:$4 sm:$0xff]  }
  0xb7   : > { %3271 = vmatmul.mubr.bf16.gmra.mrb[48].mxu0 %v7276_v0  ;;  %2925 = vmatprep.mubr.bf16.mxu1 %v7354_v25  ;;  %v7313_v0 = vld [vmem:[%s10433_s1 + $0x714] ss:$36 sps:$4 sm:$0xff]   ;;  %v7429_v25 = vld [vmem:[%s10433_s1 + $0x4c8] ss:$36 sps:$4 sm:$0xff]  }
  0xb8   : > { %3278 = vmatprep.mubr.bf16.mxu0 %v7277_v4  ;;  %6816 = vmatpush1.bf16.msra.mxu1 %v7952_v31  ;;  %v7360_v31 = vld [vmem:[%s10433_s1 + $0x1b4] ss:$36 sps:$4 sm:$0xff]  }
  0xb9   : > { %6801 = vmatprep.subr.bf16.mxu1 %v7802_v1  ;;  %v7315_v4 = vld [vmem:[%s10433_s1 + $0x710] ss:$36 sps:$4 sm:$0xff]  }
  0xbc   : > { %6817 = vmatpush1.bf16.msra.mxu1 %v7957_v33  ;;  %v7294_v33 = vld [vmem:[%s10433_s1 + $0x518] ss:$36 sps:$4 sm:$0xff]  }
  0xbd   : > { %6802 = vmatprep.subr.bf16.mxu1 %v7802_v1 }
  0xbe   : > { %2926 = vmatmul.mubr.bf16.gmra.mrb[20].mxu1 %v7357_v41  ;;  %v7432_v41 = vld [vmem:[%s10433_s1 + $0x514] ss:$36 sps:$4 sm:$0xff]  }
  0xbf   : > { %3279 = vmatmul.mubr.bf16.gmra.mrb[52].mxu0 %v7279_v16  ;;  %2933 = vmatprep.mubr.bf16.mxu1 %v7360_v31  ;;  %v932_v16 = vld [vmem:[%s10434_s2] sm:$0xff] }
  0xc0   : > { %3286 = vmatprep.mubr.bf16.mxu0 %v7280_v19  ;;  %6818 = vmatpush1.bf16.msra.mxu1 %v7964_v37  ;;  %v7366_v37 = vld [vmem:[%s10433_s1 + $0x1fc] ss:$36 sps:$4 sm:$0xff]  }
  0xc1   : > { %6803 = vmatprep.subr.bf16.mxu1 %v7802_v1  ;;  %998 = vperm.xlu1 %7237, %v932_v16   ;;  %v7414_v19 = vld [vmem:[%s10433_s1 + $0x43c] ss:$36 sps:$4 sm:$0xff]   ;;  %v961_v16 = vld [vmem:[%s10434_s2 + $0xe8] sm:$0xff] }
  0xc2   : > { %v513_v31 = vld [vmem:[%s7899_s27 + $0x300] sm:$0xff] }
  0xc4   : > { %6819 = vmatpush1.bf16.msra.mxu1 %v7969_v39  ;;  %v7297_v39 = vld [vmem:[%s10433_s1 + $0x560] ss:$36 sps:$4 sm:$0xff]  }
  0xc5   : > { %6804 = vmatprep.subr.bf16.mxu1 %v7802_v1  ;;  %1003 = vperm.xlu1 %7237, %v933_v21  }
  0xc6   : > { %2934 = vmatmul.mubr.bf16.gmra.mrb[24].mxu1 %v7363_v44  ;;  %v939_v44 = vld [vmem:[%s10434_s2 + $0x38] sm:$0xff] }
  0xc7   : > { %3287 = vmatmul.mubr.bf16.gmra.mrb[56].mxu0 %v7282_v8  ;;  %2941 = vmatprep.mubr.bf16.mxu1 %v7366_v37  ;;  %v934_v8 = vld [vmem:[%s10434_s2 + $0x10] sm:$0xff] }
  0xc8   : > { %3294 = vmatprep.mubr.bf16.mxu0 %v7283_v30  ;;  %6820 = vmatpush1.bf16.msra.mxu1 %v7976_v43  ;;  %v7372_v43 = vld [vmem:[%s10433_s1 + $0x244] ss:$36 sps:$4 sm:$0xff]   ;;  %v7334_v37 = vld [vmem:[%s10433_s1 + $0x10] ss:$36 sps:$4 sm:$0xff]  }
  0xc9   : > { %6805 = vmatprep.subr.bf16.mxu1 %v7802_v1  ;;  %1093 = vperm.xlu1 %7237, %v951_v26   ;;  %v7327_v30 = vld [vmem:[%s10433_s1 + $0x7e8] ss:$36 sps:$4 sm:$0xff]   ;;  %v7358_v26 = vld [vmem:[%s10433_s1 + $0x134] ss:$36 sps:$4 sm:$0xff]  }
  0xca   : > { %1008 = vperm.xlu0 %7236, %v934_v8   ;;  %v962_v8 = vld [vmem:[%s10434_s2 + $0xf0] sm:$0xff] }
  0xcc   : > { %6821 = vmatpush1.bf16.msra.mxu1 %v7981_v45  ;;  %v7300_v45 = vld [vmem:[%s10433_s1 + $0x5a8] ss:$36 sps:$4 sm:$0xff]  }
  0xcd   : > { %6806 = vmatprep.subr.bf16.mxu1 %v7802_v1  ;;  %1013 = vperm.xlu1 %7237, %v935_v29   ;;  %v963_v29 = vld [vmem:[%s10434_s2 + $0xf8] sm:$0xff] }
  0xce   : > { %2942 = vmatmul.mubr.bf16.gmra.mrb[28].mxu1 %v7369_v47  ;;  %v515_v47 = vld [vmem:[%s7899_s27 + $0x310] sm:$0xff] }
  0xcf   : > { %3295 = vmatmul.mubr.bf16.gmra.mrb[60].mxu0 %v7285_v34  ;;  %2949 = vmatprep.mubr.bf16.mxu1 %v7372_v43  ;;  %v952_v34 = vld [vmem:[%s10434_s2 + $0xa0] sm:$0xff]  ;;  %v516_v43 = vld [vmem:[%s7899_s27 + $0x318] sm:$0xff] }
  0xd0   : > { %3302 = vmatprep.mubr.bf16.mxu0 %v7286_v14  ;;  %6822 = vmatpush1.bf16.msra.mxu1 %v7988_v49  ;;  %v7378_v49 = vld [vmem:[%s10433_s1 + $0x28c] ss:$36 sps:$4 sm:$0xff]  }
  0xd1   : > { %6807 = vmatprep.subr.bf16.mxu1 %v7802_v1  ;;  %v953_v14 = vld [vmem:[%s10434_s2 + $0xa8] sm:$0xff]  ;;  %1098 = vperm.xlu0 %7236, %v952_v34   ;;  %v947_v34 = vld [vmem:[%s10434_s2 + $0x78] sm:$0xff] }
  0xd2   : > { %1103 = vperm.xlu1 %7237, %v953_v14   ;;  %v7364_v14 = vld [vmem:[%s10433_s1 + $0x17c] ss:$36 sps:$4 sm:$0xff]  }
  0xd4   : > { %6823 = vmatpush1.bf16.msra.mxu1 %v7993_v51  ;;  %v7304_v51 = vld [vmem:[%s10433_s1 + $0x63c] ss:$36 sps:$4 sm:$0xff]  }
  0xd5   : > { %1018 = vperm.xlu0 %7236, %v936_v35   ;;  %v7459_v35 = vld [vmem:[%s10433_s1 + $0x630] ss:$36 sps:$4 sm:$0xff]  }
  0xd6   : > { %2950 = vmatmul.mubr.bf16.gmra.mrb[32].mxu1 %v7375_v50  ;;  %v957_v50 = vld [vmem:[%s10434_s2 + $0xc8] sm:$0xff] }
  0xd7   : > { %3303 = vmatmul.mubr.bf16.gmra.mrb[64].mxu0 %v7288_v20  ;;  %2957 = vmatprep.mubr.bf16.mxu1 %v7378_v49  ;;  %v937_v20 = vld [vmem:[%s10434_s2 + $0x28] sm:$0xff]  ;;  %v596_v49 = vpack.c.bf16 %v516_v43, %v515_v47  ;;  %v7382_v43 = vld [vmem:[%s10433_s1 + $0x254] ss:$36 sps:$4 sm:$0xff]  }
  0xd8   : > { %3310 = vmatprep.mubr.bf16.mxu0 %v7289_v36  ;;  %v7332_v36 = vld [vmem:[%s10433_s1 + $0x830] ss:$36 sps:$4 sm:$0xff]   ;;  %1023 = vperm.xlu1 %7237, %v937_v20   ;;  %v526_v20 = vld [vmem:[%s7899_s27 + $0x368] sm:$0xff] }
  0xd9   : > { %v7380_v47 = vld [vmem:[%s10433_s1 + $0x208] ss:$36 sps:$4 sm:$0xff]  }
  0xde   : > { %2958 = vmatmul.mubr.bf16.gmra.mrb[36].mxu1 %v7381_v53  ;;  %v7438_v53 = vld [vmem:[%s10433_s1 + $0x55c] ss:$36 sps:$4 sm:$0xff]  }
  0xdf   : > { %3311 = vmatmul.mubr.bf16.gmra.mrb[68].mxu0 %v7291_v27  ;;  %2965 = vmatprep.mubr.bf16.mxu1 %v7384_v54  ;;  %v954_v27 = vld [vmem:[%s10434_s2 + $0xb0] sm:$0xff]  ;;  %v940_v54 = vld [vmem:[%s10434_s2 + $0x40] sm:$0xff] }
  0xe0   : > { %3318 = vmatprep.mubr.bf16.mxu0 %v7292_v40  ;;  %v955_v40 = vld [vmem:[%s10434_s2 + $0xb8] sm:$0xff]  ;;  %1108 = vperm.xlu0 %7236, %v954_v27   ;;  %v7370_v27 = vld [vmem:[%s10433_s1 + $0x1c4] ss:$36 sps:$4 sm:$0xff]  }
  0xe1   : > { %1113 = vperm.xlu1 %7237, %v955_v40   ;;  %v7465_v40 = vld [vmem:[%s10433_s1 + $0x678] ss:$36 sps:$4 sm:$0xff]  }
  0xe5   : > { %1033 = vperm.xlu1 %7237, %v939_v44   ;;  %v527_v44 = vld [vmem:[%s7899_s27 + $0x370] sm:$0xff] }
  0xe6   : > { %2966 = vmatmul.mubr.bf16.gmra.mrb[40].mxu1 %v7387_v57  ;;  %v7346_v57 = vld [vmem:[%s10433_s1 + $0xa4] ss:$36 sps:$4 sm:$0xff]  }
  0xe7   : > { %3319 = vmatmul.mubr.bf16.gmra.mrb[72].mxu0 %v7294_v33  ;;  %2973 = vmatprep.mubr.bf16.mxu1 %v7390_v58  ;;  %v514_v33 = vld [vmem:[%s7899_s27 + $0x308] sm:$0xff] }
  0xe8   : > { %3326 = vmatprep.mubr.bf16.mxu0 %v7295_v42  ;;  %v938_v42 = vld [vmem:[%s10434_s2 + $0x30] sm:$0xff] }
  0xe9   : > { %1028 = vperm.xlu0 %7236, %v938_v42   ;;  %1123 = vperm.xlu1 %7237, %v957_v50   ;;  %v7471_v42 = vld [vmem:[%s10433_s1 + $0x6c0] ss:$36 sps:$4 sm:$0xff]   ;;  %v7386_v50 = vld [vmem:[%s10433_s1 + $0x250] ss:$36 sps:$4 sm:$0xff]  }
  0xee   : > { %2974 = vmatmul.mubr.bf16.gmra.mrb[44].mxu1 %v7393_v61  ;;  %v7441_v61 = vld [vmem:[%s10433_s1 + $0x558] ss:$36 sps:$4 sm:$0xff]  }
  0xef   : > { %3327 = vmatmul.mubr.bf16.gmra.mrb[76].mxu0 %v7297_v39  ;;  %2981 = vmatprep.mubr.bf16.mxu1 %v7396_v62  ;;  %v7340_v39 = vld [vmem:[%s10433_s1 + $0x5c] ss:$36 sps:$4 sm:$0xff]   ;;  %v958_v62 = vld [vmem:[%s10434_s2 + $0xd0] sm:$0xff] }
  0xf0   : > { %3334 = vmatprep.mubr.bf16.mxu0 %v7298_v46  ;;  %v595_v46 = vpack.c.bf16 %v514_v33, %v513_v31  ;;  %v7374_v31 = vld [vmem:[%s10433_s1 + $0x1c0] ss:$36 sps:$4 sm:$0xff]   ;;  %v7376_v33 = vld [vmem:[%s10433_s1 + $0x20c] ss:$36 sps:$4 sm:$0xff]  }
  0xf6   : > { %2982 = vmatmul.mubr.bf16.gmra.mrb[48].mxu1 %v7399_v2  ;;  %v7444_v2 = vld [vmem:[%s10433_s1 + $0x5a4] ss:$36 sps:$4 sm:$0xff]  }
  0xf7   : > { %3335 = vmatmul.mubr.bf16.gmra.mrb[80].mxu0 %v7300_v45  ;;  %2989 = vmatprep.mubr.bf16.mxu1 %v7402_v3  ;;  %v7435_v45 = vld [vmem:[%s10433_s1 + $0x510] ss:$36 sps:$4 sm:$0xff]   ;;  %v521_v3 = vld [vmem:[%s7899_s27 + $0x340] sm:$0xff] }
  0xf8   : > { %3342 = vmatprep.mubr.bf16.mxu0 %v7301_v48  ;;  %v956_v48 = vld [vmem:[%s10434_s2 + $0xc0] sm:$0xff] }
  0xf9   : > { %1118 = vperm.xlu0 %7236, %v956_v48   ;;  %v7480_v48 = vld [vmem:[%s10433_s1 + $0x754] ss:$36 sps:$4 sm:$0xff]  }
  0xfd   : > { %1038 = vperm.xlu0 %7236, %v940_v54  }
  0xfe   : > { %2990 = vmatmul.mubr.bf16.gmra.mrb[52].mxu1 %v7405_v7  ;;  %v7350_v7 = vld [vmem:[%s10433_s1 + $0xa0] ss:$36 sps:$4 sm:$0xff]  }
  0xff   : > { %3343 = vmatmul.mubr.bf16.gmra.mrb[84].mxu0 %v7303_v52  ;;  %2997 = vmatprep.mubr.bf16.mxu1 %v7408_v9  ;;  %v517_v52 = vld [vmem:[%s7899_s27 + $0x320] sm:$0xff]  ;;  %v943_v9 = vld [vmem:[%s10434_s2 + $0x58] sm:$0xff] }
 0x100   : > { %3350 = vmatprep.mubr.bf16.mxu0 %v7304_v51  ;;  %v518_v51 = vld [vmem:[%s7899_s27 + $0x328] sm:$0xff] }
 0x101   : > { %v597_v58 = vpack.c.bf16 %v518_v51, %v517_v52  ;;  %1128 = vperm.xlu0 %7236, %v958_v62   ;;  %v7483_v52 = vld [vmem:[%s10433_s1 + $0x750] ss:$36 sps:$4 sm:$0xff]   ;;  %v529_v51 = vld [vmem:[%s7899_s27 + $0x380] sm:$0xff] }
 0x102   : > { %v7495_v62 = vld [vmem:[%s10433_s1 + $0x7e0] ss:$36 sps:$4 sm:$0xff]  }
 0x106   : > { %2998 = vmatmul.mubr.bf16.gmra.mrb[56].mxu1 %v7411_v13  ;;  %v7447_v13 = vld [vmem:[%s10433_s1 + $0x5a0] ss:$36 sps:$4 sm:$0xff]  }
 0x107   : > { %3351 = vmatmul.mubr.bf16.gmra.mrb[88].mxu0 %v7306_v55  ;;  %3005 = vmatprep.mubr.bf16.mxu1 %v7414_v19  ;;  %v7344_v55 = vld [vmem:[%s10433_s1 + $0x58] ss:$36 sps:$4 sm:$0xff]  }
 0x108   : > { %3358 = vmatprep.mubr.bf16.mxu0 %v7307_v56  ;;  %v941_v56 = vld [vmem:[%s10434_s2 + $0x48] sm:$0xff]  ;;  %v524_v19 = vld [vmem:[%s7899_s27 + $0x358] sm:$0xff] }
 0x109   : > { %1043 = vperm.xlu1 %7237, %v941_v56   ;;  %v600_v21 = vpack.c.bf16 %v524_v19, %v523_v18  ;;  %v7392_v56 = vld [vmem:[%s10433_s1 + $0x298] ss:$36 sps:$4 sm:$0xff]   ;;  %v964_v19 = vld [vmem:[%s10434_s2 + $0x100] sm:$0xff] }
 0x10e   : > { %3006 = vmatmul.mubr.bf16.gmra.mrb[60].mxu1 %v7417_v23  ;;  %v7356_v23 = vld [vmem:[%s10433_s1 + $0xe8] ss:$36 sps:$4 sm:$0xff]  }
 0x10f   : > { %3359 = vmatmul.mubr.bf16.gmra.mrb[92].mxu0 %v7309_v59  ;;  %3013 = vmatprep.mubr.bf16.mxu1 %v7420_v28  ;;  %v519_v59 = vld [vmem:[%s7899_s27 + $0x330] sm:$0xff]  ;;  %v7453_v28 = vld [vmem:[%s10433_s1 + $0x5e8] ss:$36 sps:$4 sm:$0xff]  }
 0x110   : > { %3366 = vmatprep.mubr.bf16.mxu0 %v7310_v60  ;;  %v520_v60 = vld [vmem:[%s7899_s27 + $0x338] sm:$0xff] }
 0x116   : > { %3014 = vmatmul.mubr.bf16.gmra.mrb[64].mxu1 %v7423_v11  ;;  %v7362_v11 = vld [vmem:[%s10433_s1 + $0x130] ss:$36 sps:$4 sm:$0xff]  }
 0x117   : > { %3367 = vmatmul.mubr.bf16.gmra.mrb[96].mxu0 %v7312_v63  ;;  %3021 = vmatprep.mubr.bf16.mxu1 %v7426_v17  ;;  %v959_v63 = vld [vmem:[%s10434_s2 + $0xd8] sm:$0xff]  ;;  %v525_v17 = vld [vmem:[%s7899_s27 + $0x360] sm:$0xff] }
 0x118   : > { %3374 = vmatprep.mubr.bf16.mxu0 %v7313_v0  ;;  %v598_v0 = vpack.c.bf16 %v520_v60, %v519_v59  ;;  %1133 = vperm.xlu1 %7237, %v959_v63   ;;  %v7492_v59 = vld [vmem:[%s10433_s1 + $0x7e4] ss:$36 sps:$4 sm:$0xff]   ;;  %v531_v63 = vld [vmem:[%s7899_s27 + $0x390] sm:$0xff] }
 0x119   : > { %v7398_v60 = vld [vmem:[%s10433_s1 + $0x2e0] ss:$36 sps:$4 sm:$0xff]  }
 0x11c   : > { %1053 = vperm.xlu1 %7237, %v943_v9   ;;  %v980_v9 = vld [vmem:[%s10434_s2 + $0x180] sm:$0xff] }
 0x11e   : > { %3022 = vmatmul.mubr.bf16.gmra.mrb[68].mxu1 %v7429_v25  ;;  %v7368_v25 = vld [vmem:[%s10433_s1 + $0x178] ss:$36 sps:$4 sm:$0xff]  }
 0x11f   : > { %3375 = vmatmul.mubr.bf16.gmra.mrb[100].mxu0 %v7315_v4  ;;  %3029 = vmatprep.mubr.bf16.mxu1 %v7432_v41  ;;  %v522_v4 = vld [vmem:[%s7899_s27 + $0x348] sm:$0xff] }
 0x120   : > { %3382 = vmatprep.mubr.bf16.mxu0 %v7316_v5  ;;  %v942_v5 = vld [vmem:[%s10434_s2 + $0x50] sm:$0xff]  ;;  %1143 = vperm.xlu1 %7237, %v961_v16   ;;  %v7468_v41 = vld [vmem:[%s10433_s1 + $0x6c4] ss:$36 sps:$4 sm:$0xff]  }
 0x121   : > { %1048 = vperm.xlu0 %7236, %v942_v5   ;;  %v7406_v5 = vld [vmem:[%s10433_s1 + $0x374] ss:$36 sps:$4 sm:$0xff]   ;;  %v981_v16 = vld [vmem:[%s10434_s2 + $0x188] sm:$0xff] }
 0x124   : > { %1063 = vperm.xlu1 %7237, %v945_v24   ;;  %v965_v24 = vld [vmem:[%s10434_s2 + $0x108] sm:$0xff] }
 0x125   : > { %1138 = vperm.xlu0 %7236, %v960_v15   ;;  %v7507_v15 = vld [vmem:[%s10433_s1 + $0x870] ss:$36 sps:$4 sm:$0xff]  }
 0x126   : > { %3030 = vmatmul.mubr.bf16.gmra.mrb[72].mxu1 %v7435_v45  ;;  %v7477_v45 = vld [vmem:[%s10433_s1 + $0x708] ss:$36 sps:$4 sm:$0xff]  }
 0x127   : > { %3383 = vmatmul.mubr.bf16.gmra.mrb[104].mxu0 %v7318_v10  ;;  %3037 = vmatprep.mubr.bf16.mxu1 %v7438_v53  ;;  %v7352_v10 = vld [vmem:[%s10433_s1 + $0xec] ss:$36 sps:$4 sm:$0xff]  }
 0x128   : > { %3390 = vmatprep.mubr.bf16.mxu0 %v7319_v12  ;;  %v599_v12 = vpack.c.bf16 %v522_v4, %v521_v3  ;;  %1153 = vperm.xlu1 %7237, %v963_v29   ;;  %v530_v53 = vld [vmem:[%s7899_s27 + $0x388] sm:$0xff]  ;;  %v982_v29 = vld [vmem:[%s10434_s2 + $0x190] sm:$0xff] }
 0x129   : > { %v603_v54 = vpack.c.bf16 %v530_v53, %v529_v51  ;;  %v7498_v3 = vld [vmem:[%s10433_s1 + $0x82c] ss:$36 sps:$4 sm:$0xff]  }
 0x12a   : > { %v7404_v4 = vld [vmem:[%s10433_s1 + $0x328] ss:$36 sps:$4 sm:$0xff]  }
 0x12b   : > { %v969_v51 = vld [vmem:[%s10434_s2 + $0x128] sm:$0xff] }
 0x12c   : > { %1073 = vperm.xlu1 %7237, %v947_v34   ;;  %v983_v34 = vld [vmem:[%s10434_s2 + $0x198] sm:$0xff] }
 0x12e   : > { %3038 = vmatmul.mubr.bf16.gmra.mrb[76].mxu1 %v7441_v61  ;;  %v7400_v61 = vld [vmem:[%s10433_s1 + $0x32c] ss:$36 sps:$4 sm:$0xff]  }
 0x12f   : > { %3391 = vmatmul.mubr.bf16.gmra.mrb[108].mxu0 %v7321_v22  ;;  %3045 = vmatprep.mubr.bf16.mxu1 %v7444_v2  ;;  %v7450_v22 = vld [vmem:[%s10433_s1 + $0x5ec] ss:$36 sps:$4 sm:$0xff]  }
 0x130   : > { %3398 = vmatprep.mubr.bf16.mxu0 %v7322_v6  ;;  %v944_v6 = vld [vmem:[%s10434_s2 + $0x60] sm:$0xff]  ;;  %1243 = vperm.xlu1 %7237, %v981_v16  }
 0x131   : > { %1058 = vperm.xlu0 %7236, %v944_v6   ;;  %v534_v6 = vld [vmem:[%s7899_s27 + $0x3a8] sm:$0xff] }
 0x134   : > { %1163 = vperm.xlu1 %7237, %v965_v24   ;;  %v989_v24 = vld [vmem:[%s10434_s2 + $0x1c8] sm:$0xff] }
 0x135   : > { %1148 = vperm.xlu0 %7236, %v962_v8  }
 0x136   : > { %3046 = vmatmul.mubr.bf16.gmra.mrb[80].mxu1 %v7447_v13  ;;  %v7412_v13 = vld [vmem:[%s10433_s1 + $0x3bc] ss:$36 sps:$4 sm:$0xff]  }
 0x137   : > { %3399 = vmatmul.mubr.bf16.gmra.mrb[112].mxu0 %v7327_v30  ;;  %3053 = vmatprep.mubr.bf16.mxu1 %v7450_v22  ;;  %v7456_v30 = vld [vmem:[%s10433_s1 + $0x634] ss:$36 sps:$4 sm:$0xff]   ;;  %v533_v22 = vld [vmem:[%s7899_s27 + $0x3a0] sm:$0xff] }
 0x138   : > { %3406 = vmatprep.mubr.bf16.mxu0 %v7328_v32  ;;  %v946_v32 = vld [vmem:[%s10434_s2 + $0x70] sm:$0xff]  ;;  %1253 = vperm.xlu1 %7237, %v983_v34  }
 0x139   : > { %1068 = vperm.xlu0 %7236, %v946_v32   ;;  %v7418_v32 = vld [vmem:[%s10433_s1 + $0x404] ss:$36 sps:$4 sm:$0xff]   ;;  %v990_v34 = vld [vmem:[%s10434_s2 + $0x1d0] sm:$0xff] }
 0x13d   : > { %1238 = vperm.xlu0 %7236, %v980_v9  }
 0x13e   : > { %3054 = vmatmul.mubr.bf16.gmra.mrb[84].mxu1 %v7453_v28  ;;  %v7510_v28 = vld [vmem:[%s10433_s1 + $0x8bc] ss:$36 sps:$4 sm:$0xff]  }
 0x13f   : > { %3407 = vmatmul.mubr.bf16.gmra.mrb[116].mxu0 %v7332_v36  ;;  %3061 = vmatprep.mubr.bf16.mxu1 %v7456_v30  ;;  %v601_v36 = vpack.c.bf16 %v526_v20, %v525_v17  ;;  %v7416_v30 = vld [vmem:[%s10433_s1 + $0x3b8] ss:$36 sps:$4 sm:$0xff]   ;;  %v535_v20 = vld [vmem:[%s7899_s27 + $0x3b0] sm:$0xff] }
 0x140   : > { %3463 = vmatprep.mubr.bf16.mxu0 %v7336_v38  ;;  %v7462_v38 = vld [vmem:[%s10433_s1 + $0x67c] ss:$36 sps:$4 sm:$0xff]  }
 0x141   : > { %1158 = vperm.xlu0 %7236, %v964_v19   ;;  %v7434_v19 = vld [vmem:[%s10433_s1 + $0x490] ss:$36 sps:$4 sm:$0xff]  }
 0x145   : > { %1248 = vperm.xlu0 %7236, %v982_v29  }
 0x146   : > { %3062 = vmatmul.mubr.bf16.gmra.mrb[88].mxu1 %v7459_v35  ;;  %v966_v35 = vld [vmem:[%s10434_s2 + $0x110] sm:$0xff] }
 0x147   : > { %3464 = vmatmul.mubr.bf16.vlgmr.msra.gmra.mrb[0].mxu0 %v7334_v37  ;;  %3069 = vmatprep.mubr.bf16.mxu1 %v7462_v38  ;;  %v528_v37 = vld [vmem:[%s7899_s27 + $0x378] sm:$0xff] }
 0x148   : > { %3471 = vmatprep.mubr.bf16.mxu0 %v7340_v39  ;;  %3721 = vmatpush1.bf16.msra.mxu0 %v595_v46  ;;  %v602_v39 = vpack.c.bf16 %v528_v37, %v527_v44  ;;  %v7474_v46 = vld [vmem:[%s10433_s1 + $0x70c] ss:$36 sps:$4 sm:$0xff]   ;;  %v537_v44 = vld [vmem:[%s7899_s27 + $0x3c0] sm:$0xff] }
 0x149   : > { %3722 = vmatprep.subr.bf16.mxu0 %v7802_v1  ;;  %1168 = vperm.xlu0 %7236, %v966_v35   ;;  %v538_v37 = vld [vmem:[%s7899_s27 + $0x3c8] sm:$0xff] }
 0x14a   : > { %v7442_v35 = vld [vmem:[%s10433_s1 + $0x524] ss:$36 sps:$4 sm:$0xff]  }
 0x14c   : > { %3723 = vmatpush1.bf16.msra.mxu0 %v596_v49  ;;  %v7388_v49 = vld [vmem:[%s10433_s1 + $0x29c] ss:$36 sps:$4 sm:$0xff]  }
 0x14d   : > { %3724 = vmatprep.subr.bf16.mxu0 %v7802_v1 }
 0x14e   : > { %3070 = vmatmul.mubr.bf16.gmra.mrb[92].mxu1 %v7465_v40  ;;  %v7518_v40 = vld [vmem:[%s10433_s1 + $0x87c] ss:$36 sps:$4 sm:$0xff]  }
 0x14f   : > { %3472 = vmatmul.mubr.bf16.gmra.mrb[4].mxu0 %v7344_v55  ;;  %3077 = vmatprep.mubr.bf16.mxu1 %v7468_v41  ;;  %v7486_v55 = vld [vmem:[%s10433_s1 + $0x79c] ss:$36 sps:$4 sm:$0xff]  }
 0x150   : > { %3479 = vmatprep.mubr.bf16.mxu0 %v7346_v57  ;;  %3725 = vmatpush1.bf16.msra.mxu0 %v597_v58  ;;  %v7394_v57 = vld [vmem:[%s10433_s1 + $0x2e4] ss:$36 sps:$4 sm:$0xff]   ;;  %v7489_v58 = vld [vmem:[%s10433_s1 + $0x798] ss:$36 sps:$4 sm:$0xff]  }
 0x151   : > { %3726 = vmatprep.subr.bf16.mxu0 %v7802_v1 }
 0x154   : > { %3727 = vmatpush1.bf16.msra.mxu0 %v598_v0  ;;  %v532_v0 = vld [vmem:[%s7899_s27 + $0x398] sm:$0xff] }
 0x155   : > { %3728 = vmatprep.subr.bf16.mxu0 %v7802_v1  ;;  %v604_v2 = vpack.c.bf16 %v532_v0, %v531_v63  ;;  %v987_v63 = vld [vmem:[%s10434_s2 + $0x1b8] sm:$0xff] }
 0x156   : > { %3078 = vmatmul.mubr.bf16.gmra.mrb[96].mxu1 %v7471_v42  ;;  %v7424_v42 = vld [vmem:[%s10433_s1 + $0x44c] ss:$36 sps:$4 sm:$0xff]  }
 0x157   : > { %3480 = vmatmul.mubr.bf16.gmra.mrb[8].mxu0 %v7350_v7  ;;  %3085 = vmatprep.mubr.bf16.mxu1 %v7474_v46  ;;  %v7501_v7 = vld [vmem:[%s10433_s1 + $0x828] ss:$36 sps:$4 sm:$0xff]   ;;  %v607_v46 = vpack.c.bf16 %v538_v37, %v537_v44  ;;  %v7537_v44 = vld [vmem:[%s10433_s1 + $0xb0] ss:$36 sps:$4 sm:$0xff]   ;;  %v7538_v37 = vld [vmem:[%s10433_s1 + $0xf8] ss:$36 sps:$4 sm:$0xff]  }
 0x158   : > { %3487 = vmatprep.mubr.bf16.mxu0 %v7352_v10  ;;  %3729 = vmatpush1.bf16.msra.mxu0 %v599_v12  ;;  %v7504_v10 = vld [vmem:[%s10433_s1 + $0x874] ss:$36 sps:$4 sm:$0xff]  }
 0x159   : > { %3730 = vmatprep.subr.bf16.mxu0 %v7802_v1  ;;  %v7410_v12 = vld [vmem:[%s10433_s1 + $0x370] ss:$36 sps:$4 sm:$0xff]  }
 0x15c   : > { %3731 = vmatpush1.bf16.msra.mxu0 %v600_v21 }
 0x15d   : > { %3732 = vmatprep.subr.bf16.mxu0 %v7802_v1 }
 0x15e   : > { %3086 = vmatmul.mubr.bf16.gmra.mrb[100].mxu1 %v7477_v45  ;;  %v968_v45 = vld [vmem:[%s10434_s2 + $0x120] sm:$0xff] }
 0x15f   : > { %3488 = vmatmul.mubr.bf16.gmra.mrb[12].mxu0 %v7356_v23  ;;  %3093 = vmatprep.mubr.bf16.mxu1 %v7480_v48 }
 0x160   : > { %3495 = vmatprep.mubr.bf16.mxu0 %v7358_v26  ;;  %3733 = vmatpush1.bf16.msra.mxu0 %v601_v36  ;;  %v605_v26 = vpack.c.bf16 %v534_v6, %v533_v22  ;;  %v536_v36 = vld [vmem:[%s7899_s27 + $0x3b8] sm:$0xff]  ;;  %v7530_v6 = vld [vmem:[%s10433_s1 + $0x68] ss:$36 sps:$4 sm:$0xff]  }
 0x161   : > { %3734 = vmatprep.subr.bf16.mxu0 %v7802_v1  ;;  %v7436_v22 = vld [vmem:[%s10433_s1 + $0x4dc] ss:$36 sps:$4 sm:$0xff]  }
 0x164   : > { %3735 = vmatpush1.bf16.msra.mxu0 %v602_v39  ;;  %v7516_v39 = vld [vmem:[%s10433_s1 + $0x878] ss:$36 sps:$4 sm:$0xff]  }
 0x165   : > { %3736 = vmatprep.subr.bf16.mxu0 %v7802_v1 }
 0x166   : > { %3094 = vmatmul.mubr.bf16.gmra.mrb[104].mxu1 %v7483_v52 }
 0x167   : > { %3496 = vmatmul.mubr.bf16.gmra.mrb[16].mxu0 %v7362_v11  ;;  %3101 = vmatprep.mubr.bf16.mxu1 %v7486_v55  ;;  %v7513_v11 = vld [vmem:[%s10433_s1 + $0x8b8] ss:$36 sps:$4 sm:$0xff]  }
 0x168   : > { %3503 = vmatprep.mubr.bf16.mxu0 %v7364_v14  ;;  %3737 = vmatpush1.bf16.msra.mxu0 %v603_v54  ;;  %v7522_v54 = vld [vmem:[%s10433_s1 + $0x8c4] ss:$36 sps:$4 sm:$0xff]  }
 0x169   : > { %3738 = vmatprep.subr.bf16.mxu0 %v7802_v1  ;;  %v8700_v18 = vpop.f32.mrb[0].mxu1 }
 0x16a   : > { %v2889_v21 = vpop.f32.mrb[1].mxu1 }
 0x16b   : > { %v8707_v23 = vpop.f32.mrb[2].mxu1  ;;  %v988_v21 = vld [vmem:[%s10434_s2 + $0x1c0] sm:$0xff] }
 0x16c   : > { %3739 = vmatpush1.bf16.msra.mxu0 %v604_v2  ;;  %v2892_v8 = vpop.f32.mrb[3].mxu1  ;;  %v970_v2 = vld [vmem:[%s10434_s2 + $0x130] sm:$0xff] }
 0x16d   : > { %3740 = vmatprep.subr.bf16.mxu0 %v7802_v1 }
 0x16e   : > { %3102 = vmatmul.mubr.bf16.gmra.mrb[108].mxu1 %v7489_v58  ;;  %v7430_v58 = vld [vmem:[%s10433_s1 + $0x494] ss:$36 sps:$4 sm:$0xff]  }
 0x16f   : > { %3504 = vmatmul.mubr.bf16.gmra.mrb[20].mxu0 %v7368_v25  ;;  %3109 = vmatprep.mubr.bf16.mxu1 %v7492_v59  ;;  %v967_v25 = vld [vmem:[%s10434_s2 + $0x118] sm:$0xff]  ;;  %v541_v59 = vld [vmem:[%s7899_s27 + $0x3e0] sm:$0xff] }
 0x170   : > { %3511 = vmatprep.mubr.bf16.mxu0 %v7370_v27  ;;  %3741 = vmatpush1.bf16.msra.mxu0 %v605_v26  ;;  %v606_v27 = vpack.c.bf16 %v536_v36, %v535_v20  ;;  %v974_v36 = vld [vmem:[%s10434_s2 + $0x150] sm:$0xff] }
 0x171   : > { %3742 = vmatprep.subr.bf16.mxu0 %v7802_v1  ;;  %v8731_v14 = vpop.f32.mrb[4].mxu1  ;;  %1173 = vperm.xlu1 %7237, %v967_v25  }
 0x172   : > { %v2897_v17 = vpop.f32.mrb[5].mxu1 }
 0x173   : > { %v8738_v38 = vpop.f32.mrb[6].mxu1  ;;  %v991_v17 = vld [vmem:[%s10434_s2 + $0x1d8] sm:$0xff] }
 0x174   : > { %v2900_v41 = vpop.f32.mrb[7].mxu1  ;;  %3743 = vmatpush1.bf16.msra.mxu0 %v606_v27 }
 0x175   : > { %3744 = vmatprep.subr.bf16.mxu0 %v7802_v1 }
 0x176   : > { %3110 = vmatmul.mubr.bf16.gmra.mrb[112].mxu1 %v7495_v62 }
 0x177   : > { %3512 = vmatmul.mubr.bf16.gmra.mrb[24].mxu0 %v7374_v31  ;;  %3117 = vmatprep.mubr.bf16.mxu1 %v7498_v3  ;;  %v984_v31 = vld [vmem:[%s10434_s2 + $0x1a0] sm:$0xff] }
 0x178   : > { %3519 = vmatprep.mubr.bf16.mxu0 %v7376_v33  ;;  %v7422_v33 = vld [vmem:[%s10433_s1 + $0x400] ss:$36 sps:$4 sm:$0xff]   ;;  %1258 = vperm.xlu0 %7236, %v984_v31  }
 0x179   : > { %3745 = vmatpush1.bf16.msra.mxu0 %v607_v46  ;;  %v7446_v31 = vld [vmem:[%s10433_s1 + $0x520] ss:$36 sps:$4 sm:$0xff]  }
 0x17a   : > { %3746 = vmatprep.subr.bf16.mxu0 %v7802_v1 }
 0x17c   : > { %1178 = vperm.xlu0 %7236, %v968_v45  }
 0x17e   : > { %3118 = vmatmul.mubr.bf16.gmra.mrb[116].mxu1 %v7501_v7  ;;  %v545_v7 = vld [vmem:[%s7899_s27 + $0x400] sm:$0xff] }
 0x17f   : > { %3520 = vmatmul.mubr.bf16.gmra.mrb[28].mxu0 %v7380_v47  ;;  %3125 = vmatprep.mubr.bf16.mxu1 %v7504_v10  ;;  %v985_v47 = vld [vmem:[%s10434_s2 + $0x1a8] sm:$0xff]  ;;  %v971_v10 = vld [vmem:[%s10434_s2 + $0x138] sm:$0xff] }
 0x180   : > { %3527 = vmatprep.mubr.bf16.mxu0 %v7382_v43  ;;  %v8764_v43 = vpop.f32.mrb[8].mxu1  ;;  %1263 = vperm.xlu1 %7237, %v985_v47   ;;  %v976_v47 = vld [vmem:[%s10434_s2 + $0x160] sm:$0xff] }
 0x181   : > { %v2905_v48 = vpop.f32.mrb[9].mxu1 }
 0x182   : > { %v8771_v52 = vpop.f32.mrb[10].mxu1 }
 0x183   : > { %v2908_v55 = vpop.f32.mrb[11].mxu1 }
 0x184   : > { %1183 = vperm.xlu1 %7237, %v969_v51   ;;  %v8798_v0 = vpop.f32.mrb[12].mxu1  ;;  %v7452_v51 = vld [vmem:[%s10433_s1 + $0x568] ss:$36 sps:$4 sm:$0xff]   ;;  %v995_v55 = vld [vmem:[%s10434_s2 + $0x1f8] sm:$0xff] }
 0x185   : > { %v2913_v3 = vpop.f32.mrb[13].mxu1 }
 0x186   : > { %3126 = vmatmul.mubr.bf16.gmra.mrb[120].mxu1 %v7507_v15  ;;  %v8806_v9 = vpop.f32.mrb[14].mxu1  ;;  %v7545_v3 = vld [vmem:[%s10433_s1 + $0x140] ss:$36 sps:$4 sm:$0xff]  }
 0x187   : > { %3528 = vmatmul.mubr.bf16.gmra.mrb[32].mxu0 %v7386_v50  ;;  %3133 = vmatprep.mubr.bf16.mxu1 %v7510_v28  ;;  %v539_v50 = vld [vmem:[%s7899_s27 + $0x3d0] sm:$0xff]  ;;  %v2916_v15 = vpop.f32.mrb[15].mxu1  ;;  %v972_v28 = vld [vmem:[%s10434_s2 + $0x140] sm:$0xff] }
 0x188   : > { %3535 = vmatprep.mubr.bf16.mxu0 %v7388_v49  ;;  %v540_v49 = vld [vmem:[%s7899_s27 + $0x3d8] sm:$0xff]  ;;  %1273 = vperm.xlu1 %7237, %v987_v63   ;;  %v4474_v63 = vld [vmem:[%s10436_s4 + $0x80] sm:$0xff] }
 0x189   : > { %v608_v53 = vpack.c.bf16 %v540_v49, %v539_v50  ;;  %v8832_v26 = vpop.f32.mrb[16].mxu1  ;;  %v977_v50 = vld [vmem:[%s10434_s2 + $0x168] sm:$0xff] }
 0x18a   : > { %v2921_v8 = vpop.f32.mrb[17].mxu1 }
 0x18b   : > { %3747 = vmatpush1.bf16.msra.mxu0 %v608_v53  ;;  %v8837_v29 = vpop.f32.mrb[18].mxu1  ;;  %v994_v53 = vld [vmem:[%s10434_s2 + $0x1f0] sm:$0xff]  ;;  %v4477_v8 = vld [vmem:[%s10436_s4 + $0x98] sm:$0xff] }
 0x18c   : > { %3748 = vmatprep.subr.bf16.mxu0 %v7802_v1  ;;  %1193 = vperm.xlu1 %7237, %v971_v10   ;;  %v4475_v10 = vld [vmem:[%s10436_s4 + $0x88] sm:$0xff] }
 0x18e   : > { %3134 = vmatmul.mubr.bf16.gmra.mrb[124].mxu1 %v7513_v11  ;;  %v7440_v11 = vld [vmem:[%s10433_s1 + $0x4d8] ss:$36 sps:$4 sm:$0xff]  }
 0x18f   : > { %3536 = vmatmul.mubr.bf16.gmra.mrb[36].mxu0 %v7392_v56  ;;  %3414 = vmatprep.mubr.bf16.mxu1 %v7518_v40  ;;  %v986_v56 = vld [vmem:[%s10434_s2 + $0x1b0] sm:$0xff]  ;;  %v975_v40 = vld [vmem:[%s10434_s2 + $0x158] sm:$0xff] }
 0x190   : > { %3543 = vmatprep.mubr.bf16.mxu0 %v7394_v57  ;;  %v7428_v57 = vld [vmem:[%s10433_s1 + $0x448] ss:$36 sps:$4 sm:$0xff]   ;;  %1268 = vperm.xlu0 %7236, %v986_v56  }
 0x191   : > { %1283 = vperm.xlu1 %7237, %v989_v24  }
 0x194   : > { %1188 = vperm.xlu0 %7236, %v970_v2   ;;  %v7460_v2 = vld [vmem:[%s10433_s1 + $0x5fc] ss:$36 sps:$4 sm:$0xff]  }
 0x196   : > { %3415 = vmatmul.mubr.bf16.vlgmr.msra.gmra.mrb[120].mxu1 %v7516_v39  ;;  %v993_v39 = vld [vmem:[%s10434_s2 + $0x1e8] sm:$0xff] }
 0x197   : > { %3544 = vmatmul.mubr.bf16.gmra.mrb[40].mxu0 %v7398_v60  ;;  %3422 = vmatprep.mubr.bf16.mxu1 %v7522_v54  ;;  %v542_v60 = vld [vmem:[%s7899_s27 + $0x3e8] sm:$0xff]  ;;  %v7454_v54 = vld [vmem:[%s10433_s1 + $0x5b4] ss:$36 sps:$4 sm:$0xff]  }
 0x198   : > { %3551 = vmatprep.mubr.bf16.mxu0 %v7400_v61  ;;  %v7525_v61 = vld [vmem:[%s10433_s1 + $0x8c0] ss:$36 sps:$4 sm:$0xff]   ;;  %v609_v62 = vpack.c.bf16 %v542_v60, %v541_v59  ;;  %1278 = vperm.xlu0 %7236, %v988_v21   ;;  %v979_v60 = vld [vmem:[%s10434_s2 + $0x178] sm:$0xff] }
 0x199   : > { %v7466_v21 = vld [vmem:[%s10433_s1 + $0x644] ss:$36 sps:$4 sm:$0xff]  }
 0x19a   : > { %3749 = vmatpush1.bf16.msra.mxu0 %v609_v62  ;;  %v7458_v62 = vld [vmem:[%s10433_s1 + $0x5b0] ss:$36 sps:$4 sm:$0xff]  }
 0x19b   : > { %3750 = vmatprep.subr.bf16.mxu0 %v7802_v1  ;;  %v7529_v1 = vld [vmem:[%s10433_s1 + $0x20] ss:$36 sps:$4 sm:$0xff]  }
 0x19c   : > { %1198 = vperm.xlu0 %7236, %v972_v28  }
 0x19e   : > { %3423 = vmatmul.mubr.bf16.gmra.mrb[124].mxu1 %v7525_v61 }
 0x19f   : > { %3552 = vmatmul.mubr.bf16.gmra.mrb[44].mxu0 %v7404_v4  ;;  %v543_v4 = vld [vmem:[%s7899_s27 + $0x3f0] sm:$0xff]  ;;  %6692 = vmatprep.mubr.msk.bf16.mxu1 %vm2756_vm0, %v7529_v1 }
 0x1a0   : > { %3559 = vmatprep.mubr.bf16.mxu0 %v7406_v5  ;;  %v544_v5 = vld [vmem:[%s7899_s27 + $0x3f8] sm:$0xff]  ;;  %1288 = vperm.xlu0 %7236, %v990_v34   ;;  %v7472_v34 = vld [vmem:[%s10433_s1 + $0x68c] ss:$36 sps:$4 sm:$0xff]  }
 0x1a4   : > { %1208 = vperm.xlu0 %7236, %v974_v36   ;;  %v4461_v36 = vld [vmem:[%s10436_s4 + $0x18] sm:$0xff] }
 0x1a7   : > { %3560 = vmatmul.mubr.bf16.gmra.mrb[48].mxu0 %v7410_v12  ;;  %v610_v12 = vpack.c.bf16 %v544_v5, %v543_v4  ;;  %v7546_v4 = vld [vmem:[%s10433_s1 + $0x188] ss:$36 sps:$4 sm:$0xff]  }
 0x1a8   : > { %3567 = vmatprep.mubr.bf16.mxu0 %v7412_v13  ;;  %v546_v13 = vld [vmem:[%s7899_s27 + $0x408] sm:$0xff] }
 0x1a9   : > { %v611_v16 = vpack.c.bf16 %v546_v13, %v545_v7  ;;  %3751 = vmatpush1.bf16.msra.mxu0 %v610_v12  ;;  %v4458_v7 = vld [vmem:[%s10436_s4] sm:$0xff] }
 0x1ab   : > { %6690 = vmatprep.subr.bf16.mxu1 %v611_v16 }
 0x1ac   : > { %6691 = vmatpush3.bf16.msra.mxu1 %v611_v16  ;;  %v7464_v16 = vld [vmem:[%s10433_s1 + $0x5f8] ss:$36 sps:$4 sm:$0xff]  }
 0x1af   : > { %3568 = vmatmul.mubr.bf16.gmra.mrb[52].mxu0 %v7416_v30  ;;  %v973_v30 = vld [vmem:[%s10434_s2 + $0x148] sm:$0xff]  ;;  %6693 = vmatmul.mubr.msk.bf16.vlgmr.msra.gmra.mrb[128].mxu1 %vm2756_vm0, %v7530_v6  ;;  %v4460_v6 = vld [vmem:[%s10436_s4 + $0x10] sm:$0xff] }
 0x1b0   : > { %3575 = vmatprep.mubr.bf16.mxu0 %v7418_v32  ;;  %v2924_v32 = vpop.f32.mrb[19].mxu1  ;;  %1203 = vperm.xlu1 %7237, %v973_v30  }
 0x1b1   : > { %v8855_v20 = vpop.f32.mrb[20].mxu1  ;;  %6696 = vmatprep.mubr.msk.bf16.mxu1 %vm2756_vm0, %v7537_v44  ;;  %v7470_v32 = vld [vmem:[%s10433_s1 + $0x640] ss:$36 sps:$4 sm:$0xff]   ;;  %v7476_v44 = vld [vmem:[%s10433_s1 + $0x688] ss:$36 sps:$4 sm:$0xff]  }
 0x1b2   : > { %v2929_v25 = vpop.f32.mrb[21].mxu1 }
 0x1b3   : > { %v8860_v27 = vpop.f32.mrb[22].mxu1 }
 0x1b4   : > { %1293 = vperm.xlu1 %7237, %v991_v17   ;;  %v2932_v41 = vpop.f32.mrb[23].mxu1  ;;  %v7554_v17 = vld [vmem:[%s10433_s1 + $0x218] ss:$36 sps:$4 sm:$0xff]  }
 0x1b5   : > { %v8884_v46 = vpop.f32.mrb[24].mxu1 }
 0x1b6   : > { %v2937_v45 = vpop.f32.mrb[25].mxu1 }
 0x1b7   : > { %3576 = vmatmul.mubr.bf16.gmra.mrb[56].mxu0 %v7422_v33  ;;  %v992_v33 = vld [vmem:[%s10434_s2 + $0x1e0] sm:$0xff]  ;;  %6697 = vmatmul.mubr.msk.bf16.gmra.mrb[132].mxu1 %vm2756_vm0, %v7538_v37  ;;  %v8890_v48 = vpop.f32.mrb[26].mxu1  ;;  %v4480_v37 = vld [vmem:[%s10436_s4 + $0xb0] sm:$0xff] }
 0x1b8   : > { %3583 = vmatprep.mubr.bf16.mxu0 %v7424_v42  ;;  %v7448_v42 = vld [vmem:[%s10433_s1 + $0x56c] ss:$36 sps:$4 sm:$0xff]   ;;  %1213 = vperm.xlu1 %7237, %v975_v40   ;;  %v2940_v49 = vpop.f32.mrb[27].mxu1  ;;  %v4462_v40 = vld [vmem:[%s10436_s4 + $0x20] sm:$0xff] }
 0x1b9   : > { %1298 = vperm.xlu0 %7236, %v992_v33   ;;  %v8907_v56 = vpop.f32.mrb[28].mxu1  ;;  %6700 = vmatprep.mubr.msk.bf16.mxu1 %vm2756_vm0, %v7545_v3  ;;  %v4479_v33 = vld [vmem:[%s10436_s4 + $0xa8] sm:$0xff] }
 0x1bc   : > { %1303 = vperm.xlu1 %7237, %v993_v39   ;;  %v7478_v39 = vld [vmem:[%s10433_s1 + $0x6d4] ss:$36 sps:$4 sm:$0xff]  }
 0x1bd   : > { %1218 = vperm.xlu0 %7236, %v976_v47   ;;  %v4463_v47 = vld [vmem:[%s10436_s4 + $0x28] sm:$0xff] }
 0x1bf   : > { %3584 = vmatmul.mubr.bf16.gmra.mrb[60].mxu0 %v7428_v57  ;;  %v978_v57 = vld [vmem:[%s10434_s2 + $0x170] sm:$0xff]  ;;  %6701 = vmatmul.mubr.msk.bf16.gmra.mrb[136].mxu1 %vm2756_vm0, %v7546_v4 }
 0x1c0   : > { %3591 = vmatprep.mubr.bf16.mxu0 %v7430_v58  ;;  %1223 = vperm.xlu1 %7237, %v977_v50   ;;  %v2945_v58 = vpop.f32.mrb[29].mxu1  ;;  %v4464_v50 = vld [vmem:[%s10436_s4 + $0x30] sm:$0xff] }
 0x1c1   : > { %1308 = vperm.xlu0 %7236, %v994_v53   ;;  %v8912_v59 = vpop.f32.mrb[30].mxu1  ;;  %v7559_v53 = vld [vmem:[%s10433_s1 + $0x2a8] ss:$36 sps:$4 sm:$0xff]   ;;  %v7482_v58 = vld [vmem:[%s10433_s1 + $0x6d0] ss:$36 sps:$4 sm:$0xff]  }
 0x1c2   : > { %v2948_v61 = vpop.f32.mrb[31].mxu1 }
 0x1c3   : > { %v8933_v5 = vpop.f32.mrb[32].mxu1  ;;  %v7484_v61 = vld [vmem:[%s10433_s1 + $0x71c] ss:$36 sps:$4 sm:$0xff]  }
 0x1c4   : > { %1313 = vperm.xlu1 %7237, %v995_v55   ;;  %v2953_v12 = vpop.f32.mrb[33].mxu1  ;;  %v4481_v55 = vld [vmem:[%s10436_s4 + $0xb8] sm:$0xff] }
 0x1c5   : > { %1228 = vperm.xlu0 %7236, %v978_v57   ;;  %v8942_v13 = vpop.f32.mrb[34].mxu1  ;;  %v7488_v12 = vld [vmem:[%s10433_s1 + $0x718] ss:$36 sps:$4 sm:$0xff]  }
 0x1c6   : > { %v2956_v15 = vpop.f32.mrb[35].mxu1 }
 0x1c7   : > { %3592 = vmatmul.mubr.bf16.gmra.mrb[64].mxu0 %v7434_v19  ;;  %v4476_v19 = vld [vmem:[%s10436_s4 + $0x90] sm:$0xff]  ;;  %v8956_v1 = vpop.f32.mrb[36].mxu1 }
 0x1c8   : > { %3599 = vmatprep.mubr.bf16.mxu0 %v7436_v22  ;;  %1233 = vperm.xlu1 %7237, %v979_v60   ;;  %v4459_v22 = vld [vmem:[%s10436_s4 + $0x8] sm:$0xff]  ;;  %v2961_v24 = vpop.f32.mrb[37].mxu1  ;;  %v4482_v60 = vld [vmem:[%s10436_s4 + $0xc0] sm:$0xff]  ;;  %v4484_v15 = vld [vmem:[%s10436_s4 + $0xd0] sm:$0xff] }
 0x1c9   : > { %4572 = vperm.xlu0 %7236, %v4474_v63   ;;  %v8961_v28 = vpop.f32.mrb[38].mxu1 }
 0x1ca   : > { %v2964_v30 = vpop.f32.mrb[39].mxu1 }
 0x1cb   : > { %v8985_v25 = vpop.f32.mrb[40].mxu1 }
 0x1cc   : > { %4577 = vperm.xlu1 %7237, %v4475_v10   ;;  %10444 = vst [vmem:[#allocation3_spill] sm:$0xff] %v8985_v25  ;;  %v2969_v41 = vpop.f32.mrb[41].mxu1 }
 0x1cd   : > { %4492 = vperm.xlu0 %7236, %v4458_v7   ;;  %v4483_v7 = vld [vmem:[%s10436_s4 + $0xc8] sm:$0xff] }
 0x1cf   : > { %3600 = vmatmul.mubr.bf16.gmra.mrb[68].mxu0 %v7440_v11  ;;  %v4478_v11 = vld [vmem:[%s10436_s4 + $0xa0] sm:$0xff] }
 0x1d0   : > { %3607 = vmatprep.mubr.bf16.mxu0 %v7442_v35  ;;  %4497 = vperm.xlu1 %7237, %v4459_v22   ;;  %v7553_v35 = vld [vmem:[%s10433_s1 + $0x1d0] ss:$36 sps:$4 sm:$0xff]  }
 0x1d1   : > { %4582 = vperm.xlu0 %7236, %v4476_v19   ;;  %6704 = vmatprep.mubr.msk.bf16.mxu1 %vm2756_vm0, %v7553_v35  ;;  %v4467_v19 = vld [vmem:[%s10436_s4 + $0x48] sm:$0xff]  ;;  %v4468_v22 = vld [vmem:[%s10436_s4 + $0x50] sm:$0xff]  ;;  %v9079_v35 = vpop.permute.xlu0 %1078 }
 0x1d2   : > { %6705 = vmatmul.mubr.msk.bf16.gmra.mrb[140].mxu1 %vm2756_vm0, %v7554_v17  ;;  %v7569_v17 = vld [vmem:[%s10433_s1 + $0x2f0] ss:$36 sps:$4 sm:$0xff]  }
 0x1d4   : > { %4587 = vperm.xlu1 %7237, %v4477_v8   ;;  %v4485_v8 = vld [vmem:[%s10436_s4 + $0xd8] sm:$0xff] }
 0x1d5   : > { %4502 = vperm.xlu0 %7236, %v4460_v6  }
 0x1d7   : > { %3608 = vmatmul.mubr.bf16.gmra.mrb[72].mxu0 %v7446_v31  ;;  %v8991_v31 = vpop.f32.mrb[42].mxu1 }
 0x1d8   : > { %3615 = vmatprep.mubr.bf16.mxu0 %v7448_v42  ;;  %4507 = vperm.xlu1 %7237, %v4461_v36   ;;  %10445 = vst [vmem:[#allocation4_spill] sm:$0xff] %v8991_v31  ;;  %v2972_v42 = vpop.f32.mrb[43].mxu1  ;;  %v7570_v36 = vld [vmem:[%s10433_s1 + $0x338] ss:$36 sps:$4 sm:$0xff]   ;;  %v7614_v31 = vld [vmem:[%s10433_s1 + $0x64c] ss:$36 sps:$4 sm:$0xff]  }
 0x1d9   : > { %4592 = vperm.xlu0 %7236, %v4478_v11   ;;  %v9008_v45 = vpop.f32.mrb[44].mxu1  ;;  %v4486_v11 = vld [vmem:[%s10436_s4 + $0xe0] sm:$0xff] }
 0x1da   : > { %10446 = vst [vmem:[#allocation5_spill] sm:$0xff] %v9008_v45  ;;  %v2977_v49 = vpop.f32.mrb[45].mxu1 }
 0x1db   : > { %v4488_v49 = vld [vmem:[%s10436_s4 + $0xf0] sm:$0xff] }
 0x1dc   : > { %4597 = vperm.xlu1 %7237, %v4479_v33   ;;  %v4470_v33 = vld [vmem:[%s10436_s4 + $0x60] sm:$0xff] }
 0x1dd   : > { %4512 = vperm.xlu0 %7236, %v4462_v40   ;;  %v4469_v40 = vld [vmem:[%s10436_s4 + $0x58] sm:$0xff] }
 0x1df   : > { %3616 = vmatmul.mubr.bf16.gmra.mrb[76].mxu0 %v7452_v51  ;;  %v7558_v51 = vld [vmem:[%s10433_s1 + $0x260] ss:$36 sps:$4 sm:$0xff]  }
 0x1e0   : > { %3623 = vmatprep.mubr.bf16.mxu0 %v7454_v54  ;;  %4517 = vperm.xlu1 %7237, %v4463_v47   ;;  %v9019_v54 = vpop.f32.mrb[46].mxu1 }
 0x1e1   : > { %4602 = vperm.xlu0 %7236, %v4480_v37   ;;  %10447 = vst [vmem:[#allocation6_spill] sm:$0xff] %v9019_v54  ;;  %v2980_v57 = vpop.f32.mrb[47].mxu1  ;;  %6708 = vmatprep.mubr.msk.bf16.mxu1 %vm2756_vm0, %v7558_v51  ;;  %v4487_v37 = vld [vmem:[%s10436_s4 + $0xe8] sm:$0xff]  ;;  %v7502_v51 = vld [vmem:[%s10433_s1 + $0x7f4] ss:$36 sps:$4 sm:$0xff]  }
 0x1e2   : > { %6709 = vmatmul.mubr.msk.bf16.gmra.mrb[144].mxu1 %vm2756_vm0, %v7559_v53  ;;  %v9038_v63 = vpop.f32.mrb[48].mxu1  ;;  %v9113_v53 = vpop.permute.xlu1 %998 }
 0x1e3   : > { %10448 = vst [vmem:[#allocation7_spill] sm:$0xff] %v9038_v63  ;;  %v2985_v3 = vpop.f32.mrb[49].mxu1  ;;  %6712 = vmatprep.mubr.msk.bf16.mxu1 %vm2756_vm0, %v7569_v17  ;;  %v5357_v17 = vld [vmem:[%s10438_s6 + $0x8] sm:$0xff] }
 0x1e4   : > { %4607 = vperm.xlu1 %7237, %v4481_v55   ;;  %v9043_v4 = vpop.f32.mrb[50].mxu1  ;;  %v4471_v55 = vld [vmem:[%s10436_s4 + $0x68] sm:$0xff] }
 0x1e5   : > { %4522 = vperm.xlu0 %7236, %v4464_v50   ;;  %10449 = vst [vmem:[#allocation8_spill] sm:$0xff] %v9043_v4  ;;  %v2988_v10 = vpop.f32.mrb[51].mxu1  ;;  %v7500_v50 = vld [vmem:[%s10433_s1 + $0x7a8] ss:$36 sps:$4 sm:$0xff]  }
 0x1e6   : > { %v9130_v3 = vpop.permute.xlu1 %1003  ;;  %v7506_v10 = vld [vmem:[%s10433_s1 + $0x7f0] ss:$36 sps:$4 sm:$0xff]  }
 0x1e7   : > { %3624 = vmatmul.mubr.bf16.gmra.mrb[80].mxu0 %v7458_v62  ;;  %v4465_v62 = vld [vmem:[%s10436_s4 + $0x38] sm:$0xff]  ;;  %v7598_v4 = vld [vmem:[%s10433_s1 + $0x52c] ss:$36 sps:$4 sm:$0xff]  }
 0x1e8   : > { %3631 = vmatprep.mubr.bf16.mxu0 %v7460_v2  ;;  %v4466_v2 = vld [vmem:[%s10436_s4 + $0x40] sm:$0xff]  ;;  %4527 = vperm.xlu1 %7237, %v4465_v62  }
 0x1e9   : > { %4612 = vperm.xlu0 %7236, %v4482_v60  }
 0x1ea   : > { %6713 = vmatmul.mubr.msk.bf16.gmra.mrb[148].mxu1 %vm2756_vm0, %v7570_v36 }
 0x1ec   : > { %4617 = vperm.xlu1 %7237, %v4483_v7  }
 0x1ed   : > { %4532 = vperm.xlu0 %7236, %v4466_v2   ;;  %v4489_v2 = vld [vmem:[%s10436_s4 + $0xf8] sm:$0xff] }
 0x1ef   : > { %3632 = vmatmul.mubr.bf16.gmra.mrb[84].mxu0 %v7464_v16  ;;  %v7490_v16 = vld [vmem:[%s10433_s1 + $0x764] ss:$36 sps:$4 sm:$0xff]  }
 0x1f0   : > { %3639 = vmatprep.mubr.bf16.mxu0 %v7466_v21  ;;  %v9060_v21 = vpop.f32.mrb[52].mxu1  ;;  %4537 = vperm.xlu1 %7237, %v4467_v19  }
 0x1f1   : > { %4622 = vperm.xlu0 %7236, %v4484_v15   ;;  %10450 = vst [vmem:[#allocation9_spill] sm:$0xff] %v9060_v21  ;;  %v2993_v6 = vpop.f32.mrb[53].mxu1  ;;  %v7508_v15 = vld [vmem:[%s10433_s1 + $0x83c] ss:$36 sps:$4 sm:$0xff]  }
 0x1f2   : > { %v9065_v24 = vpop.f32.mrb[54].mxu1  ;;  %v4473_v6 = vld [vmem:[%s10436_s4 + $0x78] sm:$0xff] }
 0x1f3   : > { %10451 = vst [vmem:[#allocation10_spill] sm:$0xff] %v9065_v24  ;;  %v2996_v30 = vpop.f32.mrb[55].mxu1  ;;  %v7650_v24 = vld [vmem:[%s10433_s1 + $0x8d8] ss:$36 sps:$4 sm:$0xff]  }
 0x1f4   : > { %4627 = vperm.xlu1 %7237, %v4485_v8   ;;  %v9091_v41 = vpop.f32.mrb[56].mxu1  ;;  %v5358_v30 = vld [vmem:[%s10438_s6 + $0x10] sm:$0xff] }
 0x1f5   : > { %4542 = vperm.xlu0 %7236, %v4468_v22   ;;  %10452 = vst [vmem:[#allocation11_spill] sm:$0xff] %v9091_v41  ;;  %v3001_v42 = vpop.f32.mrb[57].mxu1  ;;  %v7578_v22 = vld [vmem:[%s10433_s1 + $0x3c8] ss:$36 sps:$4 sm:$0xff]  }
 0x1f6   : > { %v7514_v42 = vld [vmem:[%s10433_s1 + $0x884] ss:$36 sps:$4 sm:$0xff]  }
 0x1f7   : > { %3640 = vmatmul.mubr.bf16.gmra.mrb[88].mxu0 %v7470_v32  ;;  %v7494_v32 = vld [vmem:[%s10433_s1 + $0x760] ss:$36 sps:$4 sm:$0xff]  }
 0x1f8   : > { %3647 = vmatprep.mubr.bf16.mxu0 %v7472_v34  ;;  %v7496_v34 = vld [vmem:[%s10433_s1 + $0x7ac] ss:$36 sps:$4 sm:$0xff]   ;;  %4547 = vperm.xlu1 %7237, %v4469_v40   ;;  %v7512_v40 = vld [vmem:[%s10433_s1 + $0x838] ss:$36 sps:$4 sm:$0xff]  }
 0x1f9   : > { %4632 = vperm.xlu0 %7236, %v4486_v11  }
 0x1fc   : > { %4637 = vperm.xlu1 %7237, %v4487_v37  }
 0x1fd   : > { %4552 = vperm.xlu0 %7236, %v4470_v33   ;;  %v5360_v33 = vld [vmem:[%s10438_s6 + $0x20] sm:$0xff] }
 0x1ff   : > { %3648 = vmatmul.mubr.bf16.gmra.mrb[92].mxu0 %v7476_v44  ;;  %v9097_v44 = vpop.f32.mrb[58].mxu1 }
 0x200   : > { %3655 = vmatprep.mubr.bf16.mxu0 %v7478_v39  ;;  %10453 = vst [vmem:[#allocation12_spill] sm:$0xff] %v9097_v44  ;;  %v9102_v39 = vpop.permute.xlu0 %1083  ;;  %v3004_v47 = vpop.f32.mrb[59].mxu1  ;;  %4557 = vperm.xlu1 %7237, %v4471_v55  }
 0x201   : > { %4642 = vperm.xlu0 %7236, %v4488_v49   ;;  %v9118_v57 = vpop.f32.mrb[60].mxu1 }
 0x202   : > { %10454 = vst [vmem:[#allocation13_spill] sm:$0xff] %v9118_v57 }
 0x204   : > { %v9123_v60 = vpop.permute.xlu0 %1088  ;;  %4647 = vperm.xlu1 %7237, %v4489_v2  }
 0x207   : > { %3656 = vmatmul.mubr.bf16.gmra.mrb[96].mxu0 %v7482_v58  ;;  %v4472_v58 = vld [vmem:[%s10436_s4 + $0x70] sm:$0xff] }
 0x208   : > { %3663 = vmatprep.mubr.bf16.mxu0 %v7484_v61  ;;  %v3009_v61 = vpop.f32.mrb[61].mxu1  ;;  %4562 = vperm.xlu0 %7236, %v4472_v58   ;;  %v9144_v19 = vpop.permute.xlu0 %1008 }
 0x209   : > { %v9125_v62 = vpop.f32.mrb[62].mxu1  ;;  %4567 = vperm.xlu1 %7237, %v4473_v6   ;;  %v5361_v61 = vld [vmem:[%s10438_s6 + $0x28] sm:$0xff]  ;;  %v7586_v6 = vld [vmem:[%s10433_s1 + $0x458] ss:$36 sps:$4 sm:$0xff]  }
 0x20a   : > { %10455 = vst [vmem:[#allocation14_spill] sm:$0xff] %v9125_v62  ;;  %v3012_v7 = vpop.f32.mrb[63].mxu1  ;;  %v7550_v62 = vld [vmem:[%s10433_s1 + $0x1cc] ss:$36 sps:$4 sm:$0xff]  }
 0x20b   : > { %v9153_v8 = vpop.f32.mrb[64].mxu1 }
 0x20c   : > { %10456 = vst [vmem:[#allocation15_spill] sm:$0xff] %v9153_v8  ;;  %v3017_v11 = vpop.f32.mrb[65].mxu1  ;;  %v9175_v37 = vpop.permute.xlu0 %1098 }
 0x20d   : > { %10458 = vst [vmem:[#allocation17_spill] sm:$0xff] %v9175_v37  ;;  %5379 = vperm.xlu1 %7237, %v5357_v17   ;;  %v5366_v17 = vld [vmem:[%s10438_s6 + $0x50] sm:$0xff] }
 0x20f   : > { %3664 = vmatmul.mubr.bf16.gmra.mrb[100].mxu0 %v7488_v12  ;;  %v5356_v12 = vld [vmem:[%s10438_s6] sm:$0xff] }
 0x210   : > { %3671 = vmatprep.mubr.bf16.mxu0 %v7490_v16  ;;  %v7577_v16 = vld [vmem:[%s10433_s1 + $0x380] ss:$36 sps:$4 sm:$0xff]   ;;  %5374 = vperm.xlu0 %7236, %v5356_v12   ;;  %v9192_v2 = vpop.permute.xlu0 %1018 }
 0x211   : > { %6716 = vmatprep.mubr.msk.bf16.mxu1 %vm2756_vm0, %v7577_v16  ;;  %v5364_v12 = vld [vmem:[%s10438_s6 + $0x40] sm:$0xff]  ;;  %v7520_v16 = vld [vmem:[%s10433_s1 + $0x8cc] ss:$36 sps:$4 sm:$0xff]  }
 0x212   : > { %6717 = vmatmul.mubr.msk.bf16.gmra.mrb[152].mxu1 %vm2756_vm0, %v7578_v22  ;;  %v7585_v22 = vld [vmem:[%s10433_s1 + $0x410] ss:$36 sps:$4 sm:$0xff]  }
 0x213   : > { %6720 = vmatprep.mubr.msk.bf16.mxu1 %vm2756_vm0, %v7585_v22  ;;  %v5370_v22 = vld [vmem:[%s10438_s6 + $0x70] sm:$0xff] }
 0x214   : > { %5384 = vperm.xlu0 %7236, %v5358_v30   ;;  %v5363_v30 = vld [vmem:[%s10438_s6 + $0x38] sm:$0xff] }
 0x217   : > { %3672 = vmatmul.mubr.bf16.gmra.mrb[104].mxu0 %v7494_v32  ;;  %v9158_v32 = vpop.permute.xlu1 %1093 }
 0x218   : > { %3679 = vmatprep.mubr.bf16.mxu0 %v7496_v34  ;;  %v9161_v34 = vpop.f32.mrb[66].mxu1  ;;  %5394 = vperm.xlu0 %7236, %v5360_v33  }
 0x219   : > { %10457 = vst [vmem:[#allocation16_spill] sm:$0xff] %v9161_v34  ;;  %v3020_v36 = vpop.f32.mrb[67].mxu1 }
 0x21a   : > { %v9182_v49 = vpop.f32.mrb[68].mxu1  ;;  %v9220_v36 = vpop.permute.xlu0 %1108  ;;  %6721 = vmatmul.mubr.msk.bf16.gmra.mrb[156].mxu1 %vm2756_vm0, %v7586_v6 }
 0x21b   : > { %v9177_v47 = vpop.permute.xlu1 %1013  ;;  %10459 = vst [vmem:[#allocation18_spill] sm:$0xff] %v9182_v49  ;;  %v3025_v55 = vpop.f32.mrb[69].mxu1  ;;  %10463 = vst [vmem:[#allocation22_spill] sm:$0xff] %v9220_v36  ;;  %v5811_v49 = vld [vmem:[#allocation2] sm:$0x1] }
 0x21c   : > { %v9187_v58 = vpop.f32.mrb[70].mxu1  ;;  %v7524_v55 = vld [vmem:[%s10433_s1 + $0x8c8] ss:$36 sps:$4 sm:$0xff]   ;;  %v7613_v36 = vld [vmem:[%s10433_s1 + $0x600] ss:$36 sps:$4 sm:$0xff]  }
 0x21d   : > { %10460 = vst [vmem:[#allocation19_spill] sm:$0xff] %v9187_v58  ;;  %v3028_v7 = vpop.f32.mrb[71].mxu1 }
 0x21e   : > { %v9215_v11 = vpop.f32.mrb[72].mxu1  ;;  %v7528_v7 = vld [vmem:[%s10433_s1 + $0x1c] ss:$36 sps:$4 sm:$0xff]  }
 0x21f   : > { %3680 = vmatmul.mubr.bf16.gmra.mrb[108].mxu0 %v7500_v50  ;;  %v5359_v50 = vld [vmem:[%s10438_s6 + $0x18] sm:$0xff]  ;;  %10462 = vst [vmem:[#allocation21_spill] sm:$0xff] %v9215_v11 }
 0x220   : > { %3687 = vmatprep.mubr.bf16.mxu0 %v7502_v51  ;;  %v5362_v51 = vld [vmem:[%s10438_s6 + $0x30] sm:$0xff]  ;;  %5389 = vperm.xlu1 %7237, %v5359_v50  }
 0x221   : > { %5404 = vperm.xlu0 %7236, %v5362_v51  }
 0x224   : > { %5399 = vperm.xlu1 %7237, %v5361_v61   ;;  %v5368_v61 = vld [vmem:[%s10438_s6 + $0x60] sm:$0xff] }
 0x225   : > { %5414 = vperm.xlu0 %7236, %v5364_v12   ;;  %v5367_v12 = vld [vmem:[%s10438_s6 + $0x58] sm:$0xff] }
 0x227   : > { %3688 = vmatmul.mubr.bf16.gmra.mrb[112].mxu0 %v7506_v10  ;;  %v7519_v10 = vld [vmem:[%s10433_s1 + $0x880] ss:$36 sps:$4 sm:$0xff]  }
 0x228   : > { %3695 = vmatprep.mubr.bf16.mxu0 %v7508_v15  ;;  %v9200_v15 = vpop.permute.xlu1 %1103  ;;  %5409 = vperm.xlu1 %7237, %v5363_v30  }
 0x229   : > { %10461 = vst [vmem:[#allocation20_spill] sm:$0xff] %v9200_v15  ;;  %5424 = vperm.xlu0 %7236, %v5366_v17  }
 0x22c   : > { %v9228_v50 = vpop.permute.xlu1 %1023 }
 0x22d   : > { %5434 = vperm.xlu0 %7236, %v5368_v61  }
 0x22f   : > { %3696 = vmatmul.mubr.bf16.gmra.mrb[116].mxu0 %v7512_v40  ;;  %v3033_v40 = vpop.f32.mrb[73].mxu1 }
 0x230   : > { %3703 = vmatprep.mubr.bf16.mxu0 %v7514_v42  ;;  %v9223_v33 = vpop.f32.mrb[74].mxu1  ;;  %v5365_v42 = vld [vmem:[%s10438_s6 + $0x48] sm:$0xff]  ;;  %v9249_v6 = vpop.permute.xlu1 %1113 }
 0x231   : > { %10464 = vst [vmem:[#allocation23_spill] sm:$0xff] %v9223_v33  ;;  %v3036_v51 = vpop.f32.mrb[75].mxu1  ;;  %5419 = vperm.xlu1 %7237, %v5365_v42   ;;  %10466 = vst [vmem:[#allocation25_spill] sm:$0xff] %v9249_v6  ;;  %v5369_v40 = vld [vmem:[%s10438_s6 + $0x68] sm:$0xff]  ;;  %5444 = vperm.xlu0 %7236, %v5370_v22  }
 0x232   : > { %v7526_v51 = vld [vmem:[%s10433_s1 + $0x18] ss:$36 sps:$4 sm:$0xff]  }
 0x234   : > { %v9270_v22 = vpop.permute.xlu1 %1033 }
 0x235   : > { %5429 = vperm.xlu1 %7237, %v5367_v12   ;;  %v7593_v12 = vld [vmem:[%s10433_s1 + $0x4a0] ss:$36 sps:$4 sm:$0xff]  }
 0x236   : > { %6724 = vmatprep.mubr.msk.bf16.mxu1 %vm2756_vm0, %v7593_v12 }
 0x237   : > { %3704 = vmatmul.mubr.bf16.gmra.mrb[120].mxu0 %v7519_v10  ;;  %v9239_v10 = vpop.permute.xlu0 %1028 }
 0x238   : > { %3711 = vmatprep.mubr.bf16.mxu0 %v7520_v16  ;;  %v9244_v16 = vpop.f32.mrb[76].mxu1 }
 0x239   : > { %10465 = vst [vmem:[#allocation24_spill] sm:$0xff] %v9244_v16  ;;  %v3041_v30 = vpop.f32.mrb[77].mxu1  ;;  %5439 = vperm.xlu1 %7237, %v5369_v40   ;;  %v5663_v40 = vld [vmem:[%s10440_s8 + $0x10] sm:$0xff] }
 0x23a   : > { %v9251_v17 = vpop.f32.mrb[78].mxu1  ;;  %v7594_v30 = vld [vmem:[%s10433_s1 + $0x4e8] ss:$36 sps:$4 sm:$0xff]  }
 0x23b   : > { %10467 = vst [vmem:[#allocation26_spill] sm:$0xff] %v9251_v17  ;;  %v3044_v42 = vpop.f32.mrb[79].mxu1  ;;  %v9262_v61 = vpop.permute.xlu0 %1118  ;;  %6725 = vmatmul.mubr.msk.bf16.gmra.mrb[160].mxu1 %vm2756_vm0, %v7594_v30  ;;  %v7534_v30 = vld [vmem:[%s10433_s1 + $0xac] ss:$36 sps:$4 sm:$0xff]  }
 0x23c   : > { %10468 = vst [vmem:[#allocation27_spill] sm:$0xff] %v9262_v61  ;;  %v5371_v42 = vld [vmem:[%s10438_s6 + $0x78] sm:$0xff]  ;;  %v9279_v17 = vpop.f32.mrb[80].mxu1  ;;  %v7605_v61 = vld [vmem:[%s10433_s1 + $0x570] ss:$36 sps:$4 sm:$0xff]  }
 0x23d   : > { %10469 = vst [vmem:[#allocation28_spill] sm:$0xff] %v9279_v17  ;;  %5449 = vperm.xlu1 %7237, %v5371_v42   ;;  %v7533_v17 = vld [vmem:[%s10433_s1 + $0x60] ss:$36 sps:$4 sm:$0xff]   ;;  %v9298_v42 = vpop.permute.xlu1 %1123 }
 0x23e   : > { %10471 = vst [vmem:[#allocation30_spill] sm:$0xff] %v9298_v42 }
 0x23f   : > { %3712 = vmatmul.mubr.bf16.gmra.mrb[124].mxu0 %v7524_v55  ;;  %v5661_v55 = vld [vmem:[%s10440_s8] sm:$0xff]  ;;  %v9290_v12 = vpop.permute.xlu0 %1038 }
 0x240   : > { %3752 = vmatprep.mubr.bf16.mxu0 %v7528_v7  ;;  %v7531_v7 = vld [vmem:[%s10433_s1 + $0x64] ss:$36 sps:$4 sm:$0xff]   ;;  %5671 = vperm.xlu0 %7236, %v5661_v55   ;;  %v3049_v55 = vpop.f32.mrb[81].mxu1 }
 0x241   : > { %v9285_v16 = vpop.f32.mrb[82].mxu1  ;;  %v5667_v55 = vld [vmem:[%s10440_s8 + $0x30] sm:$0xff] }
 0x242   : > { %10470 = vst [vmem:[#allocation29_spill] sm:$0xff] %v9285_v16  ;;  %v3052_v33 = vpop.f32.mrb[83].mxu1 }
 0x243   : > { %v5664_v33 = vld [vmem:[%s10440_s8 + $0x18] sm:$0xff]  ;;  %v9311_v16 = vpop.permute.xlu0 %1128 }
 0x244   : > { %5681 = vperm.xlu0 %7236, %v5663_v40   ;;  %v9306_v40 = vpop.f32.mrb[84].mxu1  ;;  %10473 = vst [vmem:[#allocation32_spill] sm:$0xff] %v9311_v16 }
 0x245   : > { %10472 = vst [vmem:[#allocation31_spill] sm:$0xff] %v9306_v40  ;;  %v3057_v11 = vpop.f32.mrb[85].mxu1  ;;  %v7536_v40 = vld [vmem:[%s10433_s1 + $0xa8] ss:$36 sps:$4 sm:$0xff]  }
 0x246   : > { %v9313_v58 = vpop.f32.mrb[86].mxu1  ;;  %v7601_v11 = vld [vmem:[%s10433_s1 + $0x530] ss:$36 sps:$4 sm:$0xff]  }
 0x247   : > { %3753 = vmatmul.mubr.bf16.vlgmr.msra.gmra.mrb[0].mxu0 %v7526_v51  ;;  %v5662_v51 = vld [vmem:[%s10440_s8 + $0x8] sm:$0xff]  ;;  %10474 = vst [vmem:[#allocation33_spill] sm:$0xff] %v9313_v58  ;;  %6728 = vmatprep.mubr.msk.bf16.mxu1 %vm2756_vm0, %v7601_v11  ;;  %v7542_v11 = vld [vmem:[%s10433_s1 + $0x13c] ss:$36 sps:$4 sm:$0xff]  }
 0x248   : > { %3760 = vmatprep.mubr.bf16.mxu0 %v7531_v7  ;;  %v5665_v7 = vld [vmem:[%s10440_s8 + $0x20] sm:$0xff]  ;;  %5676 = vperm.xlu1 %7237, %v5662_v51   ;;  %v9318_v51 = vpop.permute.xlu1 %1043 }
 0x249   : > { %5691 = vperm.xlu0 %7236, %v5665_v7   ;;  %v3060_v7 = vpop.f32.mrb[87].mxu1 }
 0x24a   : > { %v5668_v7 = vld [vmem:[%s10440_s8 + $0x38] sm:$0xff]  ;;  %v9338_v58 = vpop.f32.mrb[88].mxu1 }
 0x24b   : > { %10475 = vst [vmem:[#allocation34_spill] sm:$0xff] %v9338_v58  ;;  %v3065_v34 = vpop.f32.mrb[89].mxu1 }
 0x24c   : > { %5686 = vperm.xlu1 %7237, %v5664_v33   ;;  %v9329_v33 = vpop.permute.xlu0 %1048 }
 0x24d   : > { %5701 = vperm.xlu0 %7236, %v5667_v55   ;;  %v7602_v55 = vld [vmem:[%s10433_s1 + $0x578] ss:$36 sps:$4 sm:$0xff]  }
 0x24e   : > { %6729 = vmatmul.mubr.msk.bf16.gmra.mrb[164].mxu1 %vm2756_vm0, %v7602_v55  ;;  %v7547_v55 = vld [vmem:[%s10433_s1 + $0x184] ss:$36 sps:$4 sm:$0xff]  }
 0x24f   : > { %3761 = vmatmul.mubr.bf16.gmra.mrb[4].mxu0 %v7533_v17  ;;  %v5666_v17 = vld [vmem:[%s10440_s8 + $0x28] sm:$0xff] }
 0x250   : > { %3768 = vmatprep.mubr.bf16.mxu0 %v7534_v30  ;;  %v7539_v30 = vld [vmem:[%s10433_s1 + $0xf4] ss:$36 sps:$4 sm:$0xff]   ;;  %5696 = vperm.xlu1 %7237, %v5666_v17   ;;  %v9340_v17 = vpop.permute.xlu1 %1133 }
 0x251   : > { %5814 = vperm.xlu0 %7236, %v5811_v49   ;;  %10476 = vst [vmem:[#allocation35_spill] sm:$0xff] %v9340_v17  ;;  %v9343_v49 = vpop.f32.mrb[90].mxu1  ;;  %v7590_v17 = vld [vmem:[%s10433_s1 + $0x49c] ss:$36 sps:$4 sm:$0xff]  }
 0x252   : > { %10477 = vst [vmem:[#allocation36_spill] sm:$0xff] %v9343_v49  ;;  %v3068_v8 = vpop.f32.mrb[91].mxu1  ;;  %v7609_v49 = vld [vmem:[%s10433_s1 + $0x5c0] ss:$36 sps:$4 sm:$0xff]  }
 0x253   : > { %v9351_v58 = vpop.f32.mrb[92].mxu1  ;;  %v7544_v8 = vld [vmem:[%s10433_s1 + $0x138] ss:$36 sps:$4 sm:$0xff]   ;;  %6732 = vmatprep.mubr.msk.bf16.mxu1 %vm2756_vm0, %v7609_v49 }
 0x254   : > { %5706 = vperm.xlu1 %7237, %v5668_v7   ;;  %10478 = vst [vmem:[#allocation37_spill] sm:$0xff] %v9351_v58  ;;  %v7549_v58 = vld [vmem:[%s10433_s1 + $0x180] ss:$36 sps:$4 sm:$0xff]  }
 0x257   : > { %3769 = vmatmul.mubr.bf16.gmra.mrb[8].mxu0 %v7536_v40  ;;  %v7541_v40 = vld [vmem:[%s10433_s1 + $0xf0] ss:$36 sps:$4 sm:$0xff]  }
 0x258   : > { %3776 = vmatprep.mubr.bf16.mxu0 %v7539_v30  ;;  %v3073_v30 = vpop.f32.mrb[93].mxu1 }
 0x259   : > { %v9353_v7 = vpop.f32.mrb[94].mxu1 }
 0x25a   : > { %10479 = vst [vmem:[#allocation38_spill] sm:$0xff] %v9353_v7  ;;  %v3076_v34 = vpop.f32.mrb[95].mxu1 }
 0x25f   : > { %3777 = vmatmul.mubr.bf16.gmra.mrb[12].mxu0 %v7541_v40  ;;  %v7610_v40 = vld [vmem:[%s10433_s1 + $0x608] ss:$36 sps:$4 sm:$0xff]  }
 0x260   : > { %3784 = vmatprep.mubr.bf16.mxu0 %v7542_v11  ;;  %v9368_v11 = vpop.f32.mrb[96].mxu1  ;;  %6733 = vmatmul.mubr.msk.bf16.gmra.mrb[168].mxu1 %vm2756_vm0, %v7610_v40 }
 0x261   : > { %10480 = vst [vmem:[#allocation39_spill] sm:$0xff] %v9368_v11  ;;  %v3081_v30 = vpop.f32.mrb[97].mxu1  ;;  %v7560_v11 = vld [vmem:[%s10433_s1 + $0x25c] ss:$36 sps:$4 sm:$0xff]  }
 0x262   : > { %v9371_v34 = vpop.f32.mrb[98].mxu1  ;;  %v7555_v30 = vld [vmem:[%s10433_s1 + $0x214] ss:$36 sps:$4 sm:$0xff]  }
 0x263   : > { %10481 = vst [vmem:[#allocation40_spill] sm:$0xff] %v9371_v34  ;;  %v3084_v7 = vpop.f32.mrb[99].mxu1  ;;  %v7617_v34 = vld [vmem:[%s10433_s1 + $0x650] ss:$36 sps:$4 sm:$0xff]  }
 0x264   : > { %v7552_v7 = vld [vmem:[%s10433_s1 + $0x1c8] ss:$36 sps:$4 sm:$0xff]   ;;  %6736 = vmatprep.mubr.msk.bf16.mxu1 %vm2756_vm0, %v7617_v34  ;;  %v7622_v34 = vld [vmem:[%s10433_s1 + $0x6e0] ss:$36 sps:$4 sm:$0xff]  }
 0x267   : > { %3785 = vmatmul.mubr.bf16.gmra.mrb[16].mxu0 %v7544_v8  ;;  %v9379_v8 = vpop.f32.mrb[100].mxu1 }
 0x268   : > { %3792 = vmatprep.mubr.bf16.mxu0 %v7547_v55  ;;  %10482 = vst [vmem:[#allocation41_spill] sm:$0xff] %v9379_v8  ;;  %v3089_v49 = vpop.f32.mrb[101].mxu1  ;;  %v7557_v8 = vld [vmem:[%s10433_s1 + $0x210] ss:$36 sps:$4 sm:$0xff]  }
 0x269   : > { %v9381_v55 = vpop.f32.mrb[102].mxu1 }
 0x26a   : > { %10483 = vst [vmem:[#allocation42_spill] sm:$0xff] %v9381_v55  ;;  %v3092_v40 = vpop.f32.mrb[103].mxu1 }
 0x26f   : > { %3793 = vmatmul.mubr.bf16.gmra.mrb[20].mxu0 %v7549_v58  ;;  %v9396_v58 = vpop.f32.mrb[104].mxu1 }
 0x270   : > { %3800 = vmatprep.mubr.bf16.mxu0 %v7550_v62  ;;  %v7618_v62 = vld [vmem:[%s10433_s1 + $0x698] ss:$36 sps:$4 sm:$0xff]   ;;  %10484 = vst [vmem:[#allocation43_spill] sm:$0xff] %v9396_v58  ;;  %v3097_v49 = vpop.f32.mrb[105].mxu1 }
 0x271   : > { %6737 = vmatmul.mubr.msk.bf16.gmra.mrb[172].mxu1 %vm2756_vm0, %v7618_v62  ;;  %v9399_v40 = vpop.f32.mrb[106].mxu1 }
 0x272   : > { %10485 = vst [vmem:[#allocation44_spill] sm:$0xff] %v9399_v40  ;;  %v3100_v55 = vpop.f32.mrb[107].mxu1  ;;  %6740 = vmatprep.mubr.msk.bf16.mxu1 %vm2756_vm0, %v7622_v34  ;;  %v7565_v34 = vld [vmem:[%s10433_s1 + $0x2a0] ss:$36 sps:$4 sm:$0xff]  }
 0x277   : > { %3801 = vmatmul.mubr.bf16.gmra.mrb[24].mxu0 %v7552_v7  ;;  %v9407_v7 = vpop.f32.mrb[108].mxu1 }
 0x278   : > { %3808 = vmatprep.mubr.bf16.mxu0 %v7555_v30  ;;  %10486 = vst [vmem:[#allocation45_spill] sm:$0xff] %v9407_v7  ;;  %v7623_v30 = vld [vmem:[%s10433_s1 + $0x728] ss:$36 sps:$4 sm:$0xff]   ;;  %v3105_v55 = vpop.f32.mrb[109].mxu1 }
 0x279   : > { %v9415_v62 = vpop.f32.mrb[110].mxu1  ;;  %6741 = vmatmul.mubr.msk.bf16.gmra.mrb[176].mxu1 %vm2756_vm0, %v7623_v30  ;;  %v7563_v7 = vld [vmem:[%s10433_s1 + $0x2a4] ss:$36 sps:$4 sm:$0xff]  }
 0x27a   : > { %10487 = vst [vmem:[#allocation46_spill] sm:$0xff] %v9415_v62  ;;  %v3108_v49 = vpop.f32.mrb[111].mxu1 }
 0x27b   : > { %v9425_v40 = vpop.f32.mrb[112].mxu1  ;;  %v7566_v49 = vld [vmem:[%s10433_s1 + $0x2ec] ss:$36 sps:$4 sm:$0xff]  }
 0x27c   : > { %10488 = vst [vmem:[#allocation47_spill] sm:$0xff] %v9425_v40 }
 0x27f   : > { %3809 = vmatmul.mubr.bf16.gmra.mrb[28].mxu0 %v7557_v8  ;;  %v7562_v8 = vld [vmem:[%s10433_s1 + $0x258] ss:$36 sps:$4 sm:$0xff]  }
 0x280   : > { %3816 = vmatprep.mubr.bf16.mxu0 %v7560_v11  ;;  %v3113_v11 = vpop.f32.mrb[113].mxu1 }
 0x281   : > { %v9427_v55 = vpop.f32.mrb[114].mxu1 }
 0x282   : > { %10489 = vst [vmem:[#allocation48_spill] sm:$0xff] %v9427_v55  ;;  %v3116_v62 = vpop.f32.mrb[115].mxu1 }
 0x283   : > { %v9432_v30 = vpop.f32.mrb[116].mxu1  ;;  %v7568_v62 = vld [vmem:[%s10433_s1 + $0x2e8] ss:$36 sps:$4 sm:$0xff]  }
 0x284   : > { %10490 = vst [vmem:[#allocation49_spill] sm:$0xff] %v9432_v30  ;;  %v3121_v58 = vpop.f32.mrb[117].mxu1  ;;  %v7571_v30 = vld [vmem:[%s10433_s1 + $0x334] ss:$36 sps:$4 sm:$0xff]  }
 0x287   : > { %3817 = vmatmul.mubr.bf16.gmra.mrb[32].mxu0 %v7562_v8  ;;  %v9437_v8 = vpop.f32.mrb[118].mxu1 }
 0x288   : > { %3824 = vmatprep.mubr.bf16.mxu0 %v7563_v7  ;;  %10491 = vst [vmem:[#allocation50_spill] sm:$0xff] %v9437_v8  ;;  %v3124_v7 = vpop.f32.mrb[119].mxu1 }
 0x289   : > { %v9439_v11 = vpop.f32.mrb[120].mxu1 }
 0x28a   : > { %10492 = vst [vmem:[#allocation51_spill] sm:$0xff] %v9439_v11  ;;  %v3418_v55 = vpop.f32.mrb[121].mxu1 }
 0x28b   : > { %v9444_v40 = vpop.f32.mrb[122].mxu1  ;;  %v7634_v55 = vld [vmem:[%s10433_s1 + $0x7b8] ss:$36 sps:$4 sm:$0xff]  }
 0x28c   : > { %10493 = vst [vmem:[#allocation52_spill] sm:$0xff] %v9444_v40  ;;  %v3421_v57 = vpop.f32.mrb[123].mxu1 }
 0x28d   : > { %v9449_v58 = vpop.f32.mrb[124].mxu1 }
 0x28e   : > { %10494 = vst [vmem:[#allocation53_spill] sm:$0xff] %v9449_v58  ;;  %v7573_v58 = vld [vmem:[%s10433_s1 + $0x330] ss:$36 sps:$4 sm:$0xff]  }
 0x28f   : > { %3825 = vmatmul.mubr.bf16.gmra.mrb[36].mxu0 %v7565_v34  ;;  %v7633_v34 = vld [vmem:[%s10433_s1 + $0x770] ss:$36 sps:$4 sm:$0xff]  }
 0x290   : > { %3832 = vmatprep.mubr.bf16.mxu0 %v7566_v49  ;;  %v3426_v49 = vpop.f32.mrb[125].mxu1  ;;  %6744 = vmatprep.mubr.msk.bf16.mxu1 %vm2756_vm0, %v7633_v34  ;;  %v7576_v34 = vld [vmem:[%s10433_s1 + $0x378] ss:$36 sps:$4 sm:$0xff]  }
 0x291   : > { %v9458_v7 = vpop.f32.mrb[126].mxu1  ;;  %6745 = vmatmul.mubr.msk.bf16.gmra.mrb[180].mxu1 %vm2756_vm0, %v7634_v55  ;;  %v7574_v49 = vld [vmem:[%s10433_s1 + $0x37c] ss:$36 sps:$4 sm:$0xff]   ;;  %v7579_v55 = vld [vmem:[%s10433_s1 + $0x3c4] ss:$36 sps:$4 sm:$0xff]  }
 0x292   : > { %10495 = vst [vmem:[#allocation54_spill] sm:$0xff] %v9458_v7  ;;  %v3429_v57 = vpop.f32.mrb[127].mxu1  ;;  %v7582_v7 = vld [vmem:[%s10433_s1 + $0x40c] ss:$36 sps:$4 sm:$0xff]  }
 0x293   : > { %v9467_v40 = vpop.f32.mrb[128].mxu1  ;;  %v7641_v57 = vld [vmem:[%s10433_s1 + $0x800] ss:$36 sps:$4 sm:$0xff]  }
 0x294   : > { %v9469_v11 = vpop.f32.mrb[129].mxu1  ;;  %6748 = vmatprep.mubr.msk.bf16.mxu1 %vm2756_vm0, %v7641_v57  ;;  %v7587_v57 = vld [vmem:[%s10433_s1 + $0x454] ss:$36 sps:$4 sm:$0xff]  }
 0x297   : > { %3833 = vmatmul.mubr.bf16.gmra.mrb[40].mxu0 %v7568_v62  ;;  %v9471_v62 = vpop.f32.mrb[130].mxu1 }
 0x298   : > { %3840 = vmatprep.mubr.bf16.mxu0 %v7571_v30  ;;  %v9473_v30 = vpop.f32.mrb[131].mxu1 }
 0x299   : > { %v9495_v8 = vpop.f32.mrb[132].mxu1 }
 0x29a   : > { %v9497_v44 = vpop.f32.mrb[133].mxu1 }
 0x29b   : > { %v9499_v41 = vpop.f32.mrb[134].mxu1 }
 0x29f   : > { %3841 = vmatmul.mubr.bf16.gmra.mrb[44].mxu0 %v7573_v58  ;;  %v7642_v58 = vld [vmem:[%s10433_s1 + $0x848] ss:$36 sps:$4 sm:$0xff]  }
 0x2a0   : > { %3848 = vmatprep.mubr.bf16.mxu0 %v7574_v49  ;;  %6749 = vmatmul.mubr.msk.bf16.gmra.mrb[184].mxu1 %vm2756_vm0, %v7642_v58  ;;  %v7581_v49 = vld [vmem:[%s10433_s1 + $0x3c0] ss:$36 sps:$4 sm:$0xff]   ;;  %v7649_v58 = vld [vmem:[%s10433_s1 + $0x890] ss:$36 sps:$4 sm:$0xff]  }
 0x2a1   : > { %6752 = vmatprep.mubr.msk.bf16.mxu1 %vm2756_vm0, %v7649_v58  ;;  %v7597_v58 = vld [vmem:[%s10433_s1 + $0x4e0] ss:$36 sps:$4 sm:$0xff]  }
 0x2a7   : > { %3849 = vmatmul.mubr.bf16.gmra.mrb[48].mxu0 %v7576_v34  ;;  %v9501_v34 = vpop.f32.mrb[135].mxu1 }
 0x2a8   : > { %3856 = vmatprep.mubr.bf16.mxu0 %v7579_v55  ;;  %v7584_v55 = vld [vmem:[%s10433_s1 + $0x408] ss:$36 sps:$4 sm:$0xff]   ;;  %6753 = vmatmul.mubr.msk.bf16.gmra.mrb[188].mxu1 %vm2756_vm0, %v7650_v24  ;;  %v7592_v24 = vld [vmem:[%s10433_s1 + $0x498] ss:$36 sps:$4 sm:$0xff]  }
 0x2af   : > { %3857 = vmatmul.mubr.bf16.gmra.mrb[52].mxu0 %v7581_v49  ;;  %v9520_v49 = vpop.f32.mrb[136].mxu1 }
 0x2b0   : > { %3864 = vmatprep.mubr.bf16.mxu0 %v7582_v7  ;;  %v7589_v7 = vld [vmem:[%s10433_s1 + $0x450] ss:$36 sps:$4 sm:$0xff]   ;;  %v9525_v21 = vpop.f32.mrb[137].mxu1 }
 0x2b1   : > { %v9527_v16 = vpop.f32.mrb[138].mxu1 }
 0x2b7   : > { %3865 = vmatmul.mubr.bf16.gmra.mrb[56].mxu0 %v7584_v55  ;;  %v9529_v55 = vpop.f32.mrb[139].mxu1 }
 0x2b8   : > { %3872 = vmatprep.mubr.bf16.mxu0 %v7587_v57  ;;  %v7595_v57 = vld [vmem:[%s10433_s1 + $0x4e4] ss:$36 sps:$4 sm:$0xff]  }
 0x2bf   : > { %3873 = vmatmul.mubr.bf16.gmra.mrb[60].mxu0 %v7589_v7  ;;  %v9543_v7 = vpop.f32.mrb[140].mxu1 }
 0x2c0   : > { %3880 = vmatprep.mubr.bf16.mxu0 %v7590_v17  ;;  %v9545_v17 = vpop.f32.mrb[141].mxu1 }
 0x2c1   : > { %v9547_v42 = vpop.f32.mrb[142].mxu1 }
 0x2c2   : > { %v9549_v63 = vpop.f32.mrb[143].mxu1 }
 0x2c3   : > { %v9560_v54 = vpop.f32.mrb[144].mxu1 }
 0x2c4   : > { %10496 = vst [vmem:[#allocation55_spill] sm:$0xff] %v9560_v54 }
 0x2c7   : > { %3881 = vmatmul.mubr.bf16.gmra.mrb[64].mxu0 %v7592_v24  ;;  %v7600_v24 = vld [vmem:[%s10433_s1 + $0x528] ss:$36 sps:$4 sm:$0xff]  }
 0x2c8   : > { %3888 = vmatprep.mubr.bf16.mxu0 %v7595_v57  ;;  %v7603_v57 = vld [vmem:[%s10433_s1 + $0x574] ss:$36 sps:$4 sm:$0xff]  }
 0x2cf   : > { %3889 = vmatmul.mubr.bf16.gmra.mrb[68].mxu0 %v7597_v58  ;;  %v9565_v58 = vpop.f32.mrb[145].mxu1 }
 0x2d0   : > { %3896 = vmatprep.mubr.bf16.mxu0 %v7598_v4  ;;  %v7606_v4 = vld [vmem:[%s10433_s1 + $0x5bc] ss:$36 sps:$4 sm:$0xff]   ;;  %v9567_v6 = vpop.f32.mrb[146].mxu1 }
 0x2d1   : > { %10497 = vst [vmem:[#allocation56_spill] sm:$0xff] %v9567_v6  ;;  %v9569_v45 = vpop.f32.mrb[147].mxu1  ;;  %v7638_v6 = vld [vmem:[%s10433_s1 + $0x7fc] ss:$36 sps:$4 sm:$0xff]  }
 0x2d7   : > { %3897 = vmatmul.mubr.bf16.gmra.mrb[72].mxu0 %v7600_v24  ;;  %v7608_v24 = vld [vmem:[%s10433_s1 + $0x5b8] ss:$36 sps:$4 sm:$0xff]  }
 0x2d8   : > { %3904 = vmatprep.mubr.bf16.mxu0 %v7603_v57  ;;  %v7611_v57 = vld [vmem:[%s10433_s1 + $0x604] ss:$36 sps:$4 sm:$0xff]  }
 0x2df   : > { %3905 = vmatmul.mubr.bf16.gmra.mrb[76].mxu0 %v7605_v61  ;;  %v9583_v61 = vpop.f32.mrb[148].mxu1 }
 0x2e0   : > { %3912 = vmatprep.mubr.bf16.mxu0 %v7606_v4  ;;  %10498 = vst [vmem:[#allocation57_spill] sm:$0xff] %v9583_v61  ;;  %v9585_v4 = vpop.f32.mrb[149].mxu1  ;;  %v7621_v61 = vld [vmem:[%s10433_s1 + $0x690] ss:$36 sps:$4 sm:$0xff]  }
 0x2e1   : > { %10499 = vst [vmem:[#allocation58_spill] sm:$0xff] %v9585_v4  ;;  %v9587_v15 = vpop.f32.mrb[150].mxu1 }
 0x2e2   : > { %10500 = vst [vmem:[#allocation59_spill] sm:$0xff] %v9587_v15  ;;  %v9589_v25 = vpop.f32.mrb[151].mxu1 }
 0x2e3   : > { %10501 = vst [vmem:[#allocation60_spill] sm:$0xff] %v9589_v25 }
 0x2e5   : > { %v9603_v15 = vpop.f32.mrb[152].mxu1 }
 0x2e6   : > { %10502 = vst [vmem:[#allocation61_spill] sm:$0xff] %v9603_v15  ;;  %v7629_v15 = vld [vmem:[%s10433_s1 + $0x720] ss:$36 sps:$4 sm:$0xff]  }
 0x2e7   : > { %3913 = vmatmul.mubr.bf16.gmra.mrb[80].mxu0 %v7608_v24  ;;  %v7616_v24 = vld [vmem:[%s10433_s1 + $0x648] ss:$36 sps:$4 sm:$0xff]  }
 0x2e8   : > { %3920 = vmatprep.mubr.bf16.mxu0 %v7611_v57  ;;  %v7619_v57 = vld [vmem:[%s10433_s1 + $0x694] ss:$36 sps:$4 sm:$0xff]  }
 0x2ef   : > { %3921 = vmatmul.mubr.bf16.gmra.mrb[84].mxu0 %v7613_v36  ;;  %v7624_v36 = vld [vmem:[%s10433_s1 + $0x6dc] ss:$36 sps:$4 sm:$0xff]  }
 0x2f0   : > { %3928 = vmatprep.mubr.bf16.mxu0 %v7614_v31  ;;  %v9605_v31 = vpop.f32.mrb[153].mxu1 }
 0x2f1   : > { %10503 = vst [vmem:[#allocation62_spill] sm:$0xff] %v9605_v31  ;;  %v9607_v25 = vpop.f32.mrb[154].mxu1 }
 0x2f2   : > { %10504 = vst [vmem:[#allocation63_spill] sm:$0xff] %v9607_v25  ;;  %v9609_v4 = vpop.f32.mrb[155].mxu1 }
 0x2f3   : > { %10505 = vst [vmem:[#allocation64_spill] sm:$0xff] %v9609_v4  ;;  %v9623_v25 = vpop.f32.mrb[156].mxu1 }
 0x2f4   : > { %10506 = vst [vmem:[#allocation65_spill] sm:$0xff] %v9623_v25  ;;  %v2888_v25 = vadd.f32 %v8700_v18, %v9113_v53 }
 0x2f7   : > { %3929 = vmatmul.mubr.bf16.gmra.mrb[88].mxu0 %v7616_v24  ;;  %v7626_v24 = vld [vmem:[%s10433_s1 + $0x6d8] ss:$36 sps:$4 sm:$0xff]  }
 0x2f8   : > { %3936 = vmatprep.mubr.bf16.mxu0 %v7619_v57  ;;  %v7627_v57 = vld [vmem:[%s10433_s1 + $0x724] ss:$36 sps:$4 sm:$0xff]  }
 0x2ff   : > { %3937 = vmatmul.mubr.bf16.gmra.mrb[92].mxu0 %v7621_v61  ;;  %v7630_v61 = vld [vmem:[%s10433_s1 + $0x76c] ss:$36 sps:$4 sm:$0xff]  }
 0x300   : > { %3944 = vmatprep.mubr.bf16.mxu0 %v7624_v36  ;;  %v9625_v36 = vpop.f32.mrb[157].mxu1 }
 0x301   : > { %10507 = vst [vmem:[#allocation66_spill] sm:$0xff] %v9625_v36  ;;  %v9627_v4 = vpop.f32.mrb[158].mxu1 }
 0x302   : > { %10508 = vst [vmem:[#allocation67_spill] sm:$0xff] %v9627_v4  ;;  %v9629_v31 = vpop.f32.mrb[159].mxu1 }
 0x303   : > { %10509 = vst [vmem:[#allocation68_spill] sm:$0xff] %v9629_v31 }
 0x307   : > { %3945 = vmatmul.mubr.bf16.gmra.mrb[96].mxu0 %v7626_v24  ;;  %v7632_v24 = vld [vmem:[%s10433_s1 + $0x768] ss:$36 sps:$4 sm:$0xff]  }
 0x308   : > { %3952 = vmatprep.mubr.bf16.mxu0 %v7627_v57  ;;  %v7635_v57 = vld [vmem:[%s10433_s1 + $0x7b4] ss:$36 sps:$4 sm:$0xff]  }
 0x30f   : > { %3953 = vmatmul.mubr.bf16.gmra.mrb[100].mxu0 %v7629_v15  ;;  %v2891_v15 = vadd.f32 %v8707_v23, %v9130_v3 }
 0x310   : > { %3960 = vmatprep.mubr.bf16.mxu0 %v7630_v61  ;;  %v7637_v61 = vld [vmem:[%s10433_s1 + $0x7b0] ss:$36 sps:$4 sm:$0xff]  }
 0x317   : > { %3961 = vmatmul.mubr.bf16.gmra.mrb[104].mxu0 %v7632_v24  ;;  %v9647_v24 = vpop.f32.mrb[160].mxu1 }
 0x318   : > { %3968 = vmatprep.mubr.bf16.mxu0 %v7635_v57  ;;  %10510 = vst [vmem:[#allocation69_spill] sm:$0xff] %v9647_v24  ;;  %v9650_v54 = vpop.f32.mrb[161].mxu1 }
 0x319   : > { %v9652_v23 = vpop.f32.mrb[162].mxu1 }
 0x31a   : > { %v3754_v36 = vpop.f32.mrb[0].mxu0  ;;  %10511 = vst [vmem:[#allocation70_spill] sm:$0xff] %v9652_v23 }
 0x31b   : > { %v6825_v4 = vadd.f32 %v3754_v36, %v2888_v25  ;;  %v3756_v31 = vpop.f32.mrb[1].mxu0  ;;  %v7656_v25 = vld [vmem:[%s10435_s3 + $0x4] ss:$16 sps:$4 sm:$0xff]  }
 0x31c   : > { %v3757_v37 = vpop.f32.mrb[2].mxu0  ;;  %v9658_v31 = vpop.f32.mrb[163].mxu1  ;;  %5002 = vmatprep.mubr.bf16.mxu1 %v7656_v25 }
 0x31d   : > { %v6827_v57 = vadd.f32 %v3757_v37, %v2891_v15  ;;  %v4044_v18 = vadd.f32 %v6825_v4, %v9469_v11  ;;  %v3759_v53 = vpop.f32.mrb[3].mxu0  ;;  %v2896_v37 = vadd.f32 %v8731_v14, %v9144_v19  ;;  %v2899_v15 = vadd.f32 %v8738_v38, %v9177_v47 }
 0x31e   : > { %v2904_v38 = vadd.f32 %v8764_v43, %v9192_v2 }
 0x31f   : > { %v4047_v3 = vadd.f32 %v6827_v57, %v9473_v30  ;;  %3969 = vmatmul.mubr.bf16.gmra.mrb[108].mxu0 %v7637_v61  ;;  %v4298_v11 = vmax.f32 %v4044_v18, 0.0  ;;  %v7640_v30 = vld [vmem:[%s10433_s1 + $0x7f8] ss:$36 sps:$4 sm:$0xff]  }
 0x320   : > { %3976 = vmatprep.mubr.bf16.mxu0 %v7638_v6  ;;  %v7643_v6 = vld [vmem:[%s10433_s1 + $0x844] ss:$36 sps:$4 sm:$0xff]  }
 0x321   : > { %v4299_v4 = vmax.f32 %v4047_v3, 0.0  ;;  %v2907_v3 = vadd.f32 %v8771_v52, %v9228_v50  ;;  %v9686_v43 = vpop.f32.mrb[164].mxu1 }
 0x322   : > { %v3762_v36 = vpop.f32.mrb[4].mxu0  ;;  %v9689_v52 = vpop.f32.mrb[165].mxu1 }
 0x323   : > { %v9664_v53 = vpack.c.bf16 %v4299_v4, %v4298_v11  ;;  %v6829_v23 = vadd.f32 %v3762_v36, %v2896_v37  ;;  %v3764_v24 = vpop.f32.mrb[5].mxu0  ;;  %v9691_v50 = vpop.f32.mrb[166].mxu1 }
 0x324   : > { %v3765_v61 = vpop.f32.mrb[6].mxu0 }
 0x325   : > { %v4052_v14 = vadd.f32 %v6829_v23, %v9467_v40  ;;  %v6831_v19 = vadd.f32 %v3765_v61, %v2899_v15  ;;  %v3767_v57 = vpop.f32.mrb[7].mxu0  ;;  %v7645_v40 = vld [vmem:[%s10433_s1 + $0x840] ss:$36 sps:$4 sm:$0xff]   ;;  %v7646_v23 = vld [vmem:[%s10433_s1 + $0x88c] ss:$36 sps:$4 sm:$0xff]   ;;  %v9694_v61 = vpop.f32.mrb[167].mxu1 }
 0x327   : > { %v4055_v18 = vadd.f32 %v6831_v19, %v9471_v62  ;;  %3977 = vmatmul.mubr.bf16.gmra.mrb[112].mxu0 %v7640_v30  ;;  %v4300_v47 = vmax.f32 %v4052_v14, 0.0 }
 0x328   : > { %3984 = vmatprep.mubr.bf16.mxu0 %v7643_v6  ;;  %v2912_v6 = vadd.f32 %v8798_v0, %v9239_v10 }
 0x329   : > { %v4301_v24 = vmax.f32 %v4055_v18, 0.0 }
 0x32a   : > { %v3770_v25 = vpop.f32.mrb[8].mxu0 }
 0x32b   : > { %v9678_v37 = vpack.c.bf16 %v4301_v24, %v4300_v47  ;;  %v6833_v11 = vadd.f32 %v3770_v25, %v2904_v38  ;;  %v3772_v4 = vpop.f32.mrb[9].mxu0  ;;  %v7651_v25 = vld [vmem:[%s10433_s1 + $0x8d4] ss:$36 sps:$4 sm:$0xff]  }
 0x32c   : > { %v3773_v62 = vpop.f32.mrb[10].mxu0 }
 0x32d   : > { %v6835_v2 = vadd.f32 %v3773_v62, %v2907_v3  ;;  %v4060_v36 = vadd.f32 %v6833_v11, %v9497_v44  ;;  %v3775_v15 = vpop.f32.mrb[11].mxu0  ;;  %v2915_v44 = vadd.f32 %v8806_v9, %v9270_v22  ;;  %v1054_v9 = vpop.permute.xlu1 %1053  ;;  %v2920_v22 = vadd.f32 %v8832_v26, %v9290_v12 }
 0x32e   : > { %v9712_v62 = vpop.permute.xlu0 %1138 }
 0x32f   : > { %v4063_v30 = vadd.f32 %v6835_v2, %v9501_v34  ;;  %3985 = vmatmul.mubr.bf16.gmra.mrb[116].mxu0 %v7645_v40  ;;  %v4302_v14 = vmax.f32 %v4060_v36, 0.0  ;;  %v7648_v34 = vld [vmem:[%s10433_s1 + $0x888] ss:$36 sps:$4 sm:$0xff]   ;;  %v2923_v2 = vadd.f32 %v8837_v29, %v9318_v51 }
 0x330   : > { %3992 = vmatprep.mubr.bf16.mxu0 %v7646_v23 }
 0x331   : > { %v4303_v19 = vmax.f32 %v4063_v30, 0.0  ;;  %v9728_v29 = vpop.permute.xlu1 %1143 }
 0x332   : > { %v3778_v57 = vpop.f32.mrb[12].mxu0 }
 0x333   : > { %v9700_v18 = vpack.c.bf16 %v4303_v19, %v4302_v14  ;;  %v6837_v38 = vadd.f32 %v3778_v57, %v2912_v6  ;;  %v3780_v47 = vpop.f32.mrb[13].mxu0  ;;  %v9721_v30 = vpop.f32.mrb[168].mxu1 }
 0x334   : > { %v3781_v24 = vpop.f32.mrb[14].mxu0  ;;  %v9723_v26 = vpop.f32.mrb[169].mxu1 }
 0x335   : > { %v4068_v0 = vadd.f32 %v6837_v38, %v9495_v8  ;;  %v6839_v10 = vadd.f32 %v3781_v24, %v2915_v44  ;;  %v3783_v3 = vpop.f32.mrb[15].mxu0  ;;  %v9726_v57 = vpop.f32.mrb[170].mxu1  ;;  %v2928_v38 = vadd.f32 %v8855_v20, %v9329_v33 }
 0x336   : > { %v9730_v51 = vpop.f32.mrb[171].mxu1  ;;  %v1059_v24 = vpop.permute.xlu0 %1058 }
 0x337   : > { %v4071_v11 = vadd.f32 %v6839_v10, %v9499_v41  ;;  %3993 = vmatmul.mubr.bf16.gmra.mrb[120].mxu0 %v7648_v34  ;;  %v4304_v4 = vmax.f32 %v4068_v0, 0.0  ;;  %v7653_v41 = vld [vmem:[%s10433_s1 + $0x8d0] ss:$36 sps:$4 sm:$0xff]   ;;  %v2931_v0 = vadd.f32 %v8860_v27, %v1054_v9  ;;  %v2936_v20 = vadd.f32 %v8884_v46, %v1059_v24 }
 0x338   : > { %4000 = vmatprep.mubr.bf16.mxu0 %v7651_v25 }
 0x339   : > { %v4305_v40 = vmax.f32 %v4071_v11, 0.0  ;;  %v1064_v11 = vpop.permute.xlu1 %1063 }
 0x33a   : > { %v3786_v23 = vpop.f32.mrb[16].mxu0  ;;  %v2939_v9 = vadd.f32 %v8890_v48, %v1064_v11 }
 0x33b   : > { %v9716_v36 = vpack.c.bf16 %v4305_v40, %v4304_v4  ;;  %v6841_v8 = vadd.f32 %v3786_v23, %v2920_v22  ;;  %v3788_v15 = vpop.f32.mrb[17].mxu0 }
 0x33c   : > { %v3789_v6 = vpop.f32.mrb[18].mxu0 }
 0x33d   : > { %v6843_v12 = vadd.f32 %v3789_v6, %v2923_v2  ;;  %v4076_v14 = vadd.f32 %v6841_v8, %v9525_v21  ;;  %v3791_v19 = vpop.f32.mrb[19].mxu0  ;;  %v9740_v2 = vpop.permute.xlu0 %1148 }
 0x33e   : > { %v9743_v15 = vpop.permute.xlu1 %1153 }
 0x33f   : > { %v4079_v44 = vadd.f32 %v6843_v12, %v9529_v55  ;;  %4001 = vmatmul.mubr.bf16.gmra.mrb[124].mxu0 %v7653_v41  ;;  %v4306_v47 = vmax.f32 %v4076_v14, 0.0 }
 0x341   : > { %v4307_v34 = vmax.f32 %v4079_v44, 0.0 }
 0x342   : > { %v3794_v25 = vpop.f32.mrb[20].mxu0  ;;  %v1074_v24 = vpop.permute.xlu1 %1073 }
 0x343   : > { %v9736_v21 = vpack.c.bf16 %v4307_v34, %v4306_v47  ;;  %v6845_v10 = vadd.f32 %v3794_v25, %v2928_v38  ;;  %v3796_v3 = vpop.f32.mrb[21].mxu0  ;;  %v1069_v47 = vpop.permute.xlu0 %1068  ;;  %v2947_v11 = vadd.f32 %v8912_v59, %v1074_v24 }
 0x344   : > { %v3797_v22 = vpop.f32.mrb[22].mxu0  ;;  %v2944_v25 = vadd.f32 %v8907_v56, %v1069_v47  ;;  %v2952_v56 = vadd.f32 %v8933_v5, %v9079_v35 }
 0x345   : > { %v4084_v4 = vadd.f32 %v6845_v10, %v9520_v49  ;;  %v6847_v40 = vadd.f32 %v3797_v22, %v2931_v0  ;;  %v3799_v55 = vpop.f32.mrb[23].mxu0  ;;  %v9748_v49 = vpop.f32.mrb[172].mxu1 }
 0x346   : > { %v9750_v19 = vpop.f32.mrb[173].mxu1 }
 0x347   : > { %v4087_v23 = vadd.f32 %v6847_v40, %v9527_v16  ;;  %v4308_v33 = vmax.f32 %v4084_v4, 0.0  ;;  %v9753_v38 = vpop.f32.mrb[174].mxu1 }
 0x348   : > { %v9755_v34 = vpop.f32.mrb[175].mxu1 }
 0x349   : > { %v4309_v8 = vmax.f32 %v4087_v23, 0.0 }
 0x34a   : > { %v3802_v27 = vpop.f32.mrb[24].mxu0 }
 0x34b   : > { %v9746_v41 = vpack.c.bf16 %v4309_v8, %v4308_v33  ;;  %v6849_v6 = vadd.f32 %v3802_v27, %v2936_v20  ;;  %v3804_v12 = vpop.f32.mrb[25].mxu0 }
 0x34c   : > { %v3805_v14 = vpop.f32.mrb[26].mxu0  ;;  %v2955_v12 = vadd.f32 %v8942_v13, %v9102_v39  ;;  %v2960_v13 = vadd.f32 %v8956_v1, %v9123_v60  ;;  %v10514_v1 = vld [vmem:[#allocation17_spill] sm:$0xff]  ;;  %v10515_v60 = vld [vmem:[#allocation3_spill] sm:$0xff] }
 0x34d   : > { %v6851_v16 = vadd.f32 %v3805_v14, %v2939_v9  ;;  %v4092_v44 = vadd.f32 %v6849_v6, %v9545_v17  ;;  %v3807_v46 = vpop.f32.mrb[27].mxu0  ;;  %v9770_v14 = vpop.f32.mrb[176].mxu1 }
 0x34f   : > { %v4095_v48 = vadd.f32 %v6851_v16, %v9549_v63  ;;  %v4310_v0 = vmax.f32 %v4092_v44, 0.0  ;;  %v9772_v16 = vpop.f32.mrb[177].mxu1 }
 0x350   : > { %v9775_v47 = vpop.f32.mrb[178].mxu1 }
 0x351   : > { %v4311_v10 = vmax.f32 %v4095_v48, 0.0  ;;  %v9777_v5 = vpop.f32.mrb[179].mxu1 }
 0x352   : > { %v3810_v3 = vpop.f32.mrb[28].mxu0 }
 0x353   : > { %v9760_v22 = vpack.c.bf16 %v4311_v10, %v4310_v0  ;;  %v6853_v4 = vadd.f32 %v3810_v3, %v2944_v25  ;;  %v3812_v17 = vpop.f32.mrb[29].mxu0  ;;  %v2963_v10 = vadd.f32 %v8961_v28, %v9158_v32  ;;  %v10516_v28 = vld [vmem:[#allocation20_spill] sm:$0xff] }
 0x354   : > { %v3813_v40 = vpop.f32.mrb[30].mxu0  ;;  %v10517_v32 = vld [vmem:[#allocation4_spill] sm:$0xff] }
 0x355   : > { %v4100_v55 = vadd.f32 %v6853_v4, %v9543_v7  ;;  %v6855_v23 = vadd.f32 %v3813_v40, %v2947_v11  ;;  %v3815_v20 = vpop.f32.mrb[31].mxu0  ;;  %v10512_v11 = vld [vmem:[#allocation55_spill] sm:$0xff] }
 0x357   : > { %v4103_v33 = vadd.f32 %v6855_v23, %v9547_v42  ;;  %v4312_v63 = vmax.f32 %v4100_v55, 0.0 }
 0x359   : > { %v4313_v8 = vmax.f32 %v4103_v33, 0.0  ;;  %v2968_v33 = vadd.f32 %v10515_v60, %v10514_v1 }
 0x35a   : > { %v3818_v27 = vpop.f32.mrb[32].mxu0 }
 0x35b   : > { %v9766_v9 = vpack.c.bf16 %v4313_v8, %v4312_v63  ;;  %v6857_v59 = vadd.f32 %v3818_v27, %v2952_v56  ;;  %v3820_v6 = vpop.f32.mrb[33].mxu0  ;;  %v2971_v27 = vadd.f32 %v10517_v32, %v10516_v28 }
 0x35c   : > { %v3821_v7 = vpop.f32.mrb[34].mxu0 }
 0x35d   : > { %v4108_v42 = vadd.f32 %v6857_v59, %v9565_v58  ;;  %v6859_v44 = vadd.f32 %v3821_v7, %v2955_v12  ;;  %v3823_v46 = vpop.f32.mrb[35].mxu0 }
 0x35f   : > { %v4111_v35 = vadd.f32 %v6859_v44, %v9569_v45  ;;  %v4314_v48 = vmax.f32 %v4108_v42, 0.0  ;;  %v10513_v45 = vld [vmem:[#allocation56_spill] sm:$0xff]  ;;  %v10518_v42 = vld [vmem:[#allocation58_spill] sm:$0xff] }
 0x361   : > { %v4315_v24 = vmax.f32 %v4111_v35, 0.0 }
 0x362   : > { %v3826_v39 = vpop.f32.mrb[36].mxu0 }
 0x363   : > { %v6861_v25 = vadd.f32 %v3826_v39, %v2960_v13  ;;  %v3828_v0 = vpop.f32.mrb[37].mxu0  ;;  %v4370_v58 = vpack.c.bf16 %v4315_v24, %v4314_v48  ;;  %v10519_v24 = vld [vmem:[#allocation60_spill] sm:$0xff] }
 0x364   : > { %v3829_v3 = vpop.f32.mrb[38].mxu0  ;;  %v9791_v6 = vpop.f32.mrb[180].mxu1  ;;  %v10520_v0 = vld [vmem:[#allocation22_spill] sm:$0xff] }
 0x365   : > { %v4116_v4 = vadd.f32 %v6861_v25, %v10512_v11  ;;  %v6863_v17 = vadd.f32 %v3829_v3, %v2963_v10  ;;  %v3831_v40 = vpop.f32.mrb[39].mxu0  ;;  %6385 = vmatprep.subr.bf16.mxu1 %v4370_v58  ;;  %v9793_v7 = vpop.f32.mrb[181].mxu1  ;;  %v10521_v10 = vld [vmem:[#allocation5_spill] sm:$0xff] }
 0x366   : > { %6386 = vmatpush3.bf16.msra.mxu1 %v9664_v53  ;;  %v9796_v35 = vpop.f32.mrb[182].mxu1  ;;  %v2976_v58 = vadd.f32 %v10521_v10, %v10520_v0  ;;  %v10522_v40 = vld [vmem:[#allocation25_spill] sm:$0xff] }
 0x367   : > { %v4119_v55 = vadd.f32 %v6863_v17, %v10513_v45  ;;  %v4316_v23 = vmax.f32 %v4116_v4, 0.0  ;;  %v9799_v48 = vpop.f32.mrb[183].mxu1  ;;  %v10523_v45 = vld [vmem:[#allocation6_spill] sm:$0xff] }
 0x369   : > { %v4317_v20 = vmax.f32 %v4119_v55, 0.0  ;;  %v2979_v55 = vadd.f32 %v10523_v45, %v10522_v40 }
 0x36a   : > { %v3834_v63 = vpop.f32.mrb[40].mxu0 }
 0x36b   : > { %v6865_v8 = vadd.f32 %v3834_v63, %v2968_v33  ;;  %v3836_v56 = vpop.f32.mrb[41].mxu0  ;;  %v4371_v59 = vpack.c.bf16 %v4317_v20, %v4316_v23  ;;  %v9806_v23 = vpop.permute.xlu0 %1238  ;;  %v10525_v63 = vld [vmem:[#allocation59_spill] sm:$0xff] }
 0x36c   : > { %v3837_v12 = vpop.f32.mrb[42].mxu0  ;;  %v9811_v56 = vpop.permute.xlu1 %1243 }
 0x36d   : > { %v6867_v53 = vadd.f32 %v3837_v12, %v2971_v27  ;;  %v4124_v44 = vadd.f32 %v6865_v8, %v10518_v42  ;;  %v3839_v46 = vpop.f32.mrb[43].mxu0  ;;  %6387 = vmatprep.subr.bf16.mxu1 %v4371_v59  ;;  %v10526_v27 = vld [vmem:[#allocation27_spill] sm:$0xff] }
 0x36e   : > { %6388 = vmatpush3.bf16.msra.mxu1 %v9678_v37  ;;  %v10524_v37 = vld [vmem:[#allocation57_spill] sm:$0xff]  ;;  %v10527_v59 = vld [vmem:[#allocation7_spill] sm:$0xff] }
 0x36f   : > { %v4127_v13 = vadd.f32 %v6867_v53, %v10519_v24  ;;  %v4318_v39 = vmax.f32 %v4124_v44, 0.0  ;;  %v2984_v12 = vadd.f32 %v10527_v59, %v10526_v27  ;;  %v9815_v53 = vpop.permute.xlu0 %1158  ;;  %v10528_v24 = vld [vmem:[#allocation30_spill] sm:$0xff] }
 0x370   : > { %v9826_v40 = vpop.permute.xlu1 %1163 }
 0x371   : > { %v4319_v25 = vmax.f32 %v4127_v13, 0.0  ;;  %v10529_v13 = vld [vmem:[#allocation8_spill] sm:$0xff] }
 0x372   : > { %v3842_v3 = vpop.f32.mrb[44].mxu0 }
 0x373   : > { %v4372_v11 = vpack.c.bf16 %v4319_v25, %v4318_v39  ;;  %v6869_v4 = vadd.f32 %v3842_v3, %v2976_v58  ;;  %v3844_v17 = vpop.f32.mrb[45].mxu0  ;;  %v2987_v39 = vadd.f32 %v10529_v13, %v10528_v24  ;;  %v9819_v0 = vpop.f32.mrb[184].mxu1  ;;  %v10530_v3 = vld [vmem:[#allocation62_spill] sm:$0xff]  ;;  %v10536_v24 = vld [vmem:[#allocation61_spill] sm:$0xff] }
 0x374   : > { %v3845_v20 = vpop.f32.mrb[46].mxu0  ;;  %v9821_v10 = vpop.f32.mrb[185].mxu1 }
 0x375   : > { %v4132_v1 = vadd.f32 %v6869_v4, %v10524_v37  ;;  %v6871_v60 = vadd.f32 %v3845_v20, %v2979_v55  ;;  %v3847_v33 = vpop.f32.mrb[47].mxu0  ;;  %6389 = vmatprep.subr.bf16.mxu1 %v4372_v11  ;;  %v9824_v17 = vpop.f32.mrb[186].mxu1  ;;  %v10531_v55 = vld [vmem:[#allocation64_spill] sm:$0xff] }
 0x376   : > { %6390 = vmatpush3.bf16.msra.mxu1 %v9700_v18  ;;  %v9829_v45 = vpop.f32.mrb[187].mxu1  ;;  %v10533_v33 = vld [vmem:[#allocation9_spill] sm:$0xff] }
 0x377   : > { %v4135_v8 = vadd.f32 %v6871_v60, %v10525_v63  ;;  %v4320_v28 = vmax.f32 %v4132_v1, 0.0  ;;  %v10532_v60 = vld [vmem:[#allocation32_spill] sm:$0xff] }
 0x378   : > { %v2992_v63 = vadd.f32 %v10533_v33, %v10532_v60 }
 0x379   : > { %v4321_v32 = vmax.f32 %v4135_v8, 0.0  ;;  %v9834_v8 = vpop.permute.xlu0 %1248 }
 0x37a   : > { %v3850_v42 = vpop.f32.mrb[48].mxu0 }
 0x37b   : > { %v6873_v44 = vadd.f32 %v3850_v42, %v2984_v12  ;;  %v3852_v46 = vpop.f32.mrb[49].mxu0  ;;  %v4373_v25 = vpack.c.bf16 %v4321_v32, %v4320_v28  ;;  %v10534_v12 = vld [vmem:[#allocation35_spill] sm:$0xff]  ;;  %v10535_v42 = vld [vmem:[#allocation10_spill] sm:$0xff] }
 0x37c   : > { %v3853_v18 = vpop.f32.mrb[50].mxu0  ;;  %v9838_v46 = vpop.permute.xlu1 %1253 }
 0x37d   : > { %v6875_v58 = vadd.f32 %v3853_v18, %v2987_v39  ;;  %v4140_v11 = vadd.f32 %v6873_v44, %v10530_v3  ;;  %v3855_v4 = vpop.f32.mrb[51].mxu0  ;;  %6391 = vmatprep.subr.bf16.mxu1 %v4373_v25  ;;  %v2995_v44 = vadd.f32 %v10535_v42, %v10534_v12  ;;  %v10537_v18 = vld [vmem:[#allocation63_spill] sm:$0xff]  ;;  %v1169_v3 = vpop.permute.xlu0 %1168  ;;  %v10540_v42 = vld [vmem:[#allocation66_spill] sm:$0xff] }
 0x37e   : > { %6392 = vmatpush3.bf16.msra.mxu1 %v9716_v36 }
 0x37f   : > { %v4143_v20 = vadd.f32 %v6875_v58, %v10531_v55  ;;  %v4322_v37 = vmax.f32 %v4140_v11, 0.0  ;;  %v10538_v55 = vld [vmem:[#allocation11_spill] sm:$0xff] }
 0x381   : > { %v4323_v1 = vmax.f32 %v4143_v20, 0.0  ;;  %v3000_v20 = vadd.f32 %v10538_v55, %v9712_v62 }
 0x382   : > { %v3858_v28 = vpop.f32.mrb[52].mxu0 }
 0x383   : > { %v4374_v32 = vpack.c.bf16 %v4323_v1, %v4322_v37  ;;  %v6877_v27 = vadd.f32 %v3858_v28, %v2992_v63  ;;  %v3860_v59 = vpop.f32.mrb[53].mxu0  ;;  %v9845_v37 = vpop.permute.xlu1 %1173  ;;  %v10539_v63 = vld [vmem:[#allocation12_spill] sm:$0xff] }
 0x384   : > { %v3861_v36 = vpop.f32.mrb[54].mxu0  ;;  %v3003_v28 = vadd.f32 %v10539_v63, %v9728_v29  ;;  %v10541_v29 = vld [vmem:[#allocation68_spill] sm:$0xff] }
 0x385   : > { %v4148_v13 = vadd.f32 %v6877_v27, %v10536_v24  ;;  %v6879_v39 = vadd.f32 %v3861_v36, %v2995_v44  ;;  %v3863_v25 = vpop.f32.mrb[55].mxu0  ;;  %6393 = vmatprep.subr.bf16.mxu1 %v4374_v32  ;;  %v9849_v32 = vpop.f32.mrb[188].mxu1 }
 0x386   : > { %6394 = vmatpush3.bf16.msra.mxu1 %v9736_v21  ;;  %v9851_v59 = vpop.f32.mrb[189].mxu1  ;;  %v9856_v24 = vpop.permute.xlu0 %1258 }
 0x387   : > { %v4151_v58 = vadd.f32 %v6879_v39, %v10537_v18  ;;  %v4324_v11 = vmax.f32 %v4148_v13, 0.0  ;;  %v9854_v62 = vpop.f32.mrb[190].mxu1  ;;  %v9862_v25 = vpop.permute.xlu1 %1263 }
 0x388   : > { %v9859_v13 = vpop.f32.mrb[191].mxu1 }
 0x389   : > { %v4325_v4 = vmax.f32 %v4151_v58, 0.0 }
 0x38a   : > { %v3866_v1 = vpop.f32.mrb[56].mxu0 }
 0x38b   : > { %v6881_v60 = vadd.f32 %v3866_v1, %v3000_v20  ;;  %v3868_v33 = vpop.f32.mrb[57].mxu0  ;;  %v4375_v27 = vpack.c.bf16 %v4325_v4, %v4324_v11  ;;  %v10542_v11 = vld [vmem:[#allocation13_spill] sm:$0xff] }
 0x38c   : > { %v3869_v21 = vpop.f32.mrb[58].mxu0  ;;  %v3008_v4 = vadd.f32 %v10542_v11, %v9740_v2  ;;  %v10543_v33 = vld [vmem:[#allocation14_spill] sm:$0xff]  ;;  %v10546_v2 = vld [vmem:[#allocation15_spill] sm:$0xff] }
 0x38d   : > { %v6883_v12 = vadd.f32 %v3869_v21, %v3003_v28  ;;  %v4156_v44 = vadd.f32 %v6881_v60, %v10540_v42  ;;  %v3871_v36 = vpop.f32.mrb[59].mxu0  ;;  %6395 = vmatprep.subr.bf16.mxu1 %v4375_v27  ;;  %v3011_v63 = vadd.f32 %v10543_v33, %v9743_v15  ;;  %v1179_v28 = vpop.permute.xlu0 %1178  ;;  %v10544_v27 = vld [vmem:[#allocation65_spill] sm:$0xff] }
 0x38e   : > { %6396 = vmatpush3.bf16.msra.mxu1 %v9746_v41  ;;  %v1184_v36 = vpop.permute.xlu1 %1183 }
 0x38f   : > { %v4159_v39 = vadd.f32 %v6883_v12, %v10541_v29  ;;  %v4326_v18 = vmax.f32 %v4156_v44, 0.0  ;;  %v10545_v44 = vld [vmem:[#allocation67_spill] sm:$0xff] }
 0x391   : > { %v4327_v58 = vmax.f32 %v4159_v39, 0.0  ;;  %v3016_v39 = vadd.f32 %v10546_v2, %v9815_v53  ;;  %v9873_v11 = vpop.permute.xlu0 %1268  ;;  %v7654_v53 = vld [vmem:[%s10435_s3] ss:$16 sps:$4 sm:$0xff]  }
 0x392   : > { %v3874_v55 = vpop.f32.mrb[60].mxu0 }
 0x393   : > { %v4376_v20 = vpack.c.bf16 %v4327_v58, %v4326_v18  ;;  %v6885_v1 = vadd.f32 %v3874_v55, %v3008_v4  ;;  %v3876_v60 = vpop.f32.mrb[61].mxu0  ;;  %v10547_v4 = vld [vmem:[#allocation16_spill] sm:$0xff] }
 0x394   : > { %v3877_v41 = vpop.f32.mrb[62].mxu0  ;;  %v3019_v55 = vadd.f32 %v10547_v4, %v9826_v40  ;;  %v7657_v40 = vld [vmem:[%s10435_s3 + $0x24] ss:$16 sps:$4 sm:$0xff]  }
 0x395   : > { %v4164_v21 = vadd.f32 %v6885_v1, %v10544_v27  ;;  %v6887_v42 = vadd.f32 %v3877_v41, %v3011_v63  ;;  %v3879_v12 = vpop.f32.mrb[63].mxu0  ;;  %6397 = vmatprep.subr.bf16.mxu1 %v4376_v20  ;;  %v9877_v20 = vpop.permute.xlu1 %1273 }
 0x396   : > { %6398 = vmatpush3.bf16.msra.mxu1 %v9760_v22  ;;  %v10548_v12 = vld [vmem:[#allocation18_spill] sm:$0xff] }
 0x397   : > { %v4167_v29 = vadd.f32 %v6887_v42, %v10545_v44  ;;  %v4328_v18 = vmax.f32 %v4164_v21, 0.0  ;;  %v1189_v42 = vpop.permute.xlu0 %1188  ;;  %v3024_v44 = vadd.f32 %v10548_v12, %v1169_v3  ;;  %v7659_v3 = vld [vmem:[%s10435_s3 + $0x20] ss:$16 sps:$4 sm:$0xff]  }
 0x399   : > { %v4329_v58 = vmax.f32 %v4167_v29, 0.0 }
 0x39a   : > { %v3882_v15 = vpop.f32.mrb[64].mxu0 }
 0x39b   : > { %v6889_v1 = vadd.f32 %v3882_v15, %v3016_v39  ;;  %v3884_v60 = vpop.f32.mrb[65].mxu0  ;;  %v4377_v33 = vpack.c.bf16 %v4329_v58, %v4328_v18  ;;  %v10549_v18 = vld [vmem:[#allocation19_spill] sm:$0xff] }
 0x39c   : > { %v3885_v63 = vpop.f32.mrb[66].mxu0  ;;  %v3027_v58 = vadd.f32 %v10549_v18, %v9845_v37  ;;  %v10551_v37 = vld [vmem:[#allocation70_spill] sm:$0xff] }
 0x39d   : > { %v6891_v22 = vadd.f32 %v3885_v63, %v3019_v55  ;;  %v4172_v41 = vadd.f32 %v6889_v1, %v9650_v54  ;;  %v3887_v27 = vpop.f32.mrb[67].mxu0  ;;  %6399 = vmatprep.subr.bf16.mxu1 %v4377_v33  ;;  %v1194_v54 = vpop.permute.xlu1 %1193  ;;  %v10550_v1 = vld [vmem:[#allocation69_spill] sm:$0xff] }
 0x39e   : > { %6400 = vmatpush3.bf16.msra.mxu1 %v9766_v9  ;;  %v9897_v63 = vpop.permute.xlu0 %1278 }
 0x39f   : > { %v4175_v21 = vadd.f32 %v6891_v22, %v9658_v31  ;;  %v4330_v29 = vmax.f32 %v4172_v41, 0.0  ;;  %v7660_v22 = vld [vmem:[%s10435_s3 + $0x44] ss:$16 sps:$4 sm:$0xff]  }
 0x3a1   : > { %v4331_v2 = vmax.f32 %v4175_v21, 0.0  ;;  %5003 = vmatmul.mubr.bf16.vlgmr.msra.gmra.mrb[192].mxu1 %v7654_v53  ;;  %v9903_v27 = vpop.permute.xlu1 %1283  ;;  %v10552_v53 = vld [vmem:[#allocation21_spill] sm:$0xff] }
 0x3a2   : > { %v3890_v39 = vpop.f32.mrb[68].mxu0  ;;  %5010 = vmatprep.mubr.bf16.mxu1 %v7657_v40  ;;  %v3032_v40 = vadd.f32 %v10552_v53, %v1179_v28  ;;  %v7662_v28 = vld [vmem:[%s10435_s3 + $0x40] ss:$16 sps:$4 sm:$0xff]  }
 0x3a3   : > { %v9891_v15 = vpack.c.bf16 %v4331_v2, %v4330_v29  ;;  %v6893_v9 = vadd.f32 %v3890_v39, %v3024_v44  ;;  %v3892_v4 = vpop.f32.mrb[69].mxu0  ;;  %v10553_v29 = vld [vmem:[#allocation23_spill] sm:$0xff] }
 0x3a4   : > { %v3893_v55 = vpop.f32.mrb[70].mxu0  ;;  %v3035_v2 = vadd.f32 %v10553_v29, %v1184_v36 }
 0x3a5   : > { %v4180_v60 = vadd.f32 %v6893_v9, %v10550_v1  ;;  %v6895_v31 = vadd.f32 %v3893_v55, %v3027_v58  ;;  %v3895_v33 = vpop.f32.mrb[71].mxu0  ;;  %v1199_v9 = vpop.permute.xlu0 %1198 }
 0x3a6   : > { %v7663_v33 = vld [vmem:[%s10435_s3 + $0x64] ss:$16 sps:$4 sm:$0xff]  }
 0x3a7   : > { %v4183_v41 = vadd.f32 %v6895_v31, %v10551_v37  ;;  %v4332_v21 = vmax.f32 %v4180_v60, 0.0  ;;  %v1204_v60 = vpop.permute.xlu1 %1203 }
 0x3a9   : > { %v4333_v12 = vmax.f32 %v4183_v41, 0.0  ;;  %5011 = vmatmul.mubr.bf16.gmra.mrb[196].mxu1 %v7659_v3  ;;  %v10554_v3 = vld [vmem:[#allocation24_spill] sm:$0xff]  ;;  %v9918_v53 = vpop.permute.xlu0 %1288 }
 0x3aa   : > { %v3898_v44 = vpop.f32.mrb[72].mxu0  ;;  %5018 = vmatprep.mubr.bf16.mxu1 %v7660_v22  ;;  %v3040_v22 = vadd.f32 %v10554_v3, %v1189_v42 }
 0x3ab   : > { %v9907_v39 = vpack.c.bf16 %v4333_v12, %v4332_v21  ;;  %v6897_v18 = vadd.f32 %v3898_v44, %v3032_v40  ;;  %v3900_v58 = vpop.f32.mrb[73].mxu0  ;;  %v10555_v40 = vld [vmem:[#allocation26_spill] sm:$0xff] }
 0x3ac   : > { %v3901_v4 = vpop.f32.mrb[74].mxu0  ;;  %v3043_v21 = vadd.f32 %v10555_v40, %v1194_v54 }
 0x3ad   : > { %v6899_v55 = vadd.f32 %v3901_v4, %v3035_v2  ;;  %v4188_v1 = vadd.f32 %v6897_v18, %v9689_v52  ;;  %v3903_v31 = vpop.f32.mrb[75].mxu0  ;;  %v9923_v2 = vpop.permute.xlu1 %1293  ;;  %v7665_v4 = vld [vmem:[%s10435_s3 + $0x60] ss:$16 sps:$4 sm:$0xff]  }
 0x3ae   : > { %v10556_v31 = vld [vmem:[#allocation28_spill] sm:$0xff] }
 0x3af   : > { %v4191_v36 = vadd.f32 %v6899_v55, %v9694_v61  ;;  %v4334_v37 = vmax.f32 %v4188_v1, 0.0  ;;  %v7666_v55 = vld [vmem:[%s10435_s3 + $0x84] ss:$16 sps:$4 sm:$0xff]   ;;  %v1209_v1 = vpop.permute.xlu0 %1208 }
 0x3b1   : > { %v4335_v41 = vmax.f32 %v4191_v36, 0.0  ;;  %5019 = vmatmul.mubr.bf16.gmra.mrb[200].mxu1 %v7662_v28  ;;  %v3048_v28 = vadd.f32 %v10556_v31, %v1199_v9  ;;  %v1214_v3 = vpop.permute.xlu1 %1213  ;;  %v7668_v9 = vld [vmem:[%s10435_s3 + $0x80] ss:$16 sps:$4 sm:$0xff]  }
 0x3b2   : > { %v3906_v52 = vpop.f32.mrb[76].mxu0  ;;  %5026 = vmatprep.mubr.bf16.mxu1 %v7663_v33  ;;  %v10559_v31 = vld [vmem:[#allocation33_spill] sm:$0xff] }
 0x3b3   : > { %v9921_v12 = vpack.c.bf16 %v4335_v41, %v4334_v37  ;;  %v6901_v44 = vadd.f32 %v3906_v52, %v3040_v22  ;;  %v3908_v29 = vpop.f32.mrb[77].mxu0  ;;  %v10557_v22 = vld [vmem:[#allocation29_spill] sm:$0xff] }
 0x3b4   : > { %v3909_v18 = vpop.f32.mrb[78].mxu0  ;;  %v3051_v37 = vadd.f32 %v10557_v22, %v1204_v60 }
 0x3b5   : > { %v4196_v61 = vadd.f32 %v6901_v44, %v9686_v43  ;;  %v6903_v58 = vadd.f32 %v3909_v18, %v3043_v21  ;;  %v3911_v42 = vpop.f32.mrb[79].mxu0  ;;  %v9941_v18 = vpop.permute.xlu0 %1298 }
 0x3b6   : > { %v10558_v42 = vld [vmem:[#allocation31_spill] sm:$0xff] }
 0x3b7   : > { %v4199_v54 = vadd.f32 %v6903_v58, %v9691_v50  ;;  %v4336_v33 = vmax.f32 %v4196_v61, 0.0  ;;  %v7669_v61 = vld [vmem:[%s10435_s3 + $0xa4] ss:$16 sps:$4 sm:$0xff]   ;;  %v9947_v58 = vpop.permute.xlu1 %1303 }
 0x3b9   : > { %v4337_v36 = vmax.f32 %v4199_v54, 0.0  ;;  %5027 = vmatmul.mubr.bf16.gmra.mrb[204].mxu1 %v7665_v4  ;;  %v3056_v4 = vadd.f32 %v10558_v42, %v1209_v1  ;;  %v1219_v22 = vpop.permute.xlu0 %1218  ;;  %v7671_v1 = vld [vmem:[%s10435_s3 + $0xa0] ss:$16 sps:$4 sm:$0xff]  }
 0x3ba   : > { %v3914_v43 = vpop.f32.mrb[80].mxu0  ;;  %5034 = vmatprep.mubr.bf16.mxu1 %v7666_v55  ;;  %v10561_v42 = vld [vmem:[#allocation36_spill] sm:$0xff] }
 0x3bb   : > { %v9935_v41 = vpack.c.bf16 %v4337_v36, %v4336_v33  ;;  %v6905_v52 = vadd.f32 %v3914_v43, %v3048_v28  ;;  %v3916_v40 = vpop.f32.mrb[81].mxu0  ;;  %v3059_v28 = vadd.f32 %v10559_v31, %v1214_v3 }
 0x3bc   : > { %v3917_v21 = vpop.f32.mrb[82].mxu0 }
 0x3bd   : > { %v6907_v44 = vadd.f32 %v3917_v21, %v3051_v37  ;;  %v4204_v29 = vadd.f32 %v6905_v52, %v9723_v26  ;;  %v3919_v50 = vpop.f32.mrb[83].mxu0  ;;  %v1224_v21 = vpop.permute.xlu1 %1223 }
 0x3bf   : > { %v4207_v60 = vadd.f32 %v6907_v44, %v9730_v51  ;;  %v4338_v55 = vmax.f32 %v4204_v29, 0.0  ;;  %v7672_v44 = vld [vmem:[%s10435_s3 + $0xc4] ss:$16 sps:$4 sm:$0xff]   ;;  %v10560_v29 = vld [vmem:[#allocation34_spill] sm:$0xff] }
 0x3c0   : > { %v3064_v50 = vadd.f32 %v10560_v29, %v1219_v22  ;;  %v7674_v22 = vld [vmem:[%s10435_s3 + $0xc0] ss:$16 sps:$4 sm:$0xff]  }
 0x3c1   : > { %v4339_v54 = vmax.f32 %v4207_v60, 0.0  ;;  %5035 = vmatmul.mubr.bf16.gmra.mrb[208].mxu1 %v7668_v9  ;;  %v9962_v60 = vpop.permute.xlu0 %1308  ;;  %v9967_v31 = vpop.permute.xlu1 %1313 }
 0x3c2   : > { %v3922_v26 = vpop.f32.mrb[84].mxu0  ;;  %5042 = vmatprep.mubr.bf16.mxu1 %v7669_v61 }
 0x3c3   : > { %v9951_v33 = vpack.c.bf16 %v4339_v54, %v4338_v55  ;;  %v6909_v36 = vadd.f32 %v3922_v26, %v3056_v4  ;;  %v3924_v43 = vpop.f32.mrb[85].mxu0  ;;  %v3067_v4 = vadd.f32 %v10561_v42, %v1224_v21 }
 0x3c4   : > { %v3925_v37 = vpop.f32.mrb[86].mxu0 }
 0x3c5   : > { %v4212_v52 = vadd.f32 %v6909_v36, %v9721_v30  ;;  %v6911_v51 = vadd.f32 %v3925_v37, %v3059_v28  ;;  %v3927_v40 = vpop.f32.mrb[87].mxu0  ;;  %v7675_v37 = vld [vmem:[%s10435_s3 + $0xe4] ss:$16 sps:$4 sm:$0xff]  }
 0x3c6   : > { %v10562_v40 = vld [vmem:[#allocation37_spill] sm:$0xff] }
 0x3c7   : > { %v4215_v3 = vadd.f32 %v6911_v51, %v9726_v57  ;;  %v4340_v9 = vmax.f32 %v4212_v52, 0.0  ;;  %v1229_v51 = vpop.permute.xlu0 %1228 }
 0x3c9   : > { %v4341_v61 = vmax.f32 %v4215_v3, 0.0  ;;  %5043 = vmatmul.mubr.bf16.gmra.mrb[212].mxu1 %v7671_v1  ;;  %v3072_v1 = vadd.f32 %v10562_v40, %v1229_v51  ;;  %v1234_v3 = vpop.permute.xlu1 %1233 }
 0x3ca   : > { %v3930_v30 = vpop.f32.mrb[88].mxu0  ;;  %5050 = vmatprep.mubr.bf16.mxu1 %v7672_v44 }
 0x3cb   : > { %v9965_v55 = vpack.c.bf16 %v4341_v61, %v4340_v9  ;;  %v6913_v54 = vadd.f32 %v3930_v30, %v3064_v50  ;;  %v3932_v26 = vpop.f32.mrb[89].mxu0 }
 0x3cc   : > { %v3933_v28 = vpop.f32.mrb[90].mxu0  ;;  %v7677_v26 = vld [vmem:[%s10435_s3 + $0xe0] ss:$16 sps:$4 sm:$0xff]  }
 0x3cd   : > { %v6915_v36 = vadd.f32 %v3933_v28, %v3067_v4  ;;  %v4220_v57 = vadd.f32 %v6913_v54, %v9750_v19  ;;  %v3935_v43 = vpop.f32.mrb[91].mxu0  ;;  %v10563_v19 = vld [vmem:[#allocation38_spill] sm:$0xff]  ;;  %v7678_v28 = vld [vmem:[%s10435_s3 + $0x104] ss:$16 sps:$4 sm:$0xff]  }
 0x3ce   : > { %v3075_v50 = vadd.f32 %v10563_v19, %v1234_v3  ;;  %v7680_v19 = vld [vmem:[%s10435_s3 + $0x100] ss:$16 sps:$4 sm:$0xff]  }
 0x3cf   : > { %v4223_v52 = vadd.f32 %v6915_v36, %v9755_v34  ;;  %v4342_v21 = vmax.f32 %v4220_v57, 0.0 }
 0x3d1   : > { %v4343_v44 = vmax.f32 %v4223_v52, 0.0  ;;  %5051 = vmatmul.mubr.bf16.gmra.mrb[216].mxu1 %v7674_v22  ;;  %v10564_v22 = vld [vmem:[#allocation39_spill] sm:$0xff] }
 0x3d2   : > { %v3938_v29 = vpop.f32.mrb[92].mxu0  ;;  %5058 = vmatprep.mubr.bf16.mxu1 %v7675_v37  ;;  %v3080_v37 = vadd.f32 %v10564_v22, %v9806_v23  ;;  %v7681_v23 = vld [vmem:[%s10435_s3 + $0x124] ss:$16 sps:$4 sm:$0xff]  }
 0x3d3   : > { %v9979_v9 = vpack.c.bf16 %v4343_v44, %v4342_v21  ;;  %v6917_v61 = vadd.f32 %v3938_v29, %v3072_v1  ;;  %v3940_v30 = vpop.f32.mrb[93].mxu0  ;;  %v10565_v1 = vld [vmem:[#allocation40_spill] sm:$0xff] }
 0x3d4   : > { %v3941_v42 = vpop.f32.mrb[94].mxu0  ;;  %v3083_v21 = vadd.f32 %v10565_v1, %v9811_v56  ;;  %v10566_v56 = vld [vmem:[#allocation41_spill] sm:$0xff] }
 0x3d5   : > { %v4228_v4 = vadd.f32 %v6917_v61, %v9748_v49  ;;  %v6919_v54 = vadd.f32 %v3941_v42, %v3075_v50  ;;  %v3943_v34 = vpop.f32.mrb[95].mxu0  ;;  %v3088_v42 = vadd.f32 %v10566_v56, %v9834_v8  ;;  %v7684_v8 = vld [vmem:[%s10435_s3 + $0x144] ss:$16 sps:$4 sm:$0xff]  }
 0x3d6   : > { %v10567_v34 = vld [vmem:[#allocation42_spill] sm:$0xff] }
 0x3d7   : > { %v4231_v36 = vadd.f32 %v6919_v54, %v9753_v38  ;;  %v4344_v57 = vmax.f32 %v4228_v4, 0.0 }
 0x3d9   : > { %v4345_v43 = vmax.f32 %v4231_v36, 0.0  ;;  %5059 = vmatmul.mubr.bf16.gmra.mrb[220].mxu1 %v7677_v26  ;;  %v3091_v26 = vadd.f32 %v10567_v34, %v9838_v46 }
 0x3da   : > { %v3946_v52 = vpop.f32.mrb[96].mxu0  ;;  %5066 = vmatprep.mubr.bf16.mxu1 %v7678_v28 }
 0x3db   : > { %v9991_v49 = vpack.c.bf16 %v4345_v43, %v4344_v57  ;;  %v6921_v51 = vadd.f32 %v3946_v52, %v3080_v37  ;;  %v3948_v40 = vpop.f32.mrb[97].mxu0 }
 0x3dc   : > { %v3949_v44 = vpop.f32.mrb[98].mxu0 }
 0x3dd   : > { %v4236_v3 = vadd.f32 %v6921_v51, %v9772_v16  ;;  %v6923_v29 = vadd.f32 %v3949_v44, %v3083_v21  ;;  %v3951_v38 = vpop.f32.mrb[99].mxu0  ;;  %v10569_v44 = vld [vmem:[#allocation44_spill] sm:$0xff] }
 0x3df   : > { %v4239_v50 = vadd.f32 %v6923_v29, %v9777_v5  ;;  %v4346_v61 = vmax.f32 %v4236_v3, 0.0  ;;  %v7683_v5 = vld [vmem:[%s10435_s3 + $0x120] ss:$16 sps:$4 sm:$0xff]   ;;  %v3099_v3 = vadd.f32 %v10569_v44, %v9862_v25 }
 0x3e0   : > { %v10570_v25 = vld [vmem:[#allocation45_spill] sm:$0xff] }
 0x3e1   : > { %v4347_v30 = vmax.f32 %v4239_v50, 0.0  ;;  %5067 = vmatmul.mubr.bf16.gmra.mrb[224].mxu1 %v7680_v19 }
 0x3e2   : > { %v3954_v4 = vpop.f32.mrb[100].mxu0  ;;  %5074 = vmatprep.mubr.bf16.mxu1 %v7681_v23 }
 0x3e3   : > { %v6925_v16 = vadd.f32 %v3954_v4, %v3088_v42  ;;  %v3956_v54 = vpop.f32.mrb[101].mxu0  ;;  %v4386_v28 = vpack.c.bf16 %v4347_v30, %v4346_v61  ;;  %v3104_v61 = vadd.f32 %v10570_v25, %v9873_v11  ;;  %v10571_v42 = vld [vmem:[#allocation46_spill] sm:$0xff]  ;;  %v7690_v11 = vld [vmem:[%s10435_s3 + $0x184] ss:$16 sps:$4 sm:$0xff]  }
 0x3e4   : > { %v3957_v36 = vpop.f32.mrb[102].mxu0  ;;  %v3107_v4 = vadd.f32 %v10571_v42, %v9877_v20  ;;  %v10577_v42 = vld [vmem:[#allocation52_spill] sm:$0xff] }
 0x3e5   : > { %v4244_v57 = vadd.f32 %v6925_v16, %v9770_v14  ;;  %v6927_v43 = vadd.f32 %v3957_v36, %v3091_v26  ;;  %v3959_v22 = vpop.f32.mrb[103].mxu0  ;;  %6497 = vmatprep.subr.bf16.mxu1 %v4386_v28  ;;  %v10568_v14 = vld [vmem:[#allocation43_spill] sm:$0xff] }
 0x3e6   : > { %6498 = vmatpush3.bf16.msra.mxu1 %v9891_v15  ;;  %v3096_v51 = vadd.f32 %v10568_v14, %v9856_v24  ;;  %v7687_v24 = vld [vmem:[%s10435_s3 + $0x164] ss:$16 sps:$4 sm:$0xff]  }
 0x3e7   : > { %v4247_v37 = vadd.f32 %v6927_v43, %v9775_v47  ;;  %v4348_v46 = vmax.f32 %v4244_v57, 0.0  ;;  %v7686_v47 = vld [vmem:[%s10435_s3 + $0x140] ss:$16 sps:$4 sm:$0xff]  }
 0x3e8   : > { %v10572_v57 = vld [vmem:[#allocation47_spill] sm:$0xff] }
 0x3e9   : > { %v4349_v52 = vmax.f32 %v4247_v37, 0.0  ;;  %5075 = vmatmul.mubr.bf16.gmra.mrb[228].mxu1 %v7683_v5  ;;  %v3112_v43 = vadd.f32 %v10572_v57, %v9897_v63  ;;  %v7693_v63 = vld [vmem:[%s10435_s3 + $0x1a4] ss:$16 sps:$4 sm:$0xff]   ;;  %v10579_v57 = vld [vmem:[#allocation54_spill] sm:$0xff] }
 0x3ea   : > { %v3962_v40 = vpop.f32.mrb[104].mxu0  ;;  %5082 = vmatprep.mubr.bf16.mxu1 %v7684_v8  ;;  %v10573_v8 = vld [vmem:[#allocation48_spill] sm:$0xff] }
 0x3eb   : > { %v6929_v1 = vadd.f32 %v3962_v40, %v3096_v51  ;;  %v3964_v21 = vpop.f32.mrb[105].mxu0  ;;  %v4387_v15 = vpack.c.bf16 %v4349_v52, %v4348_v46  ;;  %v3115_v37 = vadd.f32 %v10573_v8, %v9903_v27 }
 0x3ec   : > { %v3965_v29 = vpop.f32.mrb[106].mxu0  ;;  %v10574_v21 = vld [vmem:[#allocation49_spill] sm:$0xff] }
 0x3ed   : > { %v6931_v38 = vadd.f32 %v3965_v29, %v3099_v3  ;;  %v4252_v19 = vadd.f32 %v6929_v1, %v9793_v7  ;;  %v3967_v23 = vpop.f32.mrb[107].mxu0  ;;  %6499 = vmatprep.subr.bf16.mxu1 %v4387_v15  ;;  %v3120_v44 = vadd.f32 %v10574_v21, %v9918_v53  ;;  %v10575_v29 = vld [vmem:[#allocation50_spill] sm:$0xff]  ;;  %v7696_v53 = vld [vmem:[%s10435_s3 + $0x1c4] ss:$16 sps:$4 sm:$0xff]  }
 0x3ee   : > { %6500 = vmatpush3.bf16.msra.mxu1 %v9907_v39  ;;  %v7717_v21 = vld [vmem:[%s10435_s3 + $0xa8] ss:$16 sps:$4 sm:$0xff]  }
 0x3ef   : > { %v4255_v50 = vadd.f32 %v6931_v38, %v9799_v48  ;;  %v4350_v30 = vmax.f32 %v4252_v19, 0.0  ;;  %v7689_v48 = vld [vmem:[%s10435_s3 + $0x160] ss:$16 sps:$4 sm:$0xff]   ;;  %v3123_v38 = vadd.f32 %v10575_v29, %v9923_v2  ;;  %v7728_v29 = vld [vmem:[%s10435_s3 + $0x10c] ss:$16 sps:$4 sm:$0xff]  }
 0x3f1   : > { %v4351_v56 = vmax.f32 %v4255_v50, 0.0  ;;  %5083 = vmatmul.mubr.bf16.gmra.mrb[232].mxu1 %v7686_v47 }
 0x3f2   : > { %v3970_v7 = vpop.f32.mrb[108].mxu0  ;;  %5090 = vmatprep.mubr.bf16.mxu1 %v7687_v24 }
 0x3f3   : > { %v4388_v16 = vpack.c.bf16 %v4351_v56, %v4350_v30  ;;  %v6933_v54 = vadd.f32 %v3970_v7, %v3104_v61  ;;  %v3972_v39 = vpop.f32.mrb[109].mxu0  ;;  %v10576_v61 = vld [vmem:[#allocation51_spill] sm:$0xff] }
 0x3f4   : > { %v3973_v34 = vpop.f32.mrb[110].mxu0  ;;  %v6944_v30 = vadd.f32 %v10576_v61, %v9941_v18  ;;  %v7699_v18 = vld [vmem:[%s10435_s3 + $0x1e4] ss:$16 sps:$4 sm:$0xff]   ;;  %v7740_v61 = vld [vmem:[%s10435_s3 + $0x18c] ss:$16 sps:$4 sm:$0xff]  }
 0x3f5   : > { %v4260_v26 = vadd.f32 %v6933_v54, %v9791_v6  ;;  %v6935_v28 = vadd.f32 %v3973_v34, %v3107_v4  ;;  %v3975_v36 = vpop.f32.mrb[111].mxu0  ;;  %6501 = vmatprep.subr.bf16.mxu1 %v4388_v16  ;;  %v6946_v4 = vadd.f32 %v10577_v42, %v9947_v58  ;;  %v7738_v42 = vld [vmem:[%s10435_s3 + $0x188] ss:$16 sps:$4 sm:$0xff]  }
 0x3f6   : > { %6502 = vmatpush3.bf16.msra.mxu1 %v9921_v12  ;;  %v10578_v36 = vld [vmem:[#allocation53_spill] sm:$0xff] }
 0x3f7   : > { %v4263_v20 = vadd.f32 %v6935_v28, %v9796_v35  ;;  %v4352_v22 = vmax.f32 %v4260_v26, 0.0  ;;  %v7692_v35 = vld [vmem:[%s10435_s3 + $0x180] ss:$16 sps:$4 sm:$0xff]  }
 0x3f9   : > { %v4353_v6 = vmax.f32 %v4263_v20, 0.0  ;;  %5091 = vmatmul.mubr.bf16.gmra.mrb[236].mxu1 %v7689_v48  ;;  %v6948_v48 = vadd.f32 %v10578_v36, %v9962_v60  ;;  %v7704_v60 = vld [vmem:[%s10435_s3 + $0xc] ss:$16 sps:$4 sm:$0xff]  }
 0x3fa   : > { %v3978_v5 = vpop.f32.mrb[112].mxu0  ;;  %5098 = vmatprep.mubr.bf16.mxu1 %v7690_v11 }
 0x3fb   : > { %v6937_v46 = vadd.f32 %v3978_v5, %v3112_v43  ;;  %v3980_v52 = vpop.f32.mrb[113].mxu0  ;;  %v4389_v12 = vpack.c.bf16 %v4353_v6, %v4352_v22  ;;  %v6950_v43 = vadd.f32 %v10579_v57, %v9967_v31 }
 0x3fc   : > { %v3981_v14 = vpop.f32.mrb[114].mxu0 }
 0x3fd   : > { %v6939_v51 = vadd.f32 %v3981_v14, %v3115_v37  ;;  %v4268_v40 = vadd.f32 %v6937_v46, %v9821_v10  ;;  %v3983_v1 = vpop.f32.mrb[115].mxu0  ;;  %6503 = vmatprep.subr.bf16.mxu1 %v4389_v12  ;;  %v7702_v14 = vld [vmem:[%s10435_s3 + $0x8] ss:$16 sps:$4 sm:$0xff]  }
 0x3fe   : > { %6504 = vmatpush3.bf16.msra.mxu1 %v9935_v41  ;;  %v7711_v1 = vld [vmem:[%s10435_s3 + $0x68] ss:$16 sps:$4 sm:$0xff]  }
 0x3ff   : > { %v4271_v27 = vadd.f32 %v6939_v51, %v9829_v45  ;;  %v4354_v3 = vmax.f32 %v4268_v40, 0.0  ;;  %v7695_v45 = vld [vmem:[%s10435_s3 + $0x1a0] ss:$16 sps:$4 sm:$0xff]   ;;  %v7710_v51 = vld [vmem:[%s10435_s3 + $0x4c] ss:$16 sps:$4 sm:$0xff]  }
 0x400   : > { %v7713_v40 = vld [vmem:[%s10435_s3 + $0x6c] ss:$16 sps:$4 sm:$0xff]  }
 0x401   : > { %v4355_v15 = vmax.f32 %v4271_v27, 0.0  ;;  %5099 = vmatmul.mubr.bf16.gmra.mrb[240].mxu1 %v7692_v35  ;;  %v7716_v35 = vld [vmem:[%s10435_s3 + $0x8c] ss:$16 sps:$4 sm:$0xff]  }
 0x402   : > { %v3986_v10 = vpop.f32.mrb[116].mxu0  ;;  %5106 = vmatprep.mubr.bf16.mxu1 %v7693_v63  ;;  %v7714_v63 = vld [vmem:[%s10435_s3 + $0x88] ss:$16 sps:$4 sm:$0xff]   ;;  %v7719_v27 = vld [vmem:[%s10435_s3 + $0xac] ss:$16 sps:$4 sm:$0xff]  }
 0x403   : > { %v4390_v19 = vpack.c.bf16 %v4355_v15, %v4354_v3  ;;  %v6941_v23 = vadd.f32 %v3986_v10, %v3120_v44  ;;  %v3988_v41 = vpop.f32.mrb[117].mxu0  ;;  %v7722_v44 = vld [vmem:[%s10435_s3 + $0xcc] ss:$16 sps:$4 sm:$0xff]   ;;  %v7720_v3 = vld [vmem:[%s10435_s3 + $0xc8] ss:$16 sps:$4 sm:$0xff]  }
 0x404   : > { %v3989_v47 = vpop.f32.mrb[118].mxu0  ;;  %v7725_v15 = vld [vmem:[%s10435_s3 + $0xec] ss:$16 sps:$4 sm:$0xff]   ;;  %v7723_v10 = vld [vmem:[%s10435_s3 + $0xe8] ss:$16 sps:$4 sm:$0xff]  }
 0x405   : > { %v4276_v24 = vadd.f32 %v6941_v23, %v9819_v0  ;;  %v6943_v50 = vadd.f32 %v3989_v47, %v3123_v38  ;;  %v3991_v25 = vpop.f32.mrb[119].mxu0  ;;  %6505 = vmatprep.subr.bf16.mxu1 %v4390_v19  ;;  %v7726_v38 = vld [vmem:[%s10435_s3 + $0x108] ss:$16 sps:$4 sm:$0xff]   ;;  %v7731_v19 = vld [vmem:[%s10435_s3 + $0x12c] ss:$16 sps:$4 sm:$0xff]  }
 0x406   : > { %6506 = vmatpush3.bf16.msra.mxu1 %v9951_v33  ;;  %v7729_v23 = vld [vmem:[%s10435_s3 + $0x128] ss:$16 sps:$4 sm:$0xff]   ;;  %v7734_v41 = vld [vmem:[%s10435_s3 + $0x14c] ss:$16 sps:$4 sm:$0xff]  }
 0x407   : > { %v4279_v2 = vadd.f32 %v6943_v50, %v9824_v17  ;;  %v4356_v56 = vmax.f32 %v4276_v24, 0.0  ;;  %v7698_v17 = vld [vmem:[%s10435_s3 + $0x1c0] ss:$16 sps:$4 sm:$0xff]   ;;  %v7732_v47 = vld [vmem:[%s10435_s3 + $0x148] ss:$16 sps:$4 sm:$0xff]  }
 0x408   : > { %v7737_v24 = vld [vmem:[%s10435_s3 + $0x16c] ss:$16 sps:$4 sm:$0xff]  }
 0x409   : > { %v4357_v0 = vmax.f32 %v4279_v2, 0.0  ;;  %5107 = vmatmul.mubr.bf16.gmra.mrb[244].mxu1 %v7695_v45  ;;  %v7735_v45 = vld [vmem:[%s10435_s3 + $0x168] ss:$16 sps:$4 sm:$0xff]  }
 0x40a   : > { %v3994_v7 = vpop.f32.mrb[120].mxu0  ;;  %5114 = vmatprep.mubr.bf16.mxu1 %v7696_v53 }
 0x40b   : > { %v6945_v16 = vadd.f32 %v6944_v30, %v3994_v7  ;;  %v3996_v54 = vpop.f32.mrb[121].mxu0  ;;  %v4391_v33 = vpack.c.bf16 %v4357_v0, %v4356_v56 }
 0x40c   : > { %v3997_v39 = vpop.f32.mrb[122].mxu0  ;;  %v7743_v54 = vld [vmem:[%s10435_s3 + $0x1ac] ss:$16 sps:$4 sm:$0xff]  }
 0x40d   : > { %v6947_v34 = vadd.f32 %v6946_v4, %v3997_v39  ;;  %v4284_v26 = vadd.f32 %v6945_v16, %v9851_v59  ;;  %v3999_v28 = vpop.f32.mrb[123].mxu0  ;;  %6507 = vmatprep.subr.bf16.mxu1 %v4391_v33 }
 0x40e   : > { %6508 = vmatpush3.bf16.msra.mxu1 %v9965_v55  ;;  %v7741_v28 = vld [vmem:[%s10435_s3 + $0x1a8] ss:$16 sps:$4 sm:$0xff]  }
 0x40f   : > { %v4287_v58 = vadd.f32 %v6947_v34, %v9859_v13  ;;  %v4358_v11 = vmax.f32 %v4284_v26, 0.0  ;;  %v7701_v13 = vld [vmem:[%s10435_s3 + $0x1e0] ss:$16 sps:$4 sm:$0xff]  }
 0x411   : > { %v4359_v20 = vmax.f32 %v4287_v58, 0.0  ;;  %5115 = vmatmul.mubr.bf16.gmra.mrb[248].mxu1 %v7698_v17  ;;  %v7746_v58 = vld [vmem:[%s10435_s3 + $0x1cc] ss:$16 sps:$4 sm:$0xff]  }
 0x412   : > { %v4002_v59 = vpop.f32.mrb[124].mxu0  ;;  %5122 = vmatprep.mubr.bf16.mxu1 %v7699_v18 }
 0x413   : > { %v4392_v22 = vpack.c.bf16 %v4359_v20, %v4358_v11  ;;  %v6949_v6 = vadd.f32 %v6948_v48, %v4002_v59  ;;  %v4004_v55 = vpop.f32.mrb[125].mxu0  ;;  %v7744_v59 = vld [vmem:[%s10435_s3 + $0x1c8] ss:$16 sps:$4 sm:$0xff]  }
 0x414   : > { %v4005_v5 = vpop.f32.mrb[126].mxu0 }
 0x415   : > { %v4292_v8 = vadd.f32 %v6949_v6, %v9849_v32  ;;  %v6951_v37 = vadd.f32 %v6950_v43, %v4005_v5  ;;  %v4007_v46 = vpop.f32.mrb[127].mxu0  ;;  %6509 = vmatprep.subr.bf16.mxu1 %v4392_v22  ;;  %v7749_v22 = vld [vmem:[%s10435_s3 + $0x1ec] ss:$16 sps:$4 sm:$0xff]  }
 0x416   : > { %6510 = vmatpush3.bf16.msra.mxu1 %v9979_v9  ;;  %v7707_v9 = vld [vmem:[%s10435_s3 + $0x2c] ss:$16 sps:$4 sm:$0xff]  }
 0x417   : > { %v4295_v31 = vadd.f32 %v6951_v37, %v9854_v62  ;;  %v4360_v52 = vmax.f32 %v4292_v8, 0.0  ;;  %v7705_v62 = vld [vmem:[%s10435_s3 + $0x28] ss:$16 sps:$4 sm:$0xff]  }
 0x418   : > { %v7747_v37 = vld [vmem:[%s10435_s3 + $0x1e8] ss:$16 sps:$4 sm:$0xff]  }
 0x419   : > { %v4361_v12 = vmax.f32 %v4295_v31, 0.0  ;;  %5123 = vmatmul.mubr.bf16.gmra.mrb[252].mxu1 %v7701_v13 }
 0x41a   : > { %5163 = vmatprep.mubr.bf16.mxu1 %v7704_v60 }
 0x41b   : > { %v4393_v32 = vpack.c.bf16 %v4361_v12, %v4360_v52 }
 0x41d   : > { %6511 = vmatprep.subr.bf16.mxu1 %v4393_v32 }
 0x41e   : > { %6512 = vmatpush3.bf16.msra.mxu1 %v9991_v49  ;;  %v7708_v49 = vld [vmem:[%s10435_s3 + $0x48] ss:$16 sps:$4 sm:$0xff]  }
 0x421   : > { %5164 = vmatmul.mubr.bf16.vlgmr.msra.gmra.mrb[0].mxu1 %v7702_v14 }
 0x422   : > { %5171 = vmatprep.mubr.bf16.mxu1 %v7707_v9 }
 0x429   : > { %5172 = vmatmul.mubr.bf16.gmra.mrb[4].mxu1 %v7705_v62 }
 0x42a   : > { %5179 = vmatprep.mubr.bf16.mxu1 %v7710_v51 }
 0x431   : > { %5180 = vmatmul.mubr.bf16.gmra.mrb[8].mxu1 %v7708_v49 }
 0x432   : > { %5187 = vmatprep.mubr.bf16.mxu1 %v7713_v40 }
 0x439   : > { %5188 = vmatmul.mubr.bf16.gmra.mrb[12].mxu1 %v7711_v1 }
 0x43a   : > { %5195 = vmatprep.mubr.bf16.mxu1 %v7716_v35 }
 0x441   : > { %5196 = vmatmul.mubr.bf16.gmra.mrb[16].mxu1 %v7714_v63 }
 0x442   : > { %5203 = vmatprep.mubr.bf16.mxu1 %v7719_v27 }
 0x449   : > { %5204 = vmatmul.mubr.bf16.gmra.mrb[20].mxu1 %v7717_v21 }
 0x44a   : > { %5211 = vmatprep.mubr.bf16.mxu1 %v7722_v44 }
 0x451   : > { %5212 = vmatmul.mubr.bf16.gmra.mrb[24].mxu1 %v7720_v3 }
 0x452   : > { %5219 = vmatprep.mubr.bf16.mxu1 %v7725_v15 }
 0x459   : > { %5220 = vmatmul.mubr.bf16.gmra.mrb[28].mxu1 %v7723_v10 }
 0x45a   : > { %5227 = vmatprep.mubr.bf16.mxu1 %v7728_v29 }
 0x461   : > { %5228 = vmatmul.mubr.bf16.gmra.mrb[32].mxu1 %v7726_v38 }
 0x462   : > { %5235 = vmatprep.mubr.bf16.mxu1 %v7731_v19 }
 0x469   : > { %5236 = vmatmul.mubr.bf16.gmra.mrb[36].mxu1 %v7729_v23 }
 0x46a   : > { %5243 = vmatprep.mubr.bf16.mxu1 %v7734_v41 }
 0x471   : > { %5244 = vmatmul.mubr.bf16.gmra.mrb[40].mxu1 %v7732_v47 }
 0x472   : > { %5251 = vmatprep.mubr.bf16.mxu1 %v7737_v24 }
 0x474   : > { %v6401_v50 = vpop.f32.mrb[192].mxu1 }
 0x475   : > { %v6402_v25 = vpop.f32.mrb[193].mxu1 }
 0x476   : > { %v10164_v53 = vadd.f32 %v6402_v25, %v6401_v50  ;;  %v6404_v2 = vpop.f32.mrb[194].mxu1 }
 0x477   : > { %v6405_v30 = vpop.f32.mrb[195].mxu1 }
 0x478   : > { %v10169_v56 = vadd.f32 %v6405_v30, %v6404_v2 }
 0x479   : > { %5252 = vmatmul.mubr.bf16.gmra.mrb[44].mxu1 %v7735_v45 }
 0x47a   : > { %5259 = vmatprep.mubr.bf16.mxu1 %v7740_v61 }
 0x47c   : > { %v6407_v0 = vpop.f32.mrb[196].mxu1 }
 0x47d   : > { %v6408_v7 = vpop.f32.mrb[197].mxu1 }
 0x47e   : > { %v10174_v4 = vadd.f32 %v6408_v7, %v6407_v0  ;;  %v6410_v16 = vpop.f32.mrb[198].mxu1 }
 0x47f   : > { %v6411_v33 = vpop.f32.mrb[199].mxu1 }
 0x480   : > { %v10179_v39 = vadd.f32 %v6411_v33, %v6410_v16 }
 0x481   : > { %5260 = vmatmul.mubr.bf16.gmra.mrb[48].mxu1 %v7738_v42 }
 0x482   : > { %5267 = vmatprep.mubr.bf16.mxu1 %v7743_v54 }
 0x484   : > { %v6413_v34 = vpop.f32.mrb[200].mxu1 }
 0x485   : > { %v6414_v26 = vpop.f32.mrb[201].mxu1 }
 0x486   : > { %v10184_v17 = vadd.f32 %v6414_v26, %v6413_v34  ;;  %v6416_v18 = vpop.f32.mrb[202].mxu1 }
 0x487   : > { %v6417_v36 = vpop.f32.mrb[203].mxu1 }
 0x488   : > { %v10189_v48 = vadd.f32 %v6417_v36, %v6416_v18  ;;  %v10236_v36 = vpop.permute.xlu0 %4572 }
 0x489   : > { %5268 = vmatmul.mubr.bf16.gmra.mrb[52].mxu1 %v7741_v28 }
 0x48a   : > { %5275 = vmatprep.mubr.bf16.mxu1 %v7746_v58 }
 0x48c   : > { %v6419_v11 = vpop.f32.mrb[204].mxu1 }
 0x48d   : > { %v6420_v20 = vpop.f32.mrb[205].mxu1 }
 0x48e   : > { %v10194_v57 = vadd.f32 %v6420_v20, %v6419_v11  ;;  %v6422_v43 = vpop.f32.mrb[206].mxu1  ;;  %v10238_v20 = vpop.permute.xlu1 %4577 }
 0x48f   : > { %v6423_v6 = vpop.f32.mrb[207].mxu1 }
 0x490   : > { %v10199_v55 = vadd.f32 %v6423_v6, %v6422_v43 }
 0x491   : > { %5276 = vmatmul.mubr.bf16.gmra.mrb[56].mxu1 %v7744_v59 }
 0x492   : > { %5283 = vmatprep.mubr.bf16.mxu1 %v7749_v22 }
 0x494   : > { %v6425_v5 = vpop.f32.mrb[208].mxu1 }
 0x495   : > { %v6426_v8 = vpop.f32.mrb[209].mxu1 }
 0x496   : > { %v10204_v46 = vadd.f32 %v6426_v8, %v6425_v5  ;;  %v6428_v13 = vpop.f32.mrb[210].mxu1  ;;  %v4493_v8 = vpop.permute.xlu0 %4492 }
 0x497   : > { %v6429_v60 = vpop.f32.mrb[211].mxu1 }
 0x498   : > { %v10206_v31 = vadd.f32 %v6429_v60, %v6428_v13 }
 0x499   : > { %5284 = vmatmul.mubr.bf16.gmra.mrb[60].mxu1 %v7747_v37  ;;  %v4498_v37 = vpop.permute.xlu1 %4497 }
 0x49c   : > { %v6431_v52 = vpop.f32.mrb[212].mxu1 }
 0x49d   : > { %v6432_v12 = vpop.f32.mrb[213].mxu1 }
 0x49e   : > { %v10208_v32 = vadd.f32 %v6432_v12, %v6431_v52  ;;  %v6434_v14 = vpop.f32.mrb[214].mxu1 }
 0x49f   : > { %v6435_v9 = vpop.f32.mrb[215].mxu1 }
 0x4a0   : > { %v10210_v62 = vadd.f32 %v6435_v9, %v6434_v14  ;;  %v10246_v14 = vpop.permute.xlu0 %4582 }
 0x4a4   : > { %v6437_v51 = vpop.f32.mrb[216].mxu1 }
 0x4a5   : > { %v6438_v49 = vpop.f32.mrb[217].mxu1 }
 0x4a6   : > { %v10212_v40 = vadd.f32 %v6438_v49, %v6437_v51  ;;  %v6440_v1 = vpop.f32.mrb[218].mxu1  ;;  %v10250_v49 = vpop.permute.xlu1 %4587 }
 0x4a7   : > { %v6441_v35 = vpop.f32.mrb[219].mxu1 }
 0x4a8   : > { %v10214_v63 = vadd.f32 %v6441_v35, %v6440_v1  ;;  %v4503_v35 = vpop.permute.xlu0 %4502 }
 0x4ac   : > { %v6443_v27 = vpop.f32.mrb[220].mxu1 }
 0x4ad   : > { %v6444_v21 = vpop.f32.mrb[221].mxu1 }
 0x4ae   : > { %v10216_v44 = vadd.f32 %v6444_v21, %v6443_v27  ;;  %v6446_v3 = vpop.f32.mrb[222].mxu1 }
 0x4af   : > { %v6447_v15 = vpop.f32.mrb[223].mxu1 }
 0x4b0   : > { %v10218_v10 = vadd.f32 %v6447_v15, %v6446_v3  ;;  %v4508_v15 = vpop.permute.xlu1 %4507 }
 0x4b4   : > { %v6449_v29 = vpop.f32.mrb[224].mxu1 }
 0x4b5   : > { %v6450_v38 = vpop.f32.mrb[225].mxu1 }
 0x4b6   : > { %v10220_v19 = vadd.f32 %v6450_v38, %v6449_v29  ;;  %v6452_v23 = vpop.f32.mrb[226].mxu1 }
 0x4b7   : > { %v6453_v41 = vpop.f32.mrb[227].mxu1 }
 0x4b8   : > { %v10222_v47 = vadd.f32 %v6453_v41, %v6452_v23  ;;  %v10256_v23 = vpop.permute.xlu0 %4592 }
 0x4bc   : > { %v6455_v24 = vpop.f32.mrb[228].mxu1 }
 0x4bd   : > { %v6456_v50 = vpop.f32.mrb[229].mxu1 }
 0x4be   : > { %v10224_v25 = vadd.f32 %v6456_v50, %v6455_v24  ;;  %v6458_v45 = vpop.f32.mrb[230].mxu1  ;;  %v10258_v24 = vpop.permute.xlu1 %4597 }
 0x4bf   : > { %v6459_v2 = vpop.f32.mrb[231].mxu1 }
 0x4c0   : > { %v10226_v61 = vadd.f32 %v6459_v2, %v6458_v45 }
 0x4c4   : > { %v6461_v30 = vpop.f32.mrb[232].mxu1 }
 0x4c5   : > { %v6462_v0 = vpop.f32.mrb[233].mxu1 }
 0x4c6   : > { %v10228_v7 = vadd.f32 %v6462_v0, %v6461_v30  ;;  %v6464_v42 = vpop.f32.mrb[234].mxu1 }
 0x4c7   : > { %v6465_v16 = vpop.f32.mrb[235].mxu1 }
 0x4c8   : > { %v10230_v54 = vadd.f32 %v6465_v16, %v6464_v42  ;;  %v4513_v42 = vpop.permute.xlu0 %4512  ;;  %v4518_v16 = vpop.permute.xlu1 %4517 }
 0x4cc   : > { %v6467_v33 = vpop.f32.mrb[236].mxu1 }
 0x4cd   : > { %v6468_v34 = vpop.f32.mrb[237].mxu1 }
 0x4ce   : > { %v10232_v26 = vadd.f32 %v6468_v34, %v6467_v33  ;;  %v6470_v28 = vpop.f32.mrb[238].mxu1 }
 0x4cf   : > { %v6471_v18 = vpop.f32.mrb[239].mxu1 }
 0x4d0   : > { %v10234_v58 = vadd.f32 %v6471_v18, %v6470_v28  ;;  %v5005_v28 = vadd.f32 %v10164_v53, %v4493_v8 }
 0x4d4   : > { %v6473_v11 = vpop.f32.mrb[240].mxu1 }
 0x4d5   : > { %v6474_v59 = vpop.f32.mrb[241].mxu1 }
 0x4d6   : > { %v10240_v43 = vadd.f32 %v6474_v59, %v6473_v11  ;;  %v6476_v22 = vpop.f32.mrb[242].mxu1  ;;  %v10265_v59 = vpop.permute.xlu0 %4602 }
 0x4d7   : > { %v6477_v6 = vpop.f32.mrb[243].mxu1 }
 0x4d8   : > { %v10242_v5 = vadd.f32 %v6477_v6, %v6476_v22  ;;  %v5008_v6 = vadd.f32 %v10169_v56, %v4498_v37 }
 0x4da   : > { %v4523_v8 = vpop.permute.xlu0 %4522 }
 0x4dc   : > { %v6479_v13 = vpop.f32.mrb[244].mxu1 }
 0x4dd   : > { %v6480_v60 = vpop.f32.mrb[245].mxu1 }
 0x4de   : > { %v10244_v52 = vadd.f32 %v6480_v60, %v6479_v13  ;;  %v6482_v12 = vpop.f32.mrb[246].mxu1 }
 0x4df   : > { %v6483_v9 = vpop.f32.mrb[247].mxu1 }
 0x4e0   : > { %v10248_v51 = vadd.f32 %v6483_v9, %v6482_v12  ;;  %v10268_v12 = vpop.permute.xlu1 %4607  ;;  %v7752_v9 = vld [vmem:[%s10437_s5 + $0x4] ss:$8 sps:$4 sm:$0xff]  }
 0x4e1   : > { %5564 = vmatprep.mubr.bf16.mxu1 %v7752_v9 }
 0x4e4   : > { %v6485_v1 = vpop.f32.mrb[248].mxu1 }
 0x4e5   : > { %v6486_v27 = vpop.f32.mrb[249].mxu1 }
 0x4e6   : > { %v10252_v21 = vadd.f32 %v6486_v27, %v6485_v1  ;;  %v6488_v3 = vpop.f32.mrb[250].mxu1 }
 0x4e7   : > { %v6489_v29 = vpop.f32.mrb[251].mxu1 }
 0x4e8   : > { %v10254_v38 = vadd.f32 %v6489_v29, %v6488_v3 }
 0x4ec   : > { %v6491_v41 = vpop.f32.mrb[252].mxu1 }
 0x4ed   : > { %v6492_v50 = vpop.f32.mrb[253].mxu1 }
 0x4ee   : > { %v10260_v45 = vadd.f32 %v6492_v50, %v6491_v41  ;;  %v6494_v2 = vpop.f32.mrb[254].mxu1  ;;  %v5013_v41 = vadd.f32 %v10174_v4, %v4503_v35  ;;  %v5021_v4 = vadd.f32 %v10184_v17, %v4513_v42 }
 0x4ef   : > { %v6495_v30 = vpop.f32.mrb[255].mxu1 }
 0x4f0   : > { %v10262_v0 = vadd.f32 %v6495_v30, %v6494_v2  ;;  %v4528_v2 = vpop.permute.xlu1 %4527 }
 0x4f4   : > { %v6513_v33 = vpop.f32.mrb[0].mxu1 }
 0x4f5   : > { %v6514_v34 = vpop.f32.mrb[1].mxu1 }
 0x4f6   : > { %v6515_v18 = vadd.f32 %v6514_v34, %v6513_v33  ;;  %v6516_v11 = vpop.f32.mrb[2].mxu1  ;;  %v5016_v33 = vadd.f32 %v10179_v39, %v4508_v15  ;;  %v5024_v39 = vadd.f32 %v10189_v48, %v4518_v16  ;;  %v5032_v48 = vadd.f32 %v10199_v55, %v4528_v2 }
 0x4f7   : > { %v6517_v22 = vpop.f32.mrb[3].mxu1 }
 0x4f8   : > { %v5166_v13 = vadd.f32 %v6515_v18, %v5005_v28  ;;  %v6518_v60 = vadd.f32 %v6517_v22, %v6516_v11  ;;  %v10277_v11 = vpop.permute.xlu0 %4612 }
 0x4fa   : > { %v5169_v1 = vadd.f32 %v6518_v60, %v5008_v6  ;;  %v5292_v27 = vmax.f32 %v5166_v13, 0.0  ;;  %v10279_v60 = vpop.permute.xlu1 %4617 }
 0x4fc   : > { %v5293_v3 = vmax.f32 %v5169_v1, 0.0  ;;  %v6519_v53 = vpop.f32.mrb[4].mxu1 }
 0x4fd   : > { %v6520_v29 = vpop.f32.mrb[5].mxu1 }
 0x4fe   : > { %v10274_v50 = vpack.c.bf16 %v5293_v3, %v5292_v27  ;;  %v6521_v56 = vadd.f32 %v6520_v29, %v6519_v53  ;;  %v6522_v37 = vpop.f32.mrb[6].mxu1  ;;  %v4533_v29 = vpop.permute.xlu0 %4532 }
 0x4ff   : > { %v6523_v30 = vpop.f32.mrb[7].mxu1 }
 0x500   : > { %v5174_v34 = vadd.f32 %v6521_v56, %v5013_v41  ;;  %v6524_v28 = vadd.f32 %v6523_v30, %v6522_v37  ;;  %v4538_v56 = vpop.permute.xlu1 %4537 }
 0x501   : > { %v5040_v55 = vadd.f32 %v10206_v31, %v4538_v56 }
 0x502   : > { %v5177_v18 = vadd.f32 %v6524_v28, %v5016_v33  ;;  %v5294_v22 = vmax.f32 %v5174_v34, 0.0  ;;  %v5029_v28 = vadd.f32 %v10194_v57, %v4523_v8  ;;  %v5037_v57 = vadd.f32 %v10204_v46, %v4533_v29 }
 0x504   : > { %v5295_v6 = vmax.f32 %v5177_v18, 0.0  ;;  %v6525_v13 = vpop.f32.mrb[8].mxu1 }
 0x505   : > { %v6526_v9 = vpop.f32.mrb[9].mxu1 }
 0x506   : > { %v10282_v35 = vpack.c.bf16 %v5295_v6, %v5294_v22  ;;  %v6527_v1 = vadd.f32 %v6526_v9, %v6525_v13  ;;  %v6528_v27 = vpop.f32.mrb[10].mxu1  ;;  %v10288_v22 = vpop.permute.xlu0 %4622 }
 0x507   : > { %v6529_v3 = vpop.f32.mrb[11].mxu1  ;;  %v10291_v9 = vpop.permute.xlu1 %4627 }
 0x508   : > { %v5182_v15 = vadd.f32 %v6527_v1, %v5021_v4  ;;  %v6530_v53 = vadd.f32 %v6529_v3, %v6528_v27 }
 0x50a   : > { %v5185_v41 = vadd.f32 %v6530_v53, %v5024_v39  ;;  %v5296_v37 = vmax.f32 %v5182_v15, 0.0  ;;  %v4543_v39 = vpop.permute.xlu0 %4542 }
 0x50b   : > { %v5045_v46 = vadd.f32 %v10208_v32, %v4543_v39 }
 0x50c   : > { %v5297_v30 = vmax.f32 %v5185_v41, 0.0  ;;  %v6531_v33 = vpop.f32.mrb[12].mxu1 }
 0x50d   : > { %v6532_v34 = vpop.f32.mrb[13].mxu1 }
 0x50e   : > { %v10286_v18 = vpack.c.bf16 %v5297_v30, %v5296_v37  ;;  %v6533_v17 = vadd.f32 %v6532_v34, %v6531_v33  ;;  %v6534_v42 = vpop.f32.mrb[14].mxu1  ;;  %v4548_v37 = vpop.permute.xlu1 %4547 }
 0x50f   : > { %v6535_v6 = vpop.f32.mrb[15].mxu1  ;;  %v5048_v31 = vadd.f32 %v10210_v62, %v4548_v37 }
 0x510   : > { %v5190_v16 = vadd.f32 %v6533_v17, %v5029_v28  ;;  %v6536_v13 = vadd.f32 %v6535_v6, %v6534_v42  ;;  %v10297_v28 = vpop.permute.xlu0 %4632 }
 0x512   : > { %v5193_v4 = vadd.f32 %v6536_v13, %v5032_v48  ;;  %v5298_v1 = vmax.f32 %v5190_v16, 0.0  ;;  %v10299_v48 = vpop.permute.xlu1 %4637 }
 0x514   : > { %v5299_v27 = vmax.f32 %v5193_v4, 0.0  ;;  %v6537_v3 = vpop.f32.mrb[16].mxu1 }
 0x515   : > { %v6538_v15 = vpop.f32.mrb[17].mxu1 }
 0x516   : > { %v10294_v8 = vpack.c.bf16 %v5299_v27, %v5298_v1  ;;  %v6539_v53 = vadd.f32 %v6538_v15, %v6537_v3  ;;  %v6540_v41 = vpop.f32.mrb[18].mxu1  ;;  %v4553_v3 = vpop.permute.xlu0 %4552 }
 0x517   : > { %v6541_v30 = vpop.f32.mrb[19].mxu1 }
 0x518   : > { %v5198_v2 = vadd.f32 %v6539_v53, %v5037_v57  ;;  %v6542_v33 = vadd.f32 %v6541_v30, %v6540_v41  ;;  %v4558_v57 = vpop.permute.xlu1 %4557 }
 0x519   : > { %v5056_v62 = vadd.f32 %v10214_v63, %v4558_v57 }
 0x51a   : > { %v5201_v34 = vadd.f32 %v6542_v33, %v5040_v55  ;;  %v5300_v17 = vmax.f32 %v5198_v2, 0.0  ;;  %v5053_v2 = vadd.f32 %v10212_v40, %v4553_v3 }
 0x51c   : > { %v5301_v42 = vmax.f32 %v5201_v34, 0.0  ;;  %v6543_v6 = vpop.f32.mrb[20].mxu1  ;;  %v10308_v34 = vpop.permute.xlu0 %4642 }
 0x51d   : > { %v6544_v16 = vpop.f32.mrb[21].mxu1 }
 0x51e   : > { %v10302_v29 = vpack.c.bf16 %v5301_v42, %v5300_v17  ;;  %v6545_v13 = vadd.f32 %v6544_v16, %v6543_v6  ;;  %v6546_v4 = vpop.f32.mrb[22].mxu1  ;;  %v10311_v6 = vpop.permute.xlu1 %4647 }
 0x51f   : > { %v6547_v1 = vpop.f32.mrb[23].mxu1 }
 0x520   : > { %v5206_v56 = vadd.f32 %v6545_v13, %v5045_v46  ;;  %v6548_v27 = vadd.f32 %v6547_v1, %v6546_v4  ;;  %v4563_v1 = vpop.permute.xlu0 %4562 }
 0x521   : > { %v5061_v40 = vadd.f32 %v10216_v44, %v4563_v1 }
 0x522   : > { %v5209_v15 = vadd.f32 %v6548_v27, %v5048_v31  ;;  %v5302_v53 = vmax.f32 %v5206_v56, 0.0 }
 0x524   : > { %v5303_v41 = vmax.f32 %v5209_v15, 0.0  ;;  %v6549_v30 = vpop.f32.mrb[24].mxu1  ;;  %v4568_v15 = vpop.permute.xlu1 %4567 }
 0x525   : > { %v6550_v55 = vpop.f32.mrb[25].mxu1  ;;  %v5064_v63 = vadd.f32 %v10218_v10, %v4568_v15 }
 0x526   : > { %v10306_v33 = vpack.c.bf16 %v5303_v41, %v5302_v53  ;;  %v6551_v32 = vadd.f32 %v6550_v55, %v6549_v30  ;;  %v6552_v39 = vpop.f32.mrb[26].mxu1 }
 0x527   : > { %v6553_v17 = vpop.f32.mrb[27].mxu1 }
 0x528   : > { %v5214_v37 = vadd.f32 %v6551_v32, %v5053_v2  ;;  %v6554_v42 = vadd.f32 %v6553_v17, %v6552_v39  ;;  %v5069_v17 = vadd.f32 %v10220_v19, %v10236_v36 }
 0x52a   : > { %v5217_v16 = vadd.f32 %v6554_v42, %v5056_v62  ;;  %v5304_v46 = vmax.f32 %v5214_v37, 0.0 }
 0x52c   : > { %v5305_v13 = vmax.f32 %v5217_v16, 0.0  ;;  %v6555_v4 = vpop.f32.mrb[28].mxu1  ;;  %v5072_v16 = vadd.f32 %v10222_v47, %v10238_v20 }
 0x52d   : > { %v6556_v31 = vpop.f32.mrb[29].mxu1 }
 0x52e   : > { %v10314_v56 = vpack.c.bf16 %v5305_v13, %v5304_v46  ;;  %v6557_v27 = vadd.f32 %v6556_v31, %v6555_v4  ;;  %v6558_v3 = vpop.f32.mrb[30].mxu1 }
 0x52f   : > { %v6559_v53 = vpop.f32.mrb[31].mxu1 }
 0x530   : > { %v5222_v57 = vadd.f32 %v6557_v27, %v5061_v40  ;;  %v6560_v41 = vadd.f32 %v6559_v53, %v6558_v3  ;;  %v5077_v27 = vadd.f32 %v10224_v25, %v10246_v14  ;;  %v5080_v53 = vadd.f32 %v10226_v61, %v10250_v49 }
 0x531   : > { %v5085_v25 = vadd.f32 %v10228_v7, %v10256_v23  ;;  %v5088_v61 = vadd.f32 %v10230_v54, %v10258_v24  ;;  %v5093_v7 = vadd.f32 %v10232_v26, %v10265_v59  ;;  %v5096_v54 = vadd.f32 %v10234_v58, %v10268_v12 }
 0x532   : > { %v5225_v30 = vadd.f32 %v6560_v41, %v5064_v63  ;;  %v5306_v55 = vmax.f32 %v5222_v57, 0.0  ;;  %v5101_v26 = vadd.f32 %v10240_v43, %v10277_v11  ;;  %v5104_v58 = vadd.f32 %v10242_v5, %v10279_v60 }
 0x533   : > { %v5109_v43 = vadd.f32 %v10244_v52, %v10288_v22  ;;  %v5112_v5 = vadd.f32 %v10248_v51, %v10291_v9  ;;  %v5117_v52 = vadd.f32 %v10252_v21, %v10297_v28  ;;  %v5120_v51 = vadd.f32 %v10254_v38, %v10299_v48 }
 0x534   : > { %v5307_v2 = vmax.f32 %v5225_v30, 0.0  ;;  %v6561_v32 = vpop.f32.mrb[32].mxu1  ;;  %v5125_v21 = vadd.f32 %v10260_v45, %v10308_v34  ;;  %v5128_v38 = vadd.f32 %v10262_v0, %v10311_v6  ;;  %v7750_v45 = vld [vmem:[%s10437_s5] ss:$8 sps:$4 sm:$0xff]   ;;  %v7755_v0 = vld [vmem:[%s10437_s5 + $0x14] ss:$8 sps:$4 sm:$0xff]  }
 0x535   : > { %v6562_v39 = vpop.f32.mrb[33].mxu1  ;;  %v7753_v34 = vld [vmem:[%s10437_s5 + $0x10] ss:$8 sps:$4 sm:$0xff]   ;;  %v7758_v6 = vld [vmem:[%s10437_s5 + $0x24] ss:$8 sps:$4 sm:$0xff]  }
 0x536   : > { %v10319_v62 = vpack.c.bf16 %v5307_v2, %v5306_v55  ;;  %v6563_v44 = vadd.f32 %v6562_v39, %v6561_v32  ;;  %v6564_v37 = vpop.f32.mrb[34].mxu1 }
 0x537   : > { %v6565_v42 = vpop.f32.mrb[35].mxu1 }
 0x538   : > { %v5230_v46 = vadd.f32 %v6563_v44, %v5069_v17  ;;  %v6566_v10 = vadd.f32 %v6565_v42, %v6564_v37 }
 0x53a   : > { %v5233_v13 = vadd.f32 %v6566_v10, %v5072_v16  ;;  %v5308_v4 = vmax.f32 %v5230_v46, 0.0 }
 0x53c   : > { %v5309_v1 = vmax.f32 %v5233_v13, 0.0  ;;  %v6567_v31 = vpop.f32.mrb[36].mxu1 }
 0x53d   : > { %v6568_v40 = vpop.f32.mrb[37].mxu1 }
 0x53e   : > { %v6569_v3 = vadd.f32 %v6568_v40, %v6567_v31  ;;  %v6570_v19 = vpop.f32.mrb[38].mxu1  ;;  %v5332_v36 = vpack.c.bf16 %v5309_v1, %v5308_v4 }
 0x53f   : > { %v6571_v15 = vpop.f32.mrb[39].mxu1 }
 0x540   : > { %v5238_v63 = vadd.f32 %v6569_v3, %v5077_v27  ;;  %v6572_v57 = vadd.f32 %v6571_v15, %v6570_v19  ;;  %6609 = vmatprep.subr.bf16.mxu1 %v5332_v36 }
 0x541   : > { %6610 = vmatpush3.bf16.msra.mxu1 %v10274_v50 }
 0x542   : > { %v5241_v47 = vadd.f32 %v6572_v57, %v5080_v53  ;;  %v5310_v20 = vmax.f32 %v5238_v63, 0.0 }
 0x544   : > { %v5311_v41 = vmax.f32 %v5241_v47, 0.0  ;;  %v6573_v30 = vpop.f32.mrb[40].mxu1 }
 0x545   : > { %v6574_v55 = vpop.f32.mrb[41].mxu1 }
 0x546   : > { %v6575_v14 = vadd.f32 %v6574_v55, %v6573_v30  ;;  %v6576_v2 = vpop.f32.mrb[42].mxu1  ;;  %v5333_v32 = vpack.c.bf16 %v5311_v41, %v5310_v20 }
 0x547   : > { %v6577_v39 = vpop.f32.mrb[43].mxu1 }
 0x548   : > { %v5246_v49 = vadd.f32 %v6575_v14, %v5085_v25  ;;  %v6578_v17 = vadd.f32 %v6577_v39, %v6576_v2  ;;  %6611 = vmatprep.subr.bf16.mxu1 %v5333_v32 }
 0x549   : > { %6612 = vmatpush3.bf16.msra.mxu1 %v10282_v35 }
 0x54a   : > { %v5249_v50 = vadd.f32 %v6578_v17, %v5088_v61  ;;  %v5312_v44 = vmax.f32 %v5246_v49, 0.0 }
 0x54c   : > { %v5313_v37 = vmax.f32 %v5249_v50, 0.0  ;;  %v6579_v42 = vpop.f32.mrb[44].mxu1 }
 0x54d   : > { %v6580_v16 = vpop.f32.mrb[45].mxu1 }
 0x54e   : > { %v6581_v23 = vadd.f32 %v6580_v16, %v6579_v42  ;;  %v6582_v46 = vpop.f32.mrb[46].mxu1  ;;  %v5334_v10 = vpack.c.bf16 %v5313_v37, %v5312_v44 }
 0x54f   : > { %v6583_v13 = vpop.f32.mrb[47].mxu1 }
 0x550   : > { %v5254_v24 = vadd.f32 %v6581_v23, %v5093_v7  ;;  %v6584_v4 = vadd.f32 %v6583_v13, %v6582_v46  ;;  %6613 = vmatprep.subr.bf16.mxu1 %v5334_v10 }
 0x551   : > { %6614 = vmatpush3.bf16.msra.mxu1 %v10286_v18 }
 0x552   : > { %v5257_v35 = vadd.f32 %v6584_v4, %v5096_v54  ;;  %v5314_v1 = vmax.f32 %v5254_v24, 0.0  ;;  %v7759_v24 = vld [vmem:[%s10437_s5 + $0x30] ss:$8 sps:$4 sm:$0xff]   ;;  %v7764_v4 = vld [vmem:[%s10437_s5 + $0x44] ss:$8 sps:$4 sm:$0xff]  }
 0x554   : > { %v5315_v31 = vmax.f32 %v5257_v35, 0.0  ;;  %v6585_v40 = vpop.f32.mrb[48].mxu1  ;;  %v7762_v35 = vld [vmem:[%s10437_s5 + $0x40] ss:$8 sps:$4 sm:$0xff]  }
 0x555   : > { %v6586_v27 = vpop.f32.mrb[49].mxu1 }
 0x556   : > { %v6587_v59 = vadd.f32 %v6586_v27, %v6585_v40  ;;  %v6588_v3 = vpop.f32.mrb[50].mxu1  ;;  %v5335_v19 = vpack.c.bf16 %v5315_v31, %v5314_v1  ;;  %v7767_v1 = vld [vmem:[%s10437_s5 + $0x54] ss:$8 sps:$4 sm:$0xff]   ;;  %v7765_v31 = vld [vmem:[%s10437_s5 + $0x50] ss:$8 sps:$4 sm:$0xff]  }
 0x557   : > { %v6589_v36 = vpop.f32.mrb[51].mxu1  ;;  %v7770_v40 = vld [vmem:[%s10437_s5 + $0x64] ss:$8 sps:$4 sm:$0xff]   ;;  %v7768_v27 = vld [vmem:[%s10437_s5 + $0x60] ss:$8 sps:$4 sm:$0xff]  }
 0x558   : > { %v5262_v12 = vadd.f32 %v6587_v59, %v5101_v26  ;;  %v6590_v15 = vadd.f32 %v6589_v36, %v6588_v3  ;;  %6615 = vmatprep.subr.bf16.mxu1 %v5335_v19  ;;  %v7773_v26 = vld [vmem:[%s10437_s5 + $0x74] ss:$8 sps:$4 sm:$0xff]   ;;  %v7771_v59 = vld [vmem:[%s10437_s5 + $0x70] ss:$8 sps:$4 sm:$0xff]   ;;  %v7774_v3 = vld [vmem:[%s10439_s7] sm:$0xff]  }
 0x559   : > { %6616 = vmatpush3.bf16.msra.mxu1 %v10294_v8 }
 0x55a   : > { %v5265_v18 = vadd.f32 %v6590_v15, %v5104_v58  ;;  %v5316_v53 = vmax.f32 %v5262_v12, 0.0  ;;  %v5375_v15 = vpop.permute.xlu0 %5374 }
 0x55c   : > { %v5317_v63 = vmax.f32 %v5265_v18, 0.0  ;;  %v6591_v57 = vpop.f32.mrb[52].mxu1 }
 0x55d   : > { %v6592_v47 = vpop.f32.mrb[53].mxu1 }
 0x55e   : > { %v6593_v11 = vadd.f32 %v6592_v47, %v6591_v57  ;;  %v6594_v20 = vpop.f32.mrb[54].mxu1  ;;  %v5336_v41 = vpack.c.bf16 %v5317_v63, %v5316_v53  ;;  %v5380_v57 = vpop.permute.xlu1 %5379 }
 0x55f   : > { %v6595_v30 = vpop.f32.mrb[55].mxu1 }
 0x560   : > { %v5270_v60 = vadd.f32 %v6593_v11, %v5109_v43  ;;  %v6596_v55 = vadd.f32 %v6595_v30, %v6594_v20  ;;  %6617 = vmatprep.subr.bf16.mxu1 %v5336_v41 }
 0x561   : > { %6618 = vmatpush3.bf16.msra.mxu1 %v10302_v29 }
 0x562   : > { %v5273_v8 = vadd.f32 %v6596_v55, %v5112_v5  ;;  %v5318_v25 = vmax.f32 %v5270_v60, 0.0  ;;  %v5385_v55 = vpop.permute.xlu0 %5384 }
 0x564   : > { %v5319_v14 = vmax.f32 %v5273_v8, 0.0  ;;  %v6597_v2 = vpop.f32.mrb[56].mxu1 }
 0x565   : > { %v6598_v32 = vpop.f32.mrb[57].mxu1 }
 0x566   : > { %v6599_v22 = vadd.f32 %v6598_v32, %v6597_v2  ;;  %v6600_v39 = vpop.f32.mrb[58].mxu1  ;;  %v5337_v61 = vpack.c.bf16 %v5319_v14, %v5318_v25  ;;  %v5390_v2 = vpop.permute.xlu1 %5389 }
 0x567   : > { %v6601_v49 = vpop.f32.mrb[59].mxu1 }
 0x568   : > { %v5278_v9 = vadd.f32 %v6599_v22, %v5117_v52  ;;  %v6602_v17 = vadd.f32 %v6601_v49, %v6600_v39  ;;  %6619 = vmatprep.subr.bf16.mxu1 %v5337_v61 }
 0x569   : > { %6620 = vmatpush3.bf16.msra.mxu1 %v10306_v33 }
 0x56a   : > { %v5281_v29 = vadd.f32 %v6602_v17, %v5120_v51  ;;  %v5320_v50 = vmax.f32 %v5278_v9, 0.0  ;;  %v5395_v17 = vpop.permute.xlu0 %5394 }
 0x56c   : > { %v5321_v44 = vmax.f32 %v5281_v29, 0.0  ;;  %v6603_v37 = vpop.f32.mrb[60].mxu1 }
 0x56d   : > { %v6604_v42 = vpop.f32.mrb[61].mxu1 }
 0x56e   : > { %v6605_v28 = vadd.f32 %v6604_v42, %v6603_v37  ;;  %v6606_v16 = vpop.f32.mrb[62].mxu1  ;;  %v5338_v7 = vpack.c.bf16 %v5321_v44, %v5320_v50  ;;  %v5400_v37 = vpop.permute.xlu1 %5399 }
 0x56f   : > { %v6607_v23 = vpop.f32.mrb[63].mxu1 }
 0x570   : > { %v5286_v48 = vadd.f32 %v6605_v28, %v5125_v21  ;;  %v6608_v46 = vadd.f32 %v6607_v23, %v6606_v16  ;;  %6621 = vmatprep.subr.bf16.mxu1 %v5338_v7 }
 0x571   : > { %6622 = vmatpush3.bf16.msra.mxu1 %v10314_v56  ;;  %v7756_v56 = vld [vmem:[%s10437_s5 + $0x20] ss:$8 sps:$4 sm:$0xff]  }
 0x572   : > { %v5289_v33 = vadd.f32 %v6608_v46, %v5128_v38  ;;  %v5322_v10 = vmax.f32 %v5286_v48, 0.0  ;;  %v5405_v46 = vpop.permute.xlu0 %5404 }
 0x574   : > { %v5323_v13 = vmax.f32 %v5289_v33, 0.0 }
 0x576   : > { %v5339_v54 = vpack.c.bf16 %v5323_v13, %v5322_v10 }
 0x578   : > { %6623 = vmatprep.subr.bf16.mxu1 %v5339_v54  ;;  %v5410_v54 = vpop.permute.xlu1 %5409 }
 0x579   : > { %6624 = vmatpush3.bf16.msra.mxu1 %v10319_v62  ;;  %v7761_v62 = vld [vmem:[%s10437_s5 + $0x34] ss:$8 sps:$4 sm:$0xff]  }
 0x57c   : > { %5565 = vmatmul.mubr.bf16.vlgmr.msra.gmra.mrb[64].mxu1 %v7750_v45 }
 0x57d   : > { %5572 = vmatprep.mubr.bf16.mxu1 %v7755_v0 }
 0x584   : > { %5573 = vmatmul.mubr.bf16.gmra.mrb[68].mxu1 %v7753_v34 }
 0x585   : > { %5580 = vmatprep.mubr.bf16.mxu1 %v7758_v6 }
 0x58c   : > { %5581 = vmatmul.mubr.bf16.gmra.mrb[72].mxu1 %v7756_v56 }
 0x58d   : > { %5588 = vmatprep.mubr.bf16.mxu1 %v7761_v62 }
 0x594   : > { %5589 = vmatmul.mubr.bf16.gmra.mrb[76].mxu1 %v7759_v24 }
 0x595   : > { %5596 = vmatprep.mubr.bf16.mxu1 %v7764_v4 }
 0x59c   : > { %5597 = vmatmul.mubr.bf16.gmra.mrb[80].mxu1 %v7762_v35  ;;  %v5415_v35 = vpop.permute.xlu0 %5414 }
 0x59d   : > { %5604 = vmatprep.mubr.bf16.mxu1 %v7767_v1 }
 0x5a4   : > { %5605 = vmatmul.mubr.bf16.gmra.mrb[84].mxu1 %v7765_v31 }
 0x5a5   : > { %5612 = vmatprep.mubr.bf16.mxu1 %v7770_v40 }
 0x5ac   : > { %5613 = vmatmul.mubr.bf16.gmra.mrb[88].mxu1 %v7768_v27  ;;  %v5420_v27 = vpop.permute.xlu1 %5419 }
 0x5ad   : > { %5620 = vmatprep.mubr.bf16.mxu1 %v7773_v26 }
 0x5b4   : > { %5621 = vmatmul.mubr.bf16.gmra.mrb[92].mxu1 %v7771_v59 }
 0x5b5   : > { %6772 = vmatprep.mubr.bf16.mxu1 %v7774_v3 }
 0x64f   : > { %v6625_v19 = vpop.f32.mrb[64].mxu1 }
 0x650   : > { %v6626_v36 = vpop.f32.mrb[65].mxu1 }
 0x651   : > { %v6627_v58 = vadd.f32 %v6626_v36, %v6625_v19  ;;  %v6628_v12 = vpop.f32.mrb[66].mxu1 }
 0x652   : > { %v6629_v18 = vpop.f32.mrb[67].mxu1 }
 0x653   : > { %v5567_v53 = vadd.f32 %v6627_v58, %v5375_v15  ;;  %v6630_v63 = vadd.f32 %v6629_v18, %v6628_v12  ;;  %v5425_v18 = vpop.permute.xlu0 %5424 }
 0x655   : > { %v5570_v47 = vadd.f32 %v6630_v63, %v5380_v57  ;;  %v5629_v43 = vmax.f32 %v5567_v53, 0.0 }
 0x657   : > { %v5630_v11 = vmax.f32 %v5570_v47, 0.0  ;;  %v6631_v20 = vpop.f32.mrb[68].mxu1  ;;  %v5430_v47 = vpop.permute.xlu1 %5429 }
 0x658   : > { %v6632_v41 = vpop.f32.mrb[69].mxu1 }
 0x659   : > { %v6633_v30 = vadd.f32 %v6632_v41, %v6631_v20  ;;  %v6634_v5 = vpop.f32.mrb[70].mxu1  ;;  %v5645_v60 = vpack.c.bf16 %v5630_v11, %v5629_v43 }
 0x65a   : > { %v6635_v8 = vpop.f32.mrb[71].mxu1 }
 0x65b   : > { %v5575_v25 = vadd.f32 %v6633_v30, %v5385_v55  ;;  %v6636_v14 = vadd.f32 %v6635_v8, %v6634_v5  ;;  %6756 = vmatprep.subr.bf16.mxu1 %v5645_v60  ;;  %v5435_v8 = vpop.permute.xlu0 %5434 }
 0x65c   : > { %6757 = vmatpush3.bf16.msra.mxu1 %v5645_v60 }
 0x65d   : > { %v5578_v32 = vadd.f32 %v6636_v14, %v5390_v2  ;;  %v5631_v52 = vmax.f32 %v5575_v25, 0.0 }
 0x65f   : > { %v5632_v22 = vmax.f32 %v5578_v32, 0.0  ;;  %v6637_v39 = vpop.f32.mrb[72].mxu1  ;;  %v5440_v32 = vpop.permute.xlu1 %5439 }
 0x660   : > { %v6638_v61 = vpop.f32.mrb[73].mxu1 }
 0x661   : > { %v6639_v49 = vadd.f32 %v6638_v61, %v6637_v39  ;;  %v6640_v51 = vpop.f32.mrb[74].mxu1  ;;  %v5646_v9 = vpack.c.bf16 %v5632_v22, %v5631_v52 }
 0x662   : > { %v6641_v29 = vpop.f32.mrb[75].mxu1 }
 0x663   : > { %v5583_v50 = vadd.f32 %v6639_v49, %v5395_v17  ;;  %v6642_v44 = vadd.f32 %v6641_v29, %v6640_v51  ;;  %6758 = vmatprep.subr.bf16.mxu1 %v5646_v9  ;;  %v5445_v29 = vpop.permute.xlu0 %5444 }
 0x664   : > { %6759 = vmatpush3.bf16.msra.mxu1 %v5646_v9 }
 0x665   : > { %v5586_v42 = vadd.f32 %v6642_v44, %v5400_v37  ;;  %v5633_v21 = vmax.f32 %v5583_v50, 0.0 }
 0x667   : > { %v5634_v28 = vmax.f32 %v5586_v42, 0.0  ;;  %v6643_v16 = vpop.f32.mrb[76].mxu1  ;;  %v5450_v42 = vpop.permute.xlu1 %5449 }
 0x668   : > { %v6644_v7 = vpop.f32.mrb[77].mxu1 }
 0x669   : > { %v6645_v23 = vadd.f32 %v6644_v7, %v6643_v16  ;;  %v6646_v38 = vpop.f32.mrb[78].mxu1  ;;  %v5647_v48 = vpack.c.bf16 %v5634_v28, %v5633_v21 }
 0x66a   : > { %v6647_v33 = vpop.f32.mrb[79].mxu1 }
 0x66b   : > { %v5591_v10 = vadd.f32 %v6645_v23, %v5405_v46  ;;  %v6648_v13 = vadd.f32 %v6647_v33, %v6646_v38  ;;  %6760 = vmatprep.subr.bf16.mxu1 %v5647_v48  ;;  %v7775_v23 = vld [vmem:[%s10439_s7 + $0x8] sm:$0xff]   ;;  %v7776_v38 = vld [vmem:[%s10439_s7 + $0x10] sm:$0xff]   ;;  %v7803_v46 = vmov 0.0   ;;  %v5672_v33 = vpop.permute.xlu0 %5671 }
 0x66c   : > { %6761 = vmatpush3.bf16.msra.mxu1 %v5647_v48  ;;  %v7777_v48 = vld [vmem:[%s10439_s7 + $0x18] sm:$0xff]  }
 0x66d   : > { %v5594_v45 = vadd.f32 %v6648_v13, %v5410_v54  ;;  %v5635_v0 = vmax.f32 %v5591_v10, 0.0  ;;  %v5677_v10 = vpop.permute.xlu1 %5676 }
 0x66f   : > { %v5636_v34 = vmax.f32 %v5594_v45, 0.0  ;;  %v6649_v6 = vpop.f32.mrb[80].mxu1  ;;  %v5682_v13 = vpop.permute.xlu0 %5681 }
 0x670   : > { %v6650_v56 = vpop.f32.mrb[81].mxu1 }
 0x671   : > { %v6651_v62 = vadd.f32 %v6650_v56, %v6649_v6  ;;  %v6652_v24 = vpop.f32.mrb[82].mxu1  ;;  %v5648_v4 = vpack.c.bf16 %v5636_v34, %v5635_v0  ;;  %v5687_v54 = vpop.permute.xlu1 %5686 }
 0x672   : > { %v6653_v1 = vpop.f32.mrb[83].mxu1 }
 0x673   : > { %v5599_v31 = vadd.f32 %v6651_v62, %v5415_v35  ;;  %v6654_v40 = vadd.f32 %v6653_v1, %v6652_v24  ;;  %6762 = vmatprep.subr.bf16.mxu1 %v5648_v4  ;;  %v5692_v6 = vpop.permute.xlu0 %5691 }
 0x674   : > { %6763 = vmatpush3.bf16.msra.mxu1 %v5648_v4 }
 0x675   : > { %v5602_v26 = vadd.f32 %v6654_v40, %v5420_v27  ;;  %v5637_v59 = vmax.f32 %v5599_v31, 0.0  ;;  %v5697_v35 = vpop.permute.xlu1 %5696 }
 0x677   : > { %v5638_v3 = vmax.f32 %v5602_v26, 0.0  ;;  %v6655_v19 = vpop.f32.mrb[84].mxu1 }
 0x678   : > { %v6656_v36 = vpop.f32.mrb[85].mxu1 }
 0x679   : > { %v6657_v58 = vadd.f32 %v6656_v36, %v6655_v19  ;;  %v6658_v12 = vpop.f32.mrb[86].mxu1  ;;  %v5649_v15 = vpack.c.bf16 %v5638_v3, %v5637_v59  ;;  %v5702_v3 = vpop.permute.xlu0 %5701 }
 0x67a   : > { %v6659_v53 = vpop.f32.mrb[87].mxu1 }
 0x67b   : > { %v5607_v63 = vadd.f32 %v6657_v58, %v5425_v18  ;;  %v6660_v57 = vadd.f32 %v6659_v53, %v6658_v12  ;;  %6764 = vmatprep.subr.bf16.mxu1 %v5649_v15 }
 0x67c   : > { %6765 = vmatpush3.bf16.msra.mxu1 %v5649_v15  ;;  %v5707_v15 = vpop.permute.xlu1 %5706 }
 0x67d   : > { %v5610_v43 = vadd.f32 %v6660_v57, %v5430_v47  ;;  %v5639_v11 = vmax.f32 %v5607_v63, 0.0 }
 0x67f   : > { %v5640_v20 = vmax.f32 %v5610_v43, 0.0  ;;  %v6661_v41 = vpop.f32.mrb[88].mxu1 }
 0x680   : > { %v6662_v30 = vpop.f32.mrb[89].mxu1 }
 0x681   : > { %v6663_v5 = vadd.f32 %v6662_v30, %v6661_v41  ;;  %v6664_v60 = vpop.f32.mrb[90].mxu1  ;;  %v5650_v55 = vpack.c.bf16 %v5640_v20, %v5639_v11 }
 0x682   : > { %v6665_v25 = vpop.f32.mrb[91].mxu1 }
 0x683   : > { %v5615_v14 = vadd.f32 %v6663_v5, %v5435_v8  ;;  %v6666_v2 = vadd.f32 %v6665_v25, %v6664_v60  ;;  %6766 = vmatprep.subr.bf16.mxu1 %v5650_v55  ;;  %v5810_v60 = vld [vmem:[%s10441_s9] sm:$0x1] }
 0x684   : > { %6767 = vmatpush3.bf16.msra.mxu1 %v5650_v55  ;;  %v5817_v55 = vlaneseq }
 0x685   : > { %v5618_v52 = vadd.f32 %v6666_v2, %v5440_v32  ;;  %v5641_v22 = vmax.f32 %v5615_v14, 0.0  ;;  %v5815_v14 = vpop.permute.xlu0 %5814 }
 0x686   : > { %v5818_v8 = vshrl.u32 %v5817_v55, 7 }
 0x687   : > { %v5642_v39 = vmax.f32 %v5618_v52, 0.0  ;;  %v6667_v61 = vpop.f32.mrb[92].mxu1 }
 0x688   : > { %v6668_v49 = vpop.f32.mrb[93].mxu1  ;;  %v5819_v25 = vsub.s32 0, %v5818_v8 }
 0x689   : > { %v6669_v51 = vadd.f32 %v6668_v49, %v6667_v61  ;;  %v6670_v9 = vpop.f32.mrb[94].mxu1  ;;  %v5651_v17 = vpack.c.bf16 %v5642_v39, %v5641_v22 }
 0x68a   : > { %v6671_v50 = vpop.f32.mrb[95].mxu1  ;;  %v5820_v2 = vrot.slane %v5815_v14, %v5819_v25 }
 0x68b   : > { %v5623_v44 = vadd.f32 %v6669_v51, %v5445_v29  ;;  %v6672_v37 = vadd.f32 %v6671_v50, %v6670_v9  ;;  %6768 = vmatprep.subr.bf16.mxu1 %v5651_v17 }
 0x68c   : > { %6769 = vmatpush3.bf16.msra.mxu1 %v5651_v17 }
 0x68d   : > { %v5626_v21 = vadd.f32 %v6672_v37, %v5450_v42  ;;  %v5643_v28 = vmax.f32 %v5623_v44, 0.0 }
 0x68f   : > { %v5644_v16 = vmax.f32 %v5626_v21, 0.0 }
 0x691   : > { %v5652_v7 = vpack.c.bf16 %v5644_v16, %v5643_v28 }
 0x693   : > { %6770 = vmatprep.subr.bf16.mxu1 %v5652_v7 }
 0x694   : > { %6771 = vmatpush3.bf16.msra.mxu1 %v5652_v7 }
 0x695   : > { %6780 = vmatprep.subr.bf16.mxu1 %v7803_v46 }
 0x697   : > { %6773 = vmatmul.mubr.bf16.vlgmr.msra.gmra.mrb[96].mxu1 %v7775_v23 }
 0x698   : > { %6776 = vmatprep.mubr.bf16.mxu1 %v7776_v38 }
 0x69f   : > { %6777 = vmatmul.mubr.bf16.gmra.mrb[100].mxu1 %v7777_v48 }
 0x6a0   : > { %6788 = vmatprep.mubr.msk.bf16.mxu1 %vm7804_vm1, %v7803_v46 }
 0x76a   : > { %v6774_v45 = vpop.f32.mrb[96].mxu1 }
 0x76b   : > { %v5776_v0 = vadd.f32 %v6774_v45, %v5682_v13  ;;  %v5767_v34 = vpop.f32.mrb[97].mxu1 }
 0x76c   : > { %v5768_v56 = vadd.f32 %v5767_v34, %v5672_v33  ;;  %v6775_v62 = vpop.f32.mrb[98].mxu1 }
 0x76d   : > { %v5779_v24 = vadd.f32 %v6775_v62, %v5687_v54  ;;  %v5770_v4 = vpop.f32.mrb[99].mxu1  ;;  %v5800_v31 = vmax.f32 %v5776_v0, 0.0 }
 0x76e   : > { %v5771_v1 = vadd.f32 %v5770_v4, %v5677_v10  ;;  %v5798_v27 = vmax.f32 %v5768_v56, 0.0 }
 0x76f   : > { %v5801_v40 = vmax.f32 %v5779_v24, 0.0 }
 0x770   : > { %v5799_v26 = vmax.f32 %v5771_v1, 0.0 }
 0x771   : > { %v5807_v59 = vpack.c.bf16 %v5801_v40, %v5800_v31 }
 0x772   : > { %v5806_v19 = vpack.c.bf16 %v5799_v26, %v5798_v27  ;;  %v6778_v36 = vpop.f32.mrb[100].mxu1 }
 0x773   : > { %v5792_v58 = vadd.f32 %v6778_v36, %v5702_v3  ;;  %v5783_v12 = vpop.f32.mrb[101].mxu1 }
 0x774   : > { %v5784_v18 = vadd.f32 %v5783_v12, %v5692_v6  ;;  %v6779_v53 = vpop.f32.mrb[102].mxu1  ;;  %6781 = vmatpush3.bf16.msra.mxu1 %v5806_v19 }
 0x775   : > { %v5795_v63 = vadd.f32 %v6779_v53, %v5707_v15  ;;  %v5786_v57 = vpop.f32.mrb[103].mxu1  ;;  %6782 = vmatprep.subr.bf16.mxu1 %v7803_v46  ;;  %v5804_v43 = vmax.f32 %v5792_v58, 0.0 }
 0x776   : > { %v5787_v47 = vadd.f32 %v5786_v57, %v5697_v35  ;;  %v5802_v20 = vmax.f32 %v5784_v18, 0.0 }
 0x777   : > { %v5805_v11 = vmax.f32 %v5795_v63, 0.0 }
 0x778   : > { %v5803_v41 = vmax.f32 %v5787_v47, 0.0  ;;  %6783 = vmatpush3.bf16.msra.mxu1 %v5807_v59 }
 0x779   : > { %v5809_v30 = vpack.c.bf16 %v5805_v11, %v5804_v43  ;;  %6784 = vmatprep.subr.bf16.mxu1 %v7803_v46 }
 0x77a   : > { %v5808_v5 = vpack.c.bf16 %v5803_v41, %v5802_v20 }
 0x77c   : > { %6785 = vmatpush3.bf16.msra.mxu1 %v5808_v5 }
 0x77d   : > { %6786 = vmatprep.subr.bf16.mxu1 %v7803_v46 }
 0x780   : > { %6787 = vmatpush3.bf16.msra.mxu1 %v5809_v30 }
 0x783   : > { %6789 = vmatmul.mubr.msk.bf16.vlgmr.msra.gmra.mrb[104].mxu1 %vm5821_vm2, %v5810_v60 }
 0x856   : > { %v5859_v32 = vpop.f32.mrb[104].mxu1 }
 0x857   : > { %v5860_v52 = vadd.f32 %v5859_v32, %v5820_v2  ;;  %v6790_v22 = vpop.f32.mrb[105].mxu1 }
 0x858   : > { %v5862_v39 = vpop.f32.mrb[106].mxu1 }
 0x859   : > { %v5865_v61 = vmax.f32 %v5860_v52, 0.0  ;;  %v6791_v49 = vpop.f32.mrb[107].mxu1 }
 0x85b   : > { %5867 = vst.msk [vmem:[%s415_s14] sm:$0x1] %vm5866_vm3, %v5865_v61 }
 0x85c PF: > { %s23_s21 = sadd.s32 1, %s7800_s21   ;;  %s10580_s19 = smov %s7796_s20 }
 0x85d   : > { %p20_p5 = scmp.ge.s32.totalorder %s23_s21, 4   ;;  %s10581_s20 = smov %s10583_s10 }
 0x85f   :  { %22 = sbr.rel (!%p20_p5) target bundleno = 3 (0x3), region = 94 }

</bundles_post_ra>
